<compile_context>
chip_gen: v7x
topology: tpu7x:2x2x1
jax: 0.10.0
libtpu: 0.0.40
codegen_flags: <defaults>
</compile_context>

<pallas_src>
import functools

import jax
import jax.numpy as jnp
from jax.experimental import pallas as pl
from jax.experimental.pallas import tpu as pltpu

LANE = 128


def _round_up(n, m):
    return ((n + m - 1) // m) * m


# ----------------------------------------------------------------------------
# shared post-op math (fused epilogue inside the Pallas kernel; reused by ref)
# ----------------------------------------------------------------------------
def _postops(y, *, add1, inv1, has_clip, clip_max, scl, add2, inv2, final_half):
    # torch.floor(x + 2**a >> b) == floor((x + 2**a) * 2**-b); power-of-two
    # reciprocal multiplies are exact in f32 (strength-reduced, stays on VPU).
    y = jnp.floor((y + add1) * inv1)
    if has_clip:
        y = jnp.clip(y, 0.0, clip_max)
        y = jnp.floor((y * scl + add2) * inv2)
    if final_half:
        y = jnp.floor(y * 0.5)     # reference feeds floor(x/2) into next deconv
    return y


def _layer_posts(p):
    return (
        dict(add1=2.0 ** 8, inv1=2.0 ** -9, has_clip=True, clip_max=float(p["clp"][0]),
             scl=float(p["scl"][0]), add2=2.0 ** 20, inv2=2.0 ** -21, final_half=True),
        dict(add1=2.0 ** 9, inv1=2.0 ** -10, has_clip=True, clip_max=float(p["clp"][1]),
             scl=float(p["scl"][1]), add2=2.0 ** 20, inv2=2.0 ** -21, final_half=True),
        dict(add1=2.0 ** 13, inv1=2.0 ** -14, has_clip=False, clip_max=0.0,
             scl=1.0, add2=0.0, inv2=1.0, final_half=False),
    )


# ----------------------------------------------------------------------------
# phase decomposition of ConvTranspose2d: stride s -> s*s direct convs on the
# ORIGINAL-resolution input (no zero-upsample, no wasted MACs)
# ----------------------------------------------------------------------------
def _phase_taps_1d(k, stride, pad):
    lo = k - 1 - pad
    raw = []
    for ph in range(stride):
        taps = []
        for t in range(k):
            d = ph + t - lo
            if d % stride == 0:
                taps.append((t, d // stride))
        raw.append(taps)
    offs = [o for taps in raw for _, o in taps]
    pad_lo, pad_hi = -min(offs), max(offs)
    per_phase = [[(t, o + pad_lo) for t, o in taps] for taps in raw]
    return per_phase, pad_lo, pad_hi


def _phase_table(k, stride, pad):
    ph1d, pad_lo, pad_hi = _phase_taps_1d(k, stride, pad)
    phases = []                               # phase index = ph_h * stride + ph_w
    for ph_h in range(stride):
        for ph_w in range(stride):
            phases.append([((th, tw), (oh, ow))
                           for th, oh in ph1d[ph_h]
                           for tw, ow in ph1d[ph_w]])
    return phases, pad_lo, pad_hi


# ----------------------------------------------------------------------------
# one-time parameter preparation (hoisted off the inference path)
# ----------------------------------------------------------------------------
def prepare_params(p):
    """Pad channels to 128, pack per-spatial-offset / per-phase weight slabs
    for the fused MXU matmuls, tile bias/mul across phases, cast to bf16."""
    N = p["w1"].shape[2]
    M = p["w3"].shape[3]
    Np, Mp = _round_up(N, LANE), _round_up(M, LANE)
    posts = _layer_posts(p)

    layer_defs = [
        dict(w=p["w1"], b=p["b1"], mul=p["mul0"], k=5, stride=2, pad=2,
             cinp=Np, coutp=Np, post=posts[0], out_dtype=jnp.bfloat16),
        dict(w=p["w2"], b=p["b2"], mul=p["mul1"], k=5, stride=2, pad=2,
             cinp=Np, coutp=Np, post=posts[1], out_dtype=jnp.bfloat16),
        # final layer emits f32: its values can exceed bf16's exact-int range
        dict(w=p["w3"], b=p["b3"], mul=p["mul2"], k=3, stride=1, pad=1,
             cinp=Np, coutp=Mp, post=posts[2], out_dtype=jnp.float32),
    ]

    weights, cfgs = [], []
    for ld in layer_defs:
        k, stride, pad = ld["k"], ld["stride"], ld["pad"]
        phases, pad_lo, pad_hi = _phase_table(k, stride, pad)
        assert (pad_lo, pad_hi) == (1, 1)      # this module: 1-px halo each side
        n_off = pad_lo + pad_hi + 1            # spatial offsets per axis (=3)
        n_ph = len(phases)
        cinp, coutp = ld["cinp"], ld["coutp"]
        cpk = n_ph * coutp

        w = ld["w"]
        _, _, ci, co = w.shape
        w = jnp.pad(w, ((0, 0), (0, 0), (0, cinp - ci), (0, coutp - co)))
        # per-offset weight slab: all phases' Cout blocks concatenated; zero
        # blocks where a phase does not use that spatial offset.
        packed = jnp.zeros((n_off * n_off, cinp, cpk), jnp.float32)
        for ph_idx, taps in enumerate(phases):
            for (kh, kw), (oh, ow) in taps:
                oi = oh * n_off + ow
                packed = packed.at[oi, :, ph_idx * coutp:(ph_idx + 1) * coutp].set(
                    w[kh, kw])

        bvec = jnp.pad(ld["b"], (0, coutp - co)).astype(jnp.float32)
        mvec = jnp.pad(ld["mul"], (0, coutp - co)).astype(jnp.float32)
        weights.append(dict(
            w=packed.astype(jnp.bfloat16),          # MXU operand dtype
            b=jnp.tile(bvec, n_ph).reshape(1, cpk),
            mul=jnp.tile(mvec, n_ph).reshape(1, cpk),
        ))
        cfgs.append(dict(stride=stride, n_off=n_off, n_ph=n_ph, cinp=cinp,
                         coutp=coutp, post=ld["post"], out_dtype=ld["out_dtype"]))
    return weights, tuple(cfgs), (N, M, Np, Mp)


# ----------------------------------------------------------------------------
# Pallas kernel: halo'd row-block DMA + 9 fused phase-packed matmuls + epilogue
# ----------------------------------------------------------------------------
def _make_kernel(TH, Wf, n_off, cpk, plane_rows, post, out_dtype):
    rows_out = TH * Wf
    rows_in = (TH + 2) * Wf
    offsets = [oh * Wf + ow for oh in range(n_off) for ow in range(n_off)]

    def kernel(x_hbm, w_ref, b_ref, m_ref, o_ref, xbuf, sem):
        b = pl.program_id(0)
        t = pl.program_id(1)
        # Halo'd row-block fetch: rows [t*TH, t*TH+TH+2) of batch b's padded
        # plane, already flattened to (row*Wf + col, C) in HBM.  Synchronous:
        # per-step bytes are far below the step's MXU work.
        start = pl.multiple_of(b * plane_rows + t * rows_out, 8)
        cp = pltpu.make_async_copy(x_hbm.at[pl.ds(start, rows_in), :],
                                   xbuf.at[pl.ds(0, rows_in), :],
                                   sem.at[0])
        cp.start()
        cp.wait()

        # One matmul per spatial offset; all phases' output blocks packed along
        # Cout -> single wide f32 accumulator, single lane-dense store.
        acc = jnp.zeros((rows_out, cpk), jnp.float32)
        for i, off in enumerate(offsets):
            acc = acc + jnp.dot(xbuf[pl.ds(off, rows_out), :], w_ref[i],
                                preferred_element_type=jnp.float32)

        y = _postops((acc + b_ref[...]) * m_ref[...], **post)
        o_ref[...] = y.astype(out_dtype)

    return kernel


def _pick_row_tile(H, Wf, cin, cpk, budget_bytes=12 << 20, min_tiles=4):
    """Largest divisor of H whose per-step VMEM footprint (halo'd input window,
    f32 accumulator + epilogue temps, double-buffered output block) fits the
    budget, while still producing >= min_tiles row tiles when H allows."""
    cap = max(1, H // min(min_tiles, H))
    best = 1
    for th in range(1, H + 1):
        if H % th or th > cap:
            continue
        rows_out = th * Wf
        need = (((th + 2) * Wf + 8) * cin * 2       # bf16 input window
                + 3 * rows_out * cpk * 4            # f32 acc + epilogue temps
                + 2 * rows_out * cpk * 4)           # double-buffered out block
        if need <= budget_bytes:
            best = th
    return best


def _deconv_layer(x, w, cfg):
    """One phase-decomposed ConvTranspose2d + fused post-ops.
    x: (B, H, W, Cinp) NHWC, channels already lane-padded.
    Returns (B, stride*H, stride*W, Coutp)."""
    B, H, W, _ = x.shape
    stride, n_off, n_ph = cfg["stride"], cfg["n_off"], cfg["n_ph"]
    cinp, coutp = cfg["cinp"], cfg["coutp"]
    cpk = n_ph * coutp

    # Fetch width: 1-px halo each side, right-padded with zeros so every row
    # tile is a multiple of 8 flattened rows (dense sublane tiles, aligned DMA).
    Wf = _round_up(W + 2, 8)
    xp = jnp.pad(x, ((0, 0), (1, 1), (1, Wf - W - 1), (0, 0))).astype(jnp.bfloat16)
    plane_rows = (H + 2) * Wf
    xflat = xp.reshape(B * plane_rows, cinp)

    TH = _pick_row_tile(H, Wf, cinp, cpk)
    n_th = H // TH
    rows_out = TH * Wf

    kernel = _make_kernel(TH, Wf, n_off, cpk, plane_rows,
                          cfg["post"], cfg["out_dtype"])
    out = pl.pallas_call(
        kernel,
        out_shape=jax.ShapeDtypeStruct((B * H * Wf, cpk), cfg["out_dtype"]),
        grid=(B, n_th),
        in_specs=[
            pl.BlockSpec(memory_space=pl.ANY),                       # flat plane, HBM
            pl.BlockSpec((n_off * n_off, cinp, cpk), lambda b, t: (0, 0, 0)),
            pl.BlockSpec((1, cpk), lambda b, t: (0, 0)),
            pl.BlockSpec((1, cpk), lambda b, t: (0, 0)),
        ],
        out_specs=pl.BlockSpec((rows_out, cpk),
                               lambda b, t, n_th=n_th: (b * n_th + t, 0)),
        scratch_shapes=[
            pltpu.VMEM(((TH + 2) * Wf + 8, cinp), jnp.bfloat16),     # halo'd rows
            pltpu.SemaphoreType.DMA((1,)),
        ],
        compiler_params=pltpu.CompilerParams(
            dimension_semantics=("parallel", "parallel"),
            vmem_limit_bytes=32 * 1024 * 1024),
    )(xflat, w["w"], w["b"], w["mul"])

    # depth-to-space (and drop the junk fetch-width columns); runs on bf16 and
    # fuses with the next layer's halo pad in XLA.
    y = out.reshape(B, H, Wf, stride, stride, coutp)[:, :, :W]
    y = jnp.transpose(y, (0, 1, 3, 2, 4, 5))
    return y.reshape(B, stride * H, stride * W, coutp)


# ----------------------------------------------------------------------------
# Pallas forward
# ----------------------------------------------------------------------------
def prior_decoder_forward(x_nchw, weights, cfgs, meta):
    """priorDecoder.forward — Pallas path.  x_nchw: (B, N, H, W)."""
    N, M, Np, Mp = meta
    x = jnp.transpose(x_nchw, (0, 2, 3, 1))                      # NCHW -> NHWC
    x = jnp.pad(x, ((0, 0), (0, 0), (0, 0), (0, Np - N)))        # lane-pad channels
    for w, cfg in zip(weights, cfgs):
        x = _deconv_layer(x, w, cfg)
    x = x[..., :M]                                               # drop lane padding
    return jnp.transpose(x, (0, 3, 1, 2))                        # back to NCHW


# ----------------------------------------------------------------------------
# plain-JAX reference (zero-upsample formulation; verification only)
# ----------------------------------------------------------------------------
def _deconv_ref(x, w, b, mul, stride, pad, out_pad, post):
    B, H, W, Cin = x.shape
    KH, KW, _, Cout = w.shape
    Ho = (H - 1) * stride - 2 * pad + KH + out_pad
    Wo = (W - 1) * stride - 2 * pad + KW + out_pad
    if stride > 1:
        up = jnp.zeros((B, H * stride - (stride - 1),
                        W * stride - (stride - 1), Cin), x.dtype)
        up = up.at[:, ::stride, ::stride, :].set(x)
    else:
        up = x
    lo, hi = KH - 1 - pad, KH - 1 - pad + out_pad
    xp = jnp.pad(up, ((0, 0), (lo, hi), (lo, hi), (0, 0)))
    acc = jnp.zeros((B, Ho, Wo, Cout), jnp.float32)
    for kh in range(KH):
        for kw in range(KW):
            acc = acc + jnp.einsum("bhwc,cd->bhwd",
                                   xp[:, kh:kh + Ho, kw:kw + Wo, :], w[kh, kw],
                                   preferred_element_type=jnp.float32)
    return _postops((acc + b) * mul, **post)


def prior_decoder_reference(x_nchw, p):
    posts = _layer_posts(p)
    x = jnp.transpose(x_nchw, (0, 2, 3, 1)).astype(jnp.float32)
    x = _deconv_ref(x, p["w1"], p["b1"], p["mul0"], 2, 2, 1, posts[0])
    x = _deconv_ref(x, p["w2"], p["b2"], p["mul1"], 2, 2, 1, posts[1])
    x = _deconv_ref(x, p["w3"], p["b3"], p["mul2"], 1, 1, 0, posts[2])
    return jnp.transpose(x, (0, 3, 1, 2))


# ----------------------------------------------------------------------------
# deterministic synthetic parameters (ConvTranspose2d weight layout -> HWIO)
# ----------------------------------------------------------------------------
def init_params(key, N, M):
    ks = jax.random.split(key, 9)

    def ints(k, shape, lo, hi):
        return jax.random.randint(k, shape, lo, hi).astype(jnp.float32)

    # nn.ConvTranspose2d weight layout: (Cin, Cout, KH, KW); integer-valued,
    # matching the clamp(-127,127).round() of the checkpoint-based init.
    wt1 = ints(ks[0], (N, N, 5, 5), -2, 3)
    wt2 = ints(ks[1], (N, N, 5, 5), -2, 3)
    wt3 = ints(ks[2], (N, M, 3, 3), -2, 3)

    def to_hwio(wt):  # direct-conv weight == flip(kh,kw) + swap in/out
        return jnp.transpose(jnp.flip(wt, (2, 3)), (2, 3, 0, 1))

    return {
        "w1": to_hwio(wt1), "w2": to_hwio(wt2), "w3": to_hwio(wt3),
        "b1": ints(ks[3], (N,), -8, 9),        # stands for round(bias)
        "b2": ints(ks[4], (N,), -8, 9),        # stands for floor(bias / 2)
        "b3": ints(ks[5], (M,), -8, 9),        # stands for floor(bias / 2)
        "mul0": ints(ks[6], (N,), 1, 5),       # mulspD0  (per out-channel)
        "mul1": ints(ks[7], (N,), 1, 5),       # mulspD1 * 2
        "mul2": ints(ks[8], (M,), 1000, 4001), # mulspD2 * 2
        "clp": (60.0, 48.0),                   # clppD[0], clppD[1]
        "scl": (200000.0, 180000.0),           # sclpD[0], sclpD[1]
    }


if __name__ == "__main__":
    B, N, M, H, W = 2, 32, 48, 4, 4            # small stand-ins for 128/192 channels
    key = jax.random.PRNGKey(0)
    kx, kp = jax.random.split(key)

    params = init_params(kp, N, M)
    weights, cfgs, meta = prepare_params(params)   # one-time, off the hot path

    # integer-valued activations, as in the int8 pipeline
    x = jax.random.randint(kx, (B, N, H, W), 0, 8).astype(jnp.float32)

    fwd = jax.jit(functools.partial(prior_decoder_forward, cfgs=cfgs, meta=meta))
    out = jax.block_until_ready(fwd(x, weights))

    assert out.shape == (B, M, 4 * H, 4 * W), out.shape
    ref = prior_decoder_reference(x, params)
    assert jnp.allclose(out, ref, atol=1e-3), "Pallas result mismatches reference"

    print("KERNEL_OK")
</pallas_src>

<mosaic_0001>
module attributes {stable_mosaic.version = 11 : i64} {
  func.func @kernel(%arg0: i32, %arg1: i32, %arg2: memref<320x128xbf16, #tpu.memory_space<any>>, %arg3: memref<9x128x512xbf16, #tpu.memory_space<vmem>>, %arg4: memref<1x512xf32, #tpu.memory_space<vmem>>, %arg5: memref<1x512xf32, #tpu.memory_space<vmem>>, %arg6: memref<32x512xbf16, #tpu.memory_space<vmem>>, %arg7: memref<72x128xbf16, #tpu.memory_space<vmem>>, %arg8: memref<1x!tpu.dma_semaphore, #tpu.memory_space<semaphore_mem>>) attributes {dimension_semantics = [#tpu.dimension_semantics<parallel>, #tpu.dimension_semantics<parallel>], iteration_bounds = array<i64: 2, 4>, scalar_prefetch = 0 : i64, scratch_operands = 2 : i64, tpu.core_type = #tpu.core_type<tc>, window_params = [{}, {pipeline_mode = #tpu.pipeline_mode<synchronous>, transform_indices = @transform_1, window_bounds = array<i64: 9, 128, 512>}, {pipeline_mode = #tpu.pipeline_mode<synchronous>, transform_indices = @transform_2, window_bounds = array<i64: 1, 512>}, {pipeline_mode = #tpu.pipeline_mode<synchronous>, transform_indices = @transform_3, window_bounds = array<i64: 1, 512>}, {transform_indices = @transform_4, window_bounds = array<i64: 32, 512>}]} {
    %c160_i32 = arith.constant 160 : i32
    %0 = arith.muli %arg0, %c160_i32 : i32
    %c32_i32 = arith.constant 32 : i32
    %1 = arith.muli %arg1, %c32_i32 : i32
    %2 = arith.addi %0, %1 : i32
    %3 = tpu.assume_multiple %2, 8 : i32
    %c0_i32 = arith.constant 0 : i32
    %c0_i32_0 = arith.constant 0 : i32
    %4 = tpu.memref_slice %arg2[%3, %c0_i32_0] : memref<320x128xbf16, #tpu.memory_space<any>> -> memref<64x128xbf16, #tpu.memory_space<any>>
    %c0_i32_1 = arith.constant 0 : i32
    %c0_i32_2 = arith.constant 0 : i32
    %5 = tpu.memref_slice %arg7[%c0_i32_1, %c0_i32_2] : memref<72x128xbf16, #tpu.memory_space<vmem>> -> memref<64x128xbf16, #tpu.memory_space<vmem>>
    %6 = tpu.memref_slice %arg8[%c0_i32] : memref<1x!tpu.dma_semaphore, #tpu.memory_space<semaphore_mem>> -> memref<1x!tpu.dma_semaphore, #tpu.memory_space<semaphore_mem>>
    %7 = tpu.memref_squeeze %6 : memref<1x!tpu.dma_semaphore, #tpu.memory_space<semaphore_mem>> -> memref<!tpu.dma_semaphore, #tpu.memory_space<semaphore_mem>>
    tpu.enqueue_dma source(%4 : memref<64x128xbf16, #tpu.memory_space<any>>) target(%5 : memref<64x128xbf16, #tpu.memory_space<vmem>>) target_semaphore(%7 : memref<!tpu.dma_semaphore, #tpu.memory_space<semaphore_mem>>)
    %c0_i32_3 = arith.constant 0 : i32
    %c0_i32_4 = arith.constant 0 : i32
    %8 = tpu.memref_slice %arg2[%3, %c0_i32_4] : memref<320x128xbf16, #tpu.memory_space<any>> -> memref<64x128xbf16, #tpu.memory_space<any>>
    %c0_i32_5 = arith.constant 0 : i32
    %c0_i32_6 = arith.constant 0 : i32
    %9 = tpu.memref_slice %arg7[%c0_i32_5, %c0_i32_6] : memref<72x128xbf16, #tpu.memory_space<vmem>> -> memref<64x128xbf16, #tpu.memory_space<vmem>>
    %10 = tpu.memref_slice %arg8[%c0_i32_3] : memref<1x!tpu.dma_semaphore, #tpu.memory_space<semaphore_mem>> -> memref<1x!tpu.dma_semaphore, #tpu.memory_space<semaphore_mem>>
    %11 = tpu.memref_squeeze %10 : memref<1x!tpu.dma_semaphore, #tpu.memory_space<semaphore_mem>> -> memref<!tpu.dma_semaphore, #tpu.memory_space<semaphore_mem>>
    tpu.wait_dma2 semaphore(%11 : memref<!tpu.dma_semaphore, #tpu.memory_space<semaphore_mem>>) src(%8 : memref<64x128xbf16, #tpu.memory_space<any>>) dst(%9 : memref<64x128xbf16, #tpu.memory_space<vmem>>)
    %cst = arith.constant 0.000000e+00 : f32
    %12 = vector.broadcast %cst : f32 to vector<32x512xf32>
    %c0 = arith.constant 0 : index
    %c0_7 = arith.constant 0 : index
    %13 = vector.load %arg7[%c0, %c0_7] : memref<72x128xbf16, #tpu.memory_space<vmem>>, vector<32x128xbf16>
    %c0_8 = arith.constant 0 : index
    %c0_9 = arith.constant 0 : index
    %c0_10 = arith.constant 0 : index
    %14 = vector.load %arg3[%c0_8, %c0_9, %c0_10] : memref<9x128x512xbf16, #tpu.memory_space<vmem>>, vector<1x128x512xbf16>
    %15 = vector.shape_cast %14 : vector<1x128x512xbf16> to vector<128x512xbf16>
    %cst_11 = arith.constant dense<0.000000e+00> : vector<32x512xf32>
    %16 = tpu.matmul %13, %15, %cst_11 {dimension_numbers = #tpu.dot_dimension_numbers<[1], [0], [0], [1], [0, 0, 1, 1], [], []>} : vector<32x128xbf16>, vector<128x512xbf16>, vector<32x512xf32> -> vector<32x512xf32>
    %17 = arith.addf %12, %16 : vector<32x512xf32>
    %c1 = arith.constant 1 : index
    %c0_12 = arith.constant 0 : index
    %18 = vector.load %arg7[%c1, %c0_12] : memref<72x128xbf16, #tpu.memory_space<vmem>>, vector<32x128xbf16>
    %c1_13 = arith.constant 1 : index
    %c0_14 = arith.constant 0 : index
    %c0_15 = arith.constant 0 : index
    %19 = vector.load %arg3[%c1_13, %c0_14, %c0_15] : memref<9x128x512xbf16, #tpu.memory_space<vmem>>, vector<1x128x512xbf16>
    %20 = vector.shape_cast %19 : vector<1x128x512xbf16> to vector<128x512xbf16>
    %cst_16 = arith.constant dense<0.000000e+00> : vector<32x512xf32>
    %21 = tpu.matmul %18, %20, %cst_16 {dimension_numbers = #tpu.dot_dimension_numbers<[1], [0], [0], [1], [0, 0, 1, 1], [], []>} : vector<32x128xbf16>, vector<128x512xbf16>, vector<32x512xf32> -> vector<32x512xf32>
    %22 = arith.addf %17, %21 : vector<32x512xf32>
    %c2 = arith.constant 2 : index
    %c0_17 = arith.constant 0 : index
    %23 = vector.load %arg7[%c2, %c0_17] : memref<72x128xbf16, #tpu.memory_space<vmem>>, vector<32x128xbf16>
    %c2_18 = arith.constant 2 : index
    %c0_19 = arith.constant 0 : index
    %c0_20 = arith.constant 0 : index
    %24 = vector.load %arg3[%c2_18, %c0_19, %c0_20] : memref<9x128x512xbf16, #tpu.memory_space<vmem>>, vector<1x128x512xbf16>
    %25 = vector.shape_cast %24 : vector<1x128x512xbf16> to vector<128x512xbf16>
    %cst_21 = arith.constant dense<0.000000e+00> : vector<32x512xf32>
    %26 = tpu.matmul %23, %25, %cst_21 {dimension_numbers = #tpu.dot_dimension_numbers<[1], [0], [0], [1], [0, 0, 1, 1], [], []>} : vector<32x128xbf16>, vector<128x512xbf16>, vector<32x512xf32> -> vector<32x512xf32>
    %27 = arith.addf %22, %26 : vector<32x512xf32>
    %c16 = arith.constant 16 : index
    %c0_22 = arith.constant 0 : index
    %28 = vector.load %arg7[%c16, %c0_22] : memref<72x128xbf16, #tpu.memory_space<vmem>>, vector<32x128xbf16>
    %c3 = arith.constant 3 : index
    %c0_23 = arith.constant 0 : index
    %c0_24 = arith.constant 0 : index
    %29 = vector.load %arg3[%c3, %c0_23, %c0_24] : memref<9x128x512xbf16, #tpu.memory_space<vmem>>, vector<1x128x512xbf16>
    %30 = vector.shape_cast %29 : vector<1x128x512xbf16> to vector<128x512xbf16>
    %cst_25 = arith.constant dense<0.000000e+00> : vector<32x512xf32>
    %31 = tpu.matmul %28, %30, %cst_25 {dimension_numbers = #tpu.dot_dimension_numbers<[1], [0], [0], [1], [0, 0, 1, 1], [], []>} : vector<32x128xbf16>, vector<128x512xbf16>, vector<32x512xf32> -> vector<32x512xf32>
    %32 = arith.addf %27, %31 : vector<32x512xf32>
    %c17 = arith.constant 17 : index
    %c0_26 = arith.constant 0 : index
    %33 = vector.load %arg7[%c17, %c0_26] : memref<72x128xbf16, #tpu.memory_space<vmem>>, vector<32x128xbf16>
    %c4 = arith.constant 4 : index
    %c0_27 = arith.constant 0 : index
    %c0_28 = arith.constant 0 : index
    %34 = vector.load %arg3[%c4, %c0_27, %c0_28] : memref<9x128x512xbf16, #tpu.memory_space<vmem>>, vector<1x128x512xbf16>
    %35 = vector.shape_cast %34 : vector<1x128x512xbf16> to vector<128x512xbf16>
    %cst_29 = arith.constant dense<0.000000e+00> : vector<32x512xf32>
    %36 = tpu.matmul %33, %35, %cst_29 {dimension_numbers = #tpu.dot_dimension_numbers<[1], [0], [0], [1], [0, 0, 1, 1], [], []>} : vector<32x128xbf16>, vector<128x512xbf16>, vector<32x512xf32> -> vector<32x512xf32>
    %37 = arith.addf %32, %36 : vector<32x512xf32>
    %c18 = arith.constant 18 : index
    %c0_30 = arith.constant 0 : index
    %38 = vector.load %arg7[%c18, %c0_30] : memref<72x128xbf16, #tpu.memory_space<vmem>>, vector<32x128xbf16>
    %c5 = arith.constant 5 : index
    %c0_31 = arith.constant 0 : index
    %c0_32 = arith.constant 0 : index
    %39 = vector.load %arg3[%c5, %c0_31, %c0_32] : memref<9x128x512xbf16, #tpu.memory_space<vmem>>, vector<1x128x512xbf16>
    %40 = vector.shape_cast %39 : vector<1x128x512xbf16> to vector<128x512xbf16>
    %cst_33 = arith.constant dense<0.000000e+00> : vector<32x512xf32>
    %41 = tpu.matmul %38, %40, %cst_33 {dimension_numbers = #tpu.dot_dimension_numbers<[1], [0], [0], [1], [0, 0, 1, 1], [], []>} : vector<32x128xbf16>, vector<128x512xbf16>, vector<32x512xf32> -> vector<32x512xf32>
    %42 = arith.addf %37, %41 : vector<32x512xf32>
    %c32 = arith.constant 32 : index
    %c0_34 = arith.constant 0 : index
    %43 = vector.load %arg7[%c32, %c0_34] : memref<72x128xbf16, #tpu.memory_space<vmem>>, vector<32x128xbf16>
    %c6 = arith.constant 6 : index
    %c0_35 = arith.constant 0 : index
    %c0_36 = arith.constant 0 : index
    %44 = vector.load %arg3[%c6, %c0_35, %c0_36] : memref<9x128x512xbf16, #tpu.memory_space<vmem>>, vector<1x128x512xbf16>
    %45 = vector.shape_cast %44 : vector<1x128x512xbf16> to vector<128x512xbf16>
    %cst_37 = arith.constant dense<0.000000e+00> : vector<32x512xf32>
    %46 = tpu.matmul %43, %45, %cst_37 {dimension_numbers = #tpu.dot_dimension_numbers<[1], [0], [0], [1], [0, 0, 1, 1], [], []>} : vector<32x128xbf16>, vector<128x512xbf16>, vector<32x512xf32> -> vector<32x512xf32>
    %47 = arith.addf %42, %46 : vector<32x512xf32>
    %c33 = arith.constant 33 : index
    %c0_38 = arith.constant 0 : index
    %48 = vector.load %arg7[%c33, %c0_38] : memref<72x128xbf16, #tpu.memory_space<vmem>>, vector<32x128xbf16>
    %c7 = arith.constant 7 : index
    %c0_39 = arith.constant 0 : index
    %c0_40 = arith.constant 0 : index
    %49 = vector.load %arg3[%c7, %c0_39, %c0_40] : memref<9x128x512xbf16, #tpu.memory_space<vmem>>, vector<1x128x512xbf16>
    %50 = vector.shape_cast %49 : vector<1x128x512xbf16> to vector<128x512xbf16>
    %cst_41 = arith.constant dense<0.000000e+00> : vector<32x512xf32>
    %51 = tpu.matmul %48, %50, %cst_41 {dimension_numbers = #tpu.dot_dimension_numbers<[1], [0], [0], [1], [0, 0, 1, 1], [], []>} : vector<32x128xbf16>, vector<128x512xbf16>, vector<32x512xf32> -> vector<32x512xf32>
    %52 = arith.addf %47, %51 : vector<32x512xf32>
    %c34 = arith.constant 34 : index
    %c0_42 = arith.constant 0 : index
    %53 = vector.load %arg7[%c34, %c0_42] : memref<72x128xbf16, #tpu.memory_space<vmem>>, vector<32x128xbf16>
    %c8 = arith.constant 8 : index
    %c0_43 = arith.constant 0 : index
    %c0_44 = arith.constant 0 : index
    %54 = vector.load %arg3[%c8, %c0_43, %c0_44] : memref<9x128x512xbf16, #tpu.memory_space<vmem>>, vector<1x128x512xbf16>
    %55 = vector.shape_cast %54 : vector<1x128x512xbf16> to vector<128x512xbf16>
    %cst_45 = arith.constant dense<0.000000e+00> : vector<32x512xf32>
    %56 = tpu.matmul %53, %55, %cst_45 {dimension_numbers = #tpu.dot_dimension_numbers<[1], [0], [0], [1], [0, 0, 1, 1], [], []>} : vector<32x128xbf16>, vector<128x512xbf16>, vector<32x512xf32> -> vector<32x512xf32>
    %57 = arith.addf %52, %56 : vector<32x512xf32>
    %c0_46 = arith.constant 0 : index
    %c0_47 = arith.constant 0 : index
    %58 = vector.load %arg4[%c0_46, %c0_47] : memref<1x512xf32, #tpu.memory_space<vmem>>, vector<1x512xf32>
    %59 = vector.broadcast %58 : vector<1x512xf32> to vector<32x512xf32>
    %60 = arith.addf %57, %59 : vector<32x512xf32>
    %c0_48 = arith.constant 0 : index
    %c0_49 = arith.constant 0 : index
    %61 = vector.load %arg5[%c0_48, %c0_49] : memref<1x512xf32, #tpu.memory_space<vmem>>, vector<1x512xf32>
    %62 = vector.broadcast %61 : vector<1x512xf32> to vector<32x512xf32>
    %63 = arith.mulf %60, %62 : vector<32x512xf32>
    %cst_50 = arith.constant 5.120000e+02 : f32
    %64 = vector.broadcast %cst_50 : f32 to vector<32x512xf32>
    %65 = arith.addf %63, %64 : vector<32x512xf32>
    %cst_51 = arith.constant 9.765625E-4 : f32
    %66 = vector.broadcast %cst_51 : f32 to vector<32x512xf32>
    %67 = arith.mulf %65, %66 : vector<32x512xf32>
    %68 = math.floor %67 : vector<32x512xf32>
    %cst_52 = arith.constant 0.000000e+00 : f32
    %cst_53 = arith.constant 4.800000e+01 : f32
    %69 = vector.broadcast %cst_52 : f32 to vector<32x512xf32>
    %70 = arith.maximumf %69, %68 : vector<32x512xf32>
    %71 = vector.broadcast %cst_53 : f32 to vector<32x512xf32>
    %72 = arith.minimumf %71, %70 : vector<32x512xf32>
    %cst_54 = arith.constant 1.800000e+05 : f32
    %73 = vector.broadcast %cst_54 : f32 to vector<32x512xf32>
    %74 = arith.mulf %72, %73 : vector<32x512xf32>
    %cst_55 = arith.constant 0x49800000 : f32
    %75 = vector.broadcast %cst_55 : f32 to vector<32x512xf32>
    %76 = arith.addf %74, %75 : vector<32x512xf32>
    %cst_56 = arith.constant 4.76837158E-7 : f32
    %77 = vector.broadcast %cst_56 : f32 to vector<32x512xf32>
    %78 = arith.mulf %76, %77 : vector<32x512xf32>
    %79 = math.floor %78 : vector<32x512xf32>
    %cst_57 = arith.constant 5.000000e-01 : f32
    %80 = vector.broadcast %cst_57 : f32 to vector<32x512xf32>
    %81 = arith.mulf %79, %80 : vector<32x512xf32>
    %82 = math.floor %81 : vector<32x512xf32>
    %83 = arith.truncf %82 : vector<32x512xf32> to vector<32x512xbf16>
    %c0_58 = arith.constant 0 : index
    %c0_59 = arith.constant 0 : index
    %84 = vector.load %arg6[%c0_58, %c0_59] : memref<32x512xbf16, #tpu.memory_space<vmem>>, vector<32x512xbf16>
    tpu.vector_store %arg6[%c0_58, %c0_59], %83 {strides = array<i32>} : memref<32x512xbf16, #tpu.memory_space<vmem>>, vector<32x512xbf16>,
    return
  }
  func.func @transform_1(%arg0: i32, %arg1: i32) -> (i32, i32, i32) {
    %c0_i32 = arith.constant 0 : i32
    %c0_i32_0 = arith.constant 0 : i32
    %c0_i32_1 = arith.constant 0 : i32
    %c0_i32_2 = arith.constant 0 : i32
    return %c0_i32, %c0_i32_0, %c0_i32_1 : i32, i32, i32
  }
  func.func @transform_2(%arg0: i32, %arg1: i32) -> (i32, i32) {
    %c0_i32 = arith.constant 0 : i32
    %c0_i32_0 = arith.constant 0 : i32
    %c0_i32_1 = arith.constant 0 : i32
    return %c0_i32, %c0_i32_0 : i32, i32
  }
  func.func @transform_3(%arg0: i32, %arg1: i32) -> (i32, i32) {
    %c0_i32 = arith.constant 0 : i32
    %c0_i32_0 = arith.constant 0 : i32
    %c0_i32_1 = arith.constant 0 : i32
    return %c0_i32, %c0_i32_0 : i32, i32
  }
  func.func @transform_4(%arg0: i32, %arg1: i32) -> (i32, i32) {
    %c4_i32 = arith.constant 4 : i32
    %0 = arith.muli %arg0, %c4_i32 : i32
    %1 = arith.addi %0, %arg1 : i32
    %c0_i32 = arith.constant 0 : i32
    %c0_i32_0 = arith.constant 0 : i32
    return %1, %c0_i32 : i32, i32
  }
}

module attributes {stable_mosaic.version = 11 : i64} {
  func.func @kernel(%arg0: i32, %arg1: i32, %arg2: memref<96x128xbf16, #tpu.memory_space<any>>, %arg3: memref<9x128x512xbf16, #tpu.memory_space<vmem>>, %arg4: memref<1x512xf32, #tpu.memory_space<vmem>>, %arg5: memref<1x512xf32, #tpu.memory_space<vmem>>, %arg6: memref<8x512xbf16, #tpu.memory_space<vmem>>, %arg7: memref<32x128xbf16, #tpu.memory_space<vmem>>, %arg8: memref<1x!tpu.dma_semaphore, #tpu.memory_space<semaphore_mem>>) attributes {dimension_semantics = [#tpu.dimension_semantics<parallel>, #tpu.dimension_semantics<parallel>], iteration_bounds = array<i64: 2, 4>, scalar_prefetch = 0 : i64, scratch_operands = 2 : i64, tpu.core_type = #tpu.core_type<tc>, window_params = [{}, {pipeline_mode = #tpu.pipeline_mode<synchronous>, transform_indices = @transform_1, window_bounds = array<i64: 9, 128, 512>}, {pipeline_mode = #tpu.pipeline_mode<synchronous>, transform_indices = @transform_2, window_bounds = array<i64: 1, 512>}, {pipeline_mode = #tpu.pipeline_mode<synchronous>, transform_indices = @transform_3, window_bounds = array<i64: 1, 512>}, {transform_indices = @transform_4, window_bounds = array<i64: 8, 512>}]} {
    %c48_i32 = arith.constant 48 : i32
    %0 = arith.muli %arg0, %c48_i32 : i32
    %c8_i32 = arith.constant 8 : i32
    %1 = arith.muli %arg1, %c8_i32 : i32
    %2 = arith.addi %0, %1 : i32
    %3 = tpu.assume_multiple %2, 8 : i32
    %c0_i32 = arith.constant 0 : i32
    %c0_i32_0 = arith.constant 0 : i32
    %4 = tpu.memref_slice %arg2[%3, %c0_i32_0] : memref<96x128xbf16, #tpu.memory_space<any>> -> memref<24x128xbf16, #tpu.memory_space<any>>
    %c0_i32_1 = arith.constant 0 : i32
    %c0_i32_2 = arith.constant 0 : i32
    %5 = tpu.memref_slice %arg7[%c0_i32_1, %c0_i32_2] : memref<32x128xbf16, #tpu.memory_space<vmem>> -> memref<24x128xbf16, #tpu.memory_space<vmem>>
    %6 = tpu.memref_slice %arg8[%c0_i32] : memref<1x!tpu.dma_semaphore, #tpu.memory_space<semaphore_mem>> -> memref<1x!tpu.dma_semaphore, #tpu.memory_space<semaphore_mem>>
    %7 = tpu.memref_squeeze %6 : memref<1x!tpu.dma_semaphore, #tpu.memory_space<semaphore_mem>> -> memref<!tpu.dma_semaphore, #tpu.memory_space<semaphore_mem>>
    tpu.enqueue_dma source(%4 : memref<24x128xbf16, #tpu.memory_space<any>>) target(%5 : memref<24x128xbf16, #tpu.memory_space<vmem>>) target_semaphore(%7 : memref<!tpu.dma_semaphore, #tpu.memory_space<semaphore_mem>>)
    %c0_i32_3 = arith.constant 0 : i32
    %c0_i32_4 = arith.constant 0 : i32
    %8 = tpu.memref_slice %arg2[%3, %c0_i32_4] : memref<96x128xbf16, #tpu.memory_space<any>> -> memref<24x128xbf16, #tpu.memory_space<any>>
    %c0_i32_5 = arith.constant 0 : i32
    %c0_i32_6 = arith.constant 0 : i32
    %9 = tpu.memref_slice %arg7[%c0_i32_5, %c0_i32_6] : memref<32x128xbf16, #tpu.memory_space<vmem>> -> memref<24x128xbf16, #tpu.memory_space<vmem>>
    %10 = tpu.memref_slice %arg8[%c0_i32_3] : memref<1x!tpu.dma_semaphore, #tpu.memory_space<semaphore_mem>> -> memref<1x!tpu.dma_semaphore, #tpu.memory_space<semaphore_mem>>
    %11 = tpu.memref_squeeze %10 : memref<1x!tpu.dma_semaphore, #tpu.memory_space<semaphore_mem>> -> memref<!tpu.dma_semaphore, #tpu.memory_space<semaphore_mem>>
    tpu.wait_dma2 semaphore(%11 : memref<!tpu.dma_semaphore, #tpu.memory_space<semaphore_mem>>) src(%8 : memref<24x128xbf16, #tpu.memory_space<any>>) dst(%9 : memref<24x128xbf16, #tpu.memory_space<vmem>>)
    %cst = arith.constant 0.000000e+00 : f32
    %12 = vector.broadcast %cst : f32 to vector<8x512xf32>
    %c0 = arith.constant 0 : index
    %c0_7 = arith.constant 0 : index
    %13 = vector.load %arg7[%c0, %c0_7] : memref<32x128xbf16, #tpu.memory_space<vmem>>, vector<8x128xbf16>
    %c0_8 = arith.constant 0 : index
    %c0_9 = arith.constant 0 : index
    %c0_10 = arith.constant 0 : index
    %14 = vector.load %arg3[%c0_8, %c0_9, %c0_10] : memref<9x128x512xbf16, #tpu.memory_space<vmem>>, vector<1x128x512xbf16>
    %15 = vector.shape_cast %14 : vector<1x128x512xbf16> to vector<128x512xbf16>
    %cst_11 = arith.constant dense<0.000000e+00> : vector<8x512xf32>
    %16 = tpu.matmul %13, %15, %cst_11 {dimension_numbers = #tpu.dot_dimension_numbers<[1], [0], [0], [1], [0, 0, 1, 1], [], []>} : vector<8x128xbf16>, vector<128x512xbf16>, vector<8x512xf32> -> vector<8x512xf32>
    %17 = arith.addf %12, %16 : vector<8x512xf32>
    %c1 = arith.constant 1 : index
    %c0_12 = arith.constant 0 : index
    %18 = vector.load %arg7[%c1, %c0_12] : memref<32x128xbf16, #tpu.memory_space<vmem>>, vector<8x128xbf16>
    %c1_13 = arith.constant 1 : index
    %c0_14 = arith.constant 0 : index
    %c0_15 = arith.constant 0 : index
    %19 = vector.load %arg3[%c1_13, %c0_14, %c0_15] : memref<9x128x512xbf16, #tpu.memory_space<vmem>>, vector<1x128x512xbf16>
    %20 = vector.shape_cast %19 : vector<1x128x512xbf16> to vector<128x512xbf16>
    %cst_16 = arith.constant dense<0.000000e+00> : vector<8x512xf32>
    %21 = tpu.matmul %18, %20, %cst_16 {dimension_numbers = #tpu.dot_dimension_numbers<[1], [0], [0], [1], [0, 0, 1, 1], [], []>} : vector<8x128xbf16>, vector<128x512xbf16>, vector<8x512xf32> -> vector<8x512xf32>
    %22 = arith.addf %17, %21 : vector<8x512xf32>
    %c2 = arith.constant 2 : index
    %c0_17 = arith.constant 0 : index
    %23 = vector.load %arg7[%c2, %c0_17] : memref<32x128xbf16, #tpu.memory_space<vmem>>, vector<8x128xbf16>
    %c2_18 = arith.constant 2 : index
    %c0_19 = arith.constant 0 : index
    %c0_20 = arith.constant 0 : index
    %24 = vector.load %arg3[%c2_18, %c0_19, %c0_20] : memref<9x128x512xbf16, #tpu.memory_space<vmem>>, vector<1x128x512xbf16>
    %25 = vector.shape_cast %24 : vector<1x128x512xbf16> to vector<128x512xbf16>
    %cst_21 = arith.constant dense<0.000000e+00> : vector<8x512xf32>
    %26 = tpu.matmul %23, %25, %cst_21 {dimension_numbers = #tpu.dot_dimension_numbers<[1], [0], [0], [1], [0, 0, 1, 1], [], []>} : vector<8x128xbf16>, vector<128x512xbf16>, vector<8x512xf32> -> vector<8x512xf32>
    %27 = arith.addf %22, %26 : vector<8x512xf32>
    %c8 = arith.constant 8 : index
    %c0_22 = arith.constant 0 : index
    %28 = vector.load %arg7[%c8, %c0_22] : memref<32x128xbf16, #tpu.memory_space<vmem>>, vector<8x128xbf16>
    %c3 = arith.constant 3 : index
    %c0_23 = arith.constant 0 : index
    %c0_24 = arith.constant 0 : index
    %29 = vector.load %arg3[%c3, %c0_23, %c0_24] : memref<9x128x512xbf16, #tpu.memory_space<vmem>>, vector<1x128x512xbf16>
    %30 = vector.shape_cast %29 : vector<1x128x512xbf16> to vector<128x512xbf16>
    %cst_25 = arith.constant dense<0.000000e+00> : vector<8x512xf32>
    %31 = tpu.matmul %28, %30, %cst_25 {dimension_numbers = #tpu.dot_dimension_numbers<[1], [0], [0], [1], [0, 0, 1, 1], [], []>} : vector<8x128xbf16>, vector<128x512xbf16>, vector<8x512xf32> -> vector<8x512xf32>
    %32 = arith.addf %27, %31 : vector<8x512xf32>
    %c9 = arith.constant 9 : index
    %c0_26 = arith.constant 0 : index
    %33 = vector.load %arg7[%c9, %c0_26] : memref<32x128xbf16, #tpu.memory_space<vmem>>, vector<8x128xbf16>
    %c4 = arith.constant 4 : index
    %c0_27 = arith.constant 0 : index
    %c0_28 = arith.constant 0 : index
    %34 = vector.load %arg3[%c4, %c0_27, %c0_28] : memref<9x128x512xbf16, #tpu.memory_space<vmem>>, vector<1x128x512xbf16>
    %35 = vector.shape_cast %34 : vector<1x128x512xbf16> to vector<128x512xbf16>
    %cst_29 = arith.constant dense<0.000000e+00> : vector<8x512xf32>
    %36 = tpu.matmul %33, %35, %cst_29 {dimension_numbers = #tpu.dot_dimension_numbers<[1], [0], [0], [1], [0, 0, 1, 1], [], []>} : vector<8x128xbf16>, vector<128x512xbf16>, vector<8x512xf32> -> vector<8x512xf32>
    %37 = arith.addf %32, %36 : vector<8x512xf32>
    %c10 = arith.constant 10 : index
    %c0_30 = arith.constant 0 : index
    %38 = vector.load %arg7[%c10, %c0_30] : memref<32x128xbf16, #tpu.memory_space<vmem>>, vector<8x128xbf16>
    %c5 = arith.constant 5 : index
    %c0_31 = arith.constant 0 : index
    %c0_32 = arith.constant 0 : index
    %39 = vector.load %arg3[%c5, %c0_31, %c0_32] : memref<9x128x512xbf16, #tpu.memory_space<vmem>>, vector<1x128x512xbf16>
    %40 = vector.shape_cast %39 : vector<1x128x512xbf16> to vector<128x512xbf16>
    %cst_33 = arith.constant dense<0.000000e+00> : vector<8x512xf32>
    %41 = tpu.matmul %38, %40, %cst_33 {dimension_numbers = #tpu.dot_dimension_numbers<[1], [0], [0], [1], [0, 0, 1, 1], [], []>} : vector<8x128xbf16>, vector<128x512xbf16>, vector<8x512xf32> -> vector<8x512xf32>
    %42 = arith.addf %37, %41 : vector<8x512xf32>
    %c16 = arith.constant 16 : index
    %c0_34 = arith.constant 0 : index
    %43 = vector.load %arg7[%c16, %c0_34] : memref<32x128xbf16, #tpu.memory_space<vmem>>, vector<8x128xbf16>
    %c6 = arith.constant 6 : index
    %c0_35 = arith.constant 0 : index
    %c0_36 = arith.constant 0 : index
    %44 = vector.load %arg3[%c6, %c0_35, %c0_36] : memref<9x128x512xbf16, #tpu.memory_space<vmem>>, vector<1x128x512xbf16>
    %45 = vector.shape_cast %44 : vector<1x128x512xbf16> to vector<128x512xbf16>
    %cst_37 = arith.constant dense<0.000000e+00> : vector<8x512xf32>
    %46 = tpu.matmul %43, %45, %cst_37 {dimension_numbers = #tpu.dot_dimension_numbers<[1], [0], [0], [1], [0, 0, 1, 1], [], []>} : vector<8x128xbf16>, vector<128x512xbf16>, vector<8x512xf32> -> vector<8x512xf32>
    %47 = arith.addf %42, %46 : vector<8x512xf32>
    %c17 = arith.constant 17 : index
    %c0_38 = arith.constant 0 : index
    %48 = vector.load %arg7[%c17, %c0_38] : memref<32x128xbf16, #tpu.memory_space<vmem>>, vector<8x128xbf16>
    %c7 = arith.constant 7 : index
    %c0_39 = arith.constant 0 : index
    %c0_40 = arith.constant 0 : index
    %49 = vector.load %arg3[%c7, %c0_39, %c0_40] : memref<9x128x512xbf16, #tpu.memory_space<vmem>>, vector<1x128x512xbf16>
    %50 = vector.shape_cast %49 : vector<1x128x512xbf16> to vector<128x512xbf16>
    %cst_41 = arith.constant dense<0.000000e+00> : vector<8x512xf32>
    %51 = tpu.matmul %48, %50, %cst_41 {dimension_numbers = #tpu.dot_dimension_numbers<[1], [0], [0], [1], [0, 0, 1, 1], [], []>} : vector<8x128xbf16>, vector<128x512xbf16>, vector<8x512xf32> -> vector<8x512xf32>
    %52 = arith.addf %47, %51 : vector<8x512xf32>
    %c18 = arith.constant 18 : index
    %c0_42 = arith.constant 0 : index
    %53 = vector.load %arg7[%c18, %c0_42] : memref<32x128xbf16, #tpu.memory_space<vmem>>, vector<8x128xbf16>
    %c8_43 = arith.constant 8 : index
    %c0_44 = arith.constant 0 : index
    %c0_45 = arith.constant 0 : index
    %54 = vector.load %arg3[%c8_43, %c0_44, %c0_45] : memref<9x128x512xbf16, #tpu.memory_space<vmem>>, vector<1x128x512xbf16>
    %55 = vector.shape_cast %54 : vector<1x128x512xbf16> to vector<128x512xbf16>
    %cst_46 = arith.constant dense<0.000000e+00> : vector<8x512xf32>
    %56 = tpu.matmul %53, %55, %cst_46 {dimension_numbers = #tpu.dot_dimension_numbers<[1], [0], [0], [1], [0, 0, 1, 1], [], []>} : vector<8x128xbf16>, vector<128x512xbf16>, vector<8x512xf32> -> vector<8x512xf32>
    %57 = arith.addf %52, %56 : vector<8x512xf32>
    %c0_47 = arith.constant 0 : index
    %c0_48 = arith.constant 0 : index
    %58 = vector.load %arg4[%c0_47, %c0_48] : memref<1x512xf32, #tpu.memory_space<vmem>>, vector<1x512xf32>
    %59 = vector.broadcast %58 : vector<1x512xf32> to vector<8x512xf32>
    %60 = arith.addf %57, %59 : vector<8x512xf32>
    %c0_49 = arith.constant 0 : index
    %c0_50 = arith.constant 0 : index
    %61 = vector.load %arg5[%c0_49, %c0_50] : memref<1x512xf32, #tpu.memory_space<vmem>>, vector<1x512xf32>
    %62 = vector.broadcast %61 : vector<1x512xf32> to vector<8x512xf32>
    %63 = arith.mulf %60, %62 : vector<8x512xf32>
    %cst_51 = arith.constant 2.560000e+02 : f32
    %64 = vector.broadcast %cst_51 : f32 to vector<8x512xf32>
    %65 = arith.addf %63, %64 : vector<8x512xf32>
    %cst_52 = arith.constant 0.001953125 : f32
    %66 = vector.broadcast %cst_52 : f32 to vector<8x512xf32>
    %67 = arith.mulf %65, %66 : vector<8x512xf32>
    %68 = math.floor %67 : vector<8x512xf32>
    %cst_53 = arith.constant 0.000000e+00 : f32
    %cst_54 = arith.constant 6.000000e+01 : f32
    %69 = vector.broadcast %cst_53 : f32 to vector<8x512xf32>
    %70 = arith.maximumf %69, %68 : vector<8x512xf32>
    %71 = vector.broadcast %cst_54 : f32 to vector<8x512xf32>
    %72 = arith.minimumf %71, %70 : vector<8x512xf32>
    %cst_55 = arith.constant 2.000000e+05 : f32
    %73 = vector.broadcast %cst_55 : f32 to vector<8x512xf32>
    %74 = arith.mulf %72, %73 : vector<8x512xf32>
    %cst_56 = arith.constant 0x49800000 : f32
    %75 = vector.broadcast %cst_56 : f32 to vector<8x512xf32>
    %76 = arith.addf %74, %75 : vector<8x512xf32>
    %cst_57 = arith.constant 4.76837158E-7 : f32
    %77 = vector.broadcast %cst_57 : f32 to vector<8x512xf32>
    %78 = arith.mulf %76, %77 : vector<8x512xf32>
    %79 = math.floor %78 : vector<8x512xf32>
    %cst_58 = arith.constant 5.000000e-01 : f32
    %80 = vector.broadcast %cst_58 : f32 to vector<8x512xf32>
    %81 = arith.mulf %79, %80 : vector<8x512xf32>
    %82 = math.floor %81 : vector<8x512xf32>
    %83 = arith.truncf %82 : vector<8x512xf32> to vector<8x512xbf16>
    %c0_59 = arith.constant 0 : index
    %c0_60 = arith.constant 0 : index
    %84 = vector.load %arg6[%c0_59, %c0_60] : memref<8x512xbf16, #tpu.memory_space<vmem>>, vector<8x512xbf16>
    tpu.vector_store %arg6[%c0_59, %c0_60], %83 {strides = array<i32>} : memref<8x512xbf16, #tpu.memory_space<vmem>>, vector<8x512xbf16>,
    return
  }
  func.func @transform_1(%arg0: i32, %arg1: i32) -> (i32, i32, i32) {
    %c0_i32 = arith.constant 0 : i32
    %c0_i32_0 = arith.constant 0 : i32
    %c0_i32_1 = arith.constant 0 : i32
    %c0_i32_2 = arith.constant 0 : i32
    return %c0_i32, %c0_i32_0, %c0_i32_1 : i32, i32, i32
  }
  func.func @transform_2(%arg0: i32, %arg1: i32) -> (i32, i32) {
    %c0_i32 = arith.constant 0 : i32
    %c0_i32_0 = arith.constant 0 : i32
    %c0_i32_1 = arith.constant 0 : i32
    return %c0_i32, %c0_i32_0 : i32, i32
  }
  func.func @transform_3(%arg0: i32, %arg1: i32) -> (i32, i32) {
    %c0_i32 = arith.constant 0 : i32
    %c0_i32_0 = arith.constant 0 : i32
    %c0_i32_1 = arith.constant 0 : i32
    return %c0_i32, %c0_i32_0 : i32, i32
  }
  func.func @transform_4(%arg0: i32, %arg1: i32) -> (i32, i32) {
    %c4_i32 = arith.constant 4 : i32
    %0 = arith.muli %arg0, %c4_i32 : i32
    %1 = arith.addi %0, %arg1 : i32
    %c0_i32 = arith.constant 0 : i32
    %c0_i32_0 = arith.constant 0 : i32
    return %1, %c0_i32 : i32, i32
  }
}

module attributes {stable_mosaic.version = 11 : i64} {
  func.func @kernel(%arg0: i32, %arg1: i32, %arg2: memref<864x128xbf16, #tpu.memory_space<any>>, %arg3: memref<9x128x128xbf16, #tpu.memory_space<vmem>>, %arg4: memref<1x128xf32, #tpu.memory_space<vmem>>, %arg5: memref<1x128xf32, #tpu.memory_space<vmem>>, %arg6: memref<96x128xf32, #tpu.memory_space<vmem>>, %arg7: memref<152x128xbf16, #tpu.memory_space<vmem>>, %arg8: memref<1x!tpu.dma_semaphore, #tpu.memory_space<semaphore_mem>>) attributes {dimension_semantics = [#tpu.dimension_semantics<parallel>, #tpu.dimension_semantics<parallel>], iteration_bounds = array<i64: 2, 4>, scalar_prefetch = 0 : i64, scratch_operands = 2 : i64, tpu.core_type = #tpu.core_type<tc>, window_params = [{}, {pipeline_mode = #tpu.pipeline_mode<synchronous>, transform_indices = @transform_1, window_bounds = array<i64: 9, 128, 128>}, {pipeline_mode = #tpu.pipeline_mode<synchronous>, transform_indices = @transform_2, window_bounds = array<i64: 1, 128>}, {pipeline_mode = #tpu.pipeline_mode<synchronous>, transform_indices = @transform_3, window_bounds = array<i64: 1, 128>}, {transform_indices = @transform_4, window_bounds = array<i64: 96, 128>}]} {
    %c432_i32 = arith.constant 432 : i32
    %0 = arith.muli %arg0, %c432_i32 : i32
    %c96_i32 = arith.constant 96 : i32
    %1 = arith.muli %arg1, %c96_i32 : i32
    %2 = arith.addi %0, %1 : i32
    %3 = tpu.assume_multiple %2, 8 : i32
    %c0_i32 = arith.constant 0 : i32
    %c0_i32_0 = arith.constant 0 : i32
    %4 = tpu.memref_slice %arg2[%3, %c0_i32_0] : memref<864x128xbf16, #tpu.memory_space<any>> -> memref<144x128xbf16, #tpu.memory_space<any>>
    %c0_i32_1 = arith.constant 0 : i32
    %c0_i32_2 = arith.constant 0 : i32
    %5 = tpu.memref_slice %arg7[%c0_i32_1, %c0_i32_2] : memref<152x128xbf16, #tpu.memory_space<vmem>> -> memref<144x128xbf16, #tpu.memory_space<vmem>>
    %6 = tpu.memref_slice %arg8[%c0_i32] : memref<1x!tpu.dma_semaphore, #tpu.memory_space<semaphore_mem>> -> memref<1x!tpu.dma_semaphore, #tpu.memory_space<semaphore_mem>>
    %7 = tpu.memref_squeeze %6 : memref<1x!tpu.dma_semaphore, #tpu.memory_space<semaphore_mem>> -> memref<!tpu.dma_semaphore, #tpu.memory_space<semaphore_mem>>
    tpu.enqueue_dma source(%4 : memref<144x128xbf16, #tpu.memory_space<any>>) target(%5 : memref<144x128xbf16, #tpu.memory_space<vmem>>) target_semaphore(%7 : memref<!tpu.dma_semaphore, #tpu.memory_space<semaphore_mem>>)
    %c0_i32_3 = arith.constant 0 : i32
    %c0_i32_4 = arith.constant 0 : i32
    %8 = tpu.memref_slice %arg2[%3, %c0_i32_4] : memref<864x128xbf16, #tpu.memory_space<any>> -> memref<144x128xbf16, #tpu.memory_space<any>>
    %c0_i32_5 = arith.constant 0 : i32
    %c0_i32_6 = arith.constant 0 : i32
    %9 = tpu.memref_slice %arg7[%c0_i32_5, %c0_i32_6] : memref<152x128xbf16, #tpu.memory_space<vmem>> -> memref<144x128xbf16, #tpu.memory_space<vmem>>
    %10 = tpu.memref_slice %arg8[%c0_i32_3] : memref<1x!tpu.dma_semaphore, #tpu.memory_space<semaphore_mem>> -> memref<1x!tpu.dma_semaphore, #tpu.memory_space<semaphore_mem>>
    %11 = tpu.memref_squeeze %10 : memref<1x!tpu.dma_semaphore, #tpu.memory_space<semaphore_mem>> -> memref<!tpu.dma_semaphore, #tpu.memory_space<semaphore_mem>>
    tpu.wait_dma2 semaphore(%11 : memref<!tpu.dma_semaphore, #tpu.memory_space<semaphore_mem>>) src(%8 : memref<144x128xbf16, #tpu.memory_space<any>>) dst(%9 : memref<144x128xbf16, #tpu.memory_space<vmem>>)
    %cst = arith.constant 0.000000e+00 : f32
    %12 = vector.broadcast %cst : f32 to vector<96x128xf32>
    %c0 = arith.constant 0 : index
    %c0_7 = arith.constant 0 : index
    %13 = vector.load %arg7[%c0, %c0_7] : memref<152x128xbf16, #tpu.memory_space<vmem>>, vector<96x128xbf16>
    %c0_8 = arith.constant 0 : index
    %c0_9 = arith.constant 0 : index
    %c0_10 = arith.constant 0 : index
    %14 = vector.load %arg3[%c0_8, %c0_9, %c0_10] : memref<9x128x128xbf16, #tpu.memory_space<vmem>>, vector<1x128x128xbf16>
    %15 = vector.shape_cast %14 : vector<1x128x128xbf16> to vector<128x128xbf16>
    %cst_11 = arith.constant dense<0.000000e+00> : vector<96x128xf32>
    %16 = tpu.matmul %13, %15, %cst_11 {dimension_numbers = #tpu.dot_dimension_numbers<[1], [0], [0], [1], [0, 0, 1, 1], [], []>} : vector<96x128xbf16>, vector<128x128xbf16>, vector<96x128xf32> -> vector<96x128xf32>
    %17 = arith.addf %12, %16 : vector<96x128xf32>
    %c1 = arith.constant 1 : index
    %c0_12 = arith.constant 0 : index
    %18 = vector.load %arg7[%c1, %c0_12] : memref<152x128xbf16, #tpu.memory_space<vmem>>, vector<96x128xbf16>
    %c1_13 = arith.constant 1 : index
    %c0_14 = arith.constant 0 : index
    %c0_15 = arith.constant 0 : index
    %19 = vector.load %arg3[%c1_13, %c0_14, %c0_15] : memref<9x128x128xbf16, #tpu.memory_space<vmem>>, vector<1x128x128xbf16>
    %20 = vector.shape_cast %19 : vector<1x128x128xbf16> to vector<128x128xbf16>
    %cst_16 = arith.constant dense<0.000000e+00> : vector<96x128xf32>
    %21 = tpu.matmul %18, %20, %cst_16 {dimension_numbers = #tpu.dot_dimension_numbers<[1], [0], [0], [1], [0, 0, 1, 1], [], []>} : vector<96x128xbf16>, vector<128x128xbf16>, vector<96x128xf32> -> vector<96x128xf32>
    %22 = arith.addf %17, %21 : vector<96x128xf32>
    %c2 = arith.constant 2 : index
    %c0_17 = arith.constant 0 : index
    %23 = vector.load %arg7[%c2, %c0_17] : memref<152x128xbf16, #tpu.memory_space<vmem>>, vector<96x128xbf16>
    %c2_18 = arith.constant 2 : index
    %c0_19 = arith.constant 0 : index
    %c0_20 = arith.constant 0 : index
    %24 = vector.load %arg3[%c2_18, %c0_19, %c0_20] : memref<9x128x128xbf16, #tpu.memory_space<vmem>>, vector<1x128x128xbf16>
    %25 = vector.shape_cast %24 : vector<1x128x128xbf16> to vector<128x128xbf16>
    %cst_21 = arith.constant dense<0.000000e+00> : vector<96x128xf32>
    %26 = tpu.matmul %23, %25, %cst_21 {dimension_numbers = #tpu.dot_dimension_numbers<[1], [0], [0], [1], [0, 0, 1, 1], [], []>} : vector<96x128xbf16>, vector<128x128xbf16>, vector<96x128xf32> -> vector<96x128xf32>
    %27 = arith.addf %22, %26 : vector<96x128xf32>
    %c24 = arith.constant 24 : index
    %c0_22 = arith.constant 0 : index
    %28 = vector.load %arg7[%c24, %c0_22] : memref<152x128xbf16, #tpu.memory_space<vmem>>, vector<96x128xbf16>
    %c3 = arith.constant 3 : index
    %c0_23 = arith.constant 0 : index
    %c0_24 = arith.constant 0 : index
    %29 = vector.load %arg3[%c3, %c0_23, %c0_24] : memref<9x128x128xbf16, #tpu.memory_space<vmem>>, vector<1x128x128xbf16>
    %30 = vector.shape_cast %29 : vector<1x128x128xbf16> to vector<128x128xbf16>
    %cst_25 = arith.constant dense<0.000000e+00> : vector<96x128xf32>
    %31 = tpu.matmul %28, %30, %cst_25 {dimension_numbers = #tpu.dot_dimension_numbers<[1], [0], [0], [1], [0, 0, 1, 1], [], []>} : vector<96x128xbf16>, vector<128x128xbf16>, vector<96x128xf32> -> vector<96x128xf32>
    %32 = arith.addf %27, %31 : vector<96x128xf32>
    %c25 = arith.constant 25 : index
    %c0_26 = arith.constant 0 : index
    %33 = vector.load %arg7[%c25, %c0_26] : memref<152x128xbf16, #tpu.memory_space<vmem>>, vector<96x128xbf16>
    %c4 = arith.constant 4 : index
    %c0_27 = arith.constant 0 : index
    %c0_28 = arith.constant 0 : index
    %34 = vector.load %arg3[%c4, %c0_27, %c0_28] : memref<9x128x128xbf16, #tpu.memory_space<vmem>>, vector<1x128x128xbf16>
    %35 = vector.shape_cast %34 : vector<1x128x128xbf16> to vector<128x128xbf16>
    %cst_29 = arith.constant dense<0.000000e+00> : vector<96x128xf32>
    %36 = tpu.matmul %33, %35, %cst_29 {dimension_numbers = #tpu.dot_dimension_numbers<[1], [0], [0], [1], [0, 0, 1, 1], [], []>} : vector<96x128xbf16>, vector<128x128xbf16>, vector<96x128xf32> -> vector<96x128xf32>
    %37 = arith.addf %32, %36 : vector<96x128xf32>
    %c26 = arith.constant 26 : index
    %c0_30 = arith.constant 0 : index
    %38 = vector.load %arg7[%c26, %c0_30] : memref<152x128xbf16, #tpu.memory_space<vmem>>, vector<96x128xbf16>
    %c5 = arith.constant 5 : index
    %c0_31 = arith.constant 0 : index
    %c0_32 = arith.constant 0 : index
    %39 = vector.load %arg3[%c5, %c0_31, %c0_32] : memref<9x128x128xbf16, #tpu.memory_space<vmem>>, vector<1x128x128xbf16>
    %40 = vector.shape_cast %39 : vector<1x128x128xbf16> to vector<128x128xbf16>
    %cst_33 = arith.constant dense<0.000000e+00> : vector<96x128xf32>
    %41 = tpu.matmul %38, %40, %cst_33 {dimension_numbers = #tpu.dot_dimension_numbers<[1], [0], [0], [1], [0, 0, 1, 1], [], []>} : vector<96x128xbf16>, vector<128x128xbf16>, vector<96x128xf32> -> vector<96x128xf32>
    %42 = arith.addf %37, %41 : vector<96x128xf32>
    %c48 = arith.constant 48 : index
    %c0_34 = arith.constant 0 : index
    %43 = vector.load %arg7[%c48, %c0_34] : memref<152x128xbf16, #tpu.memory_space<vmem>>, vector<96x128xbf16>
    %c6 = arith.constant 6 : index
    %c0_35 = arith.constant 0 : index
    %c0_36 = arith.constant 0 : index
    %44 = vector.load %arg3[%c6, %c0_35, %c0_36] : memref<9x128x128xbf16, #tpu.memory_space<vmem>>, vector<1x128x128xbf16>
    %45 = vector.shape_cast %44 : vector<1x128x128xbf16> to vector<128x128xbf16>
    %cst_37 = arith.constant dense<0.000000e+00> : vector<96x128xf32>
    %46 = tpu.matmul %43, %45, %cst_37 {dimension_numbers = #tpu.dot_dimension_numbers<[1], [0], [0], [1], [0, 0, 1, 1], [], []>} : vector<96x128xbf16>, vector<128x128xbf16>, vector<96x128xf32> -> vector<96x128xf32>
    %47 = arith.addf %42, %46 : vector<96x128xf32>
    %c49 = arith.constant 49 : index
    %c0_38 = arith.constant 0 : index
    %48 = vector.load %arg7[%c49, %c0_38] : memref<152x128xbf16, #tpu.memory_space<vmem>>, vector<96x128xbf16>
    %c7 = arith.constant 7 : index
    %c0_39 = arith.constant 0 : index
    %c0_40 = arith.constant 0 : index
    %49 = vector.load %arg3[%c7, %c0_39, %c0_40] : memref<9x128x128xbf16, #tpu.memory_space<vmem>>, vector<1x128x128xbf16>
    %50 = vector.shape_cast %49 : vector<1x128x128xbf16> to vector<128x128xbf16>
    %cst_41 = arith.constant dense<0.000000e+00> : vector<96x128xf32>
    %51 = tpu.matmul %48, %50, %cst_41 {dimension_numbers = #tpu.dot_dimension_numbers<[1], [0], [0], [1], [0, 0, 1, 1], [], []>} : vector<96x128xbf16>, vector<128x128xbf16>, vector<96x128xf32> -> vector<96x128xf32>
    %52 = arith.addf %47, %51 : vector<96x128xf32>
    %c50 = arith.constant 50 : index
    %c0_42 = arith.constant 0 : index
    %53 = vector.load %arg7[%c50, %c0_42] : memref<152x128xbf16, #tpu.memory_space<vmem>>, vector<96x128xbf16>
    %c8 = arith.constant 8 : index
    %c0_43 = arith.constant 0 : index
    %c0_44 = arith.constant 0 : index
    %54 = vector.load %arg3[%c8, %c0_43, %c0_44] : memref<9x128x128xbf16, #tpu.memory_space<vmem>>, vector<1x128x128xbf16>
    %55 = vector.shape_cast %54 : vector<1x128x128xbf16> to vector<128x128xbf16>
    %cst_45 = arith.constant dense<0.000000e+00> : vector<96x128xf32>
    %56 = tpu.matmul %53, %55, %cst_45 {dimension_numbers = #tpu.dot_dimension_numbers<[1], [0], [0], [1], [0, 0, 1, 1], [], []>} : vector<96x128xbf16>, vector<128x128xbf16>, vector<96x128xf32> -> vector<96x128xf32>
    %57 = arith.addf %52, %56 : vector<96x128xf32>
    %c0_46 = arith.constant 0 : index
    %c0_47 = arith.constant 0 : index
    %58 = vector.load %arg4[%c0_46, %c0_47] : memref<1x128xf32, #tpu.memory_space<vmem>>, vector<1x128xf32>
    %59 = vector.broadcast %58 : vector<1x128xf32> to vector<96x128xf32>
    %60 = arith.addf %57, %59 : vector<96x128xf32>
    %c0_48 = arith.constant 0 : index
    %c0_49 = arith.constant 0 : index
    %61 = vector.load %arg5[%c0_48, %c0_49] : memref<1x128xf32, #tpu.memory_space<vmem>>, vector<1x128xf32>
    %62 = vector.broadcast %61 : vector<1x128xf32> to vector<96x128xf32>
    %63 = arith.mulf %60, %62 : vector<96x128xf32>
    %cst_50 = arith.constant 8.192000e+03 : f32
    %64 = vector.broadcast %cst_50 : f32 to vector<96x128xf32>
    %65 = arith.addf %63, %64 : vector<96x128xf32>
    %cst_51 = arith.constant 6.10351563E-5 : f32
    %66 = vector.broadcast %cst_51 : f32 to vector<96x128xf32>
    %67 = arith.mulf %65, %66 : vector<96x128xf32>
    %68 = math.floor %67 : vector<96x128xf32>
    %c0_52 = arith.constant 0 : index
    %c0_53 = arith.constant 0 : index
    %69 = vector.load %arg6[%c0_52, %c0_53] : memref<96x128xf32, #tpu.memory_space<vmem>>, vector<96x128xf32>
    tpu.vector_store %arg6[%c0_52, %c0_53], %68 {strides = array<i32>} : memref<96x128xf32, #tpu.memory_space<vmem>>, vector<96x128xf32>,
    return
  }
  func.func @transform_1(%arg0: i32, %arg1: i32) -> (i32, i32, i32) {
    %c0_i32 = arith.constant 0 : i32
    %c0_i32_0 = arith.constant 0 : i32
    %c0_i32_1 = arith.constant 0 : i32
    %c0_i32_2 = arith.constant 0 : i32
    return %c0_i32, %c0_i32_0, %c0_i32_1 : i32, i32, i32
  }
  func.func @transform_2(%arg0: i32, %arg1: i32) -> (i32, i32) {
    %c0_i32 = arith.constant 0 : i32
    %c0_i32_0 = arith.constant 0 : i32
    %c0_i32_1 = arith.constant 0 : i32
    return %c0_i32, %c0_i32_0 : i32, i32
  }
  func.func @transform_3(%arg0: i32, %arg1: i32) -> (i32, i32) {
    %c0_i32 = arith.constant 0 : i32
    %c0_i32_0 = arith.constant 0 : i32
    %c0_i32_1 = arith.constant 0 : i32
    return %c0_i32, %c0_i32_0 : i32, i32
  }
  func.func @transform_4(%arg0: i32, %arg1: i32) -> (i32, i32) {
    %c4_i32 = arith.constant 4 : i32
    %0 = arith.muli %arg0, %c4_i32 : i32
    %1 = arith.addi %0, %arg1 : i32
    %c0_i32 = arith.constant 0 : i32
    %c0_i32_0 = arith.constant 0 : i32
    return %1, %c0_i32 : i32, i32
  }
}

</mosaic_0001>

<bundles_post_ra>
// kernel: prior_decoder_forward.4
= control target key start
LH: loop header
LB: loop body
LE: loop exit
PB: predicated region body
PF: predicated region fallthrough
CT: control target
= control target key end

     0   :  { %s4893_s15 = smov 0   ;;  %s4895_s16 = smov 0   ;;  %s5995_s0 = inlined_call_operand.vmem [shape: bf16[320,128], index: 0, kind: input, shape index: {}]   ;;  %s5996_s1 = inlined_call_operand.vmem [shape: bf16[9,128,512], index: 1, kind: input, shape index: {}]   ;;  %s5997_s2 = inlined_call_operand.vmem [shape: f32[1,512], index: 2, kind: input, shape index: {}]   ;;  %s5998_s3 = inlined_call_operand.vmem [shape: f32[1,512], index: 3, kind: input, shape index: {}]   ;;  %s5999_s4 = inlined_call_operand.vmem [shape: bf16[256,512], index: 4, kind: output, shape index: {}]  }
   0x1   :  { %s4897_s17 = smov 0   ;;  %s4899_s18 = smov 0  }
   0x2   :  { %s4901_s19 = smov 0  }
   0x3 LB: > { %s23_s20 = sadd.s32 1, %s4857_s17  ;;  %s26_s21 = sadd.s32 1, %s4861_s18  ;;  %s4865_s19 = sphi %s4901_s19, %s14_s19   ;;  %s4861_s18 = sphi %s4899_s18, %s6003_s18   ;;  %s4857_s17 = sphi %s4897_s17, %s6002_s17   ;;  %s4853_s16 = sphi %s4895_s16, %s6001_s16   ;;  %s4849_s15 = sphi %s4893_s15, %s6000_s15  }
   0x4   : > { %p24_p0 = scmp.ge.s32.totalorder %s23_s20, 4  ;;  %p3621_p1 = scmp.ge.s32.totalorder %s4865_s19, 1 }
   0x5   : > { %p144_p2 = scmp.lt.s32.totalorder %s4865_s19, 9 }
   0x6   : > { %s6005_s20 = smov (%p24_p0, %s23_s20), 0  ;;  %s6007_s21 = smov (!%p24_p0, %s26_s21), %s4861_s18 }
   0x7   : > { %p145_p3 = pnand %p3621_p1, %p144_p2  ;;  %p28_p4 = scmp.ge.s32.totalorder %s6007_s21, 2 }
   0x8   : > { %s3622_s22 = sshll.u32 (!%p145_p3), %s4853_s16, 2  ;;  %s178_s23 = smul.u32 (!%p145_p3), 160, %s4853_s16 }
   0x9   : > { %s6009_s21 = smov (%p28_p4, %s6007_s21), 0  ;;  %148 = sbr.rel (%p145_p3) target bundleno = 584 (0x248), region = 32 }
   0xa   : > { %s167_s24 = sadd.s32 (!%p145_p3), %s4849_s15, %s3622_s22  ;;  %s3626_s25 = sshll.u32 (!%p145_p3), %s4849_s15, 5 }
   0xb   : > { %s3623_s26 = sshll.u32 (!%p145_p3), %s167_s24, 2  ;;  %s180_s27 = sadd.s32 (!%p145_p3), %s3626_s25, %s178_s23 }
   0xc   : > { %p169_p5 = scmp.lt.s32.totalorder (!%p145_p3), %s3623_s26, 31  ;;  %s181_s28 = sshra.s32 (!%p145_p3), %s180_s27, 3 }
   0xd   : > { %s3627_s29 = sshll.u32 (!%p145_p3), %s181_s28, 2 }
   0xe   : > { %s184_s6 = scalar_lea.vmem (!%p145_p3), %s5995_s0, %s3627_s29 }
   0xf   : > { %v217_v0 = vld [vmem:[%s184_s6] sm:$0xff] (!%p145_p3)  ;;  %v219_v1 = vld [vmem:[%s184_s6 + $0x8] sm:$0xff] (!%p145_p3)  ;;  %v221_v2 = vld [vmem:[%s184_s6 + $0x10] sm:$0xff] (!%p145_p3) }
  0x10   : > { %s6011_s26 = smov (!%p169_p5, %s3623_s26), 31  ;;  %218 = vst [vmem:[#allocation2] sm:$0xff] %v217_v0  ;;  %220 = vst [vmem:[#allocation2 + $0x8] sm:$0xff] %v219_v1  ;;  %v223_v3 = vld [vmem:[%s184_s6 + $0x18] sm:$0xff] }
  0x11   : > { %s4199_s7 = sshll.u32 %s6011_s26, 4  ;;  %222 = vst [vmem:[#allocation2 + $0x10] sm:$0xff] %v221_v2  ;;  %224 = vst [vmem:[#allocation2 + $0x18] sm:$0xff] %v223_v3 }
  0x12   : > { %s4929_s10 = scalar_lea.vmem %s5999_s4, %s4199_s7 }
  0x13   : > { %232 = vsyncadd [#allocation3], 512 }
  0x14   : > { %4845 = dma.done.wait [#allocation3], 512 }
  0x15   : > { %4846 = vsyncadd [#allocation3], 4294966784  ;;  %v4867_v4 = vmov 0   ;;  %v4377_v5 = vld [vmem:[%s5996_s1 + $0x104] ss:$16 sps:$4 sm:$0xff]   ;;  %vm914_vm1 = vcmask 1046528  }
  0x16   : > { %535 = vmatprep.mubr.bf16.mxu0 %v4867_v4  ;;  %588 = vmatprep.mubr.bf16.mxu1 %v4867_v4  ;;  %v4379_v6 = vld [vmem:[%s5996_s1 + $0x10c] ss:$16 sps:$4 sm:$0xff]   ;;  %v4381_v7 = vld [vmem:[%s5996_s1 + $0x100] ss:$16 sps:$4 sm:$0xff]   ;;  %v4382_v8 = vld [vmem:[%s5996_s1 + $0x108] ss:$16 sps:$4 sm:$0xff]  }
  0x17   : > { %503 = vmatprep.subr.bf16.mxu0 %v4377_v5  ;;  %556 = vmatprep.subr.bf16.mxu1 %v4379_v6  ;;  %v4383_v9 = vld [vmem:[%s5996_s1 + $0x124] ss:$16 sps:$4 sm:$0xff]   ;;  %v4385_v10 = vld [vmem:[%s5996_s1 + $0x12c] ss:$16 sps:$4 sm:$0xff]   ;;  %v4387_v11 = vld [vmem:[%s5996_s1 + $0x120] ss:$16 sps:$4 sm:$0xff]  }
  0x18   : > { %504 = vmatpush1.bf16.msra.mxu0 %v4381_v7  ;;  %557 = vmatpush1.bf16.msra.mxu1 %v4382_v8  ;;  %v4388_v12 = vld [vmem:[%s5996_s1 + $0x128] ss:$16 sps:$4 sm:$0xff]   ;;  %v4389_v13 = vld [vmem:[%s5996_s1 + $0x144] ss:$16 sps:$4 sm:$0xff]   ;;  %v4391_v14 = vld [vmem:[%s5996_s1 + $0x14c] ss:$16 sps:$4 sm:$0xff]  }
  0x19   : > { %505 = vmatprep.subr.bf16.mxu0 %v4383_v9  ;;  %558 = vmatprep.subr.bf16.mxu1 %v4385_v10  ;;  %v4393_v15 = vld [vmem:[%s5996_s1 + $0x140] ss:$16 sps:$4 sm:$0xff]   ;;  %v4394_v16 = vld [vmem:[%s5996_s1 + $0x148] ss:$16 sps:$4 sm:$0xff]   ;;  %v4395_v17 = vld [vmem:[%s5996_s1 + $0x164] ss:$16 sps:$4 sm:$0xff]  }
  0x1a   : > { %v4397_v18 = vld [vmem:[%s5996_s1 + $0x16c] ss:$16 sps:$4 sm:$0xff]   ;;  %v4399_v19 = vld [vmem:[%s5996_s1 + $0x160] ss:$16 sps:$4 sm:$0xff]   ;;  %v4400_v20 = vld [vmem:[%s5996_s1 + $0x168] ss:$16 sps:$4 sm:$0xff]  }
  0x1b   : > { %v4401_v21 = vld [vmem:[%s5996_s1 + $0x184] ss:$16 sps:$4 sm:$0xff]   ;;  %v4403_v22 = vld [vmem:[%s5996_s1 + $0x18c] ss:$16 sps:$4 sm:$0xff]   ;;  %v4405_v23 = vld [vmem:[%s5996_s1 + $0x180] ss:$16 sps:$4 sm:$0xff]  }
  0x1c   : > { %506 = vmatpush1.bf16.msra.mxu0 %v4387_v11  ;;  %559 = vmatpush1.bf16.msra.mxu1 %v4388_v12  ;;  %v4406_v24 = vld [vmem:[%s5996_s1 + $0x188] ss:$16 sps:$4 sm:$0xff]   ;;  %v4407_v25 = vld [vmem:[%s5996_s1 + $0x1a4] ss:$16 sps:$4 sm:$0xff]   ;;  %v4409_v26 = vld [vmem:[%s5996_s1 + $0x1ac] ss:$16 sps:$4 sm:$0xff]  }
  0x1d   : > { %507 = vmatprep.subr.bf16.mxu0 %v4389_v13  ;;  %560 = vmatprep.subr.bf16.mxu1 %v4391_v14  ;;  %v4411_v27 = vld [vmem:[%s5996_s1 + $0x1a0] ss:$16 sps:$4 sm:$0xff]   ;;  %v4412_v28 = vld [vmem:[%s5996_s1 + $0x1a8] ss:$16 sps:$4 sm:$0xff]   ;;  %v4413_v29 = vld [vmem:[%s5996_s1 + $0x1c4] ss:$16 sps:$4 sm:$0xff]  }
  0x1e   : > { %v4415_v30 = vld [vmem:[%s5996_s1 + $0x1cc] ss:$16 sps:$4 sm:$0xff]   ;;  %v4417_v31 = vld [vmem:[%s5996_s1 + $0x1c0] ss:$16 sps:$4 sm:$0xff]   ;;  %v4418_v32 = vld [vmem:[%s5996_s1 + $0x1c8] ss:$16 sps:$4 sm:$0xff]  }
  0x1f   : > { %v4419_v33 = vld [vmem:[%s5996_s1 + $0x1e4] ss:$16 sps:$4 sm:$0xff]   ;;  %v4421_v34 = vld [vmem:[%s5996_s1 + $0x1ec] ss:$16 sps:$4 sm:$0xff]   ;;  %v237_v35 = vld [vmem:[#allocation2] sm:$0xf] }
  0x20   : > { %508 = vmatpush1.bf16.msra.mxu0 %v4393_v15  ;;  %561 = vmatpush1.bf16.msra.mxu1 %v4394_v16  ;;  %v5023_v36 = vld [vmem:[#allocation2 + $0x4] sm:$0xf]  ;;  %v5028_v38 = vld [vmem:[#allocation2 + $0x8] sm:$0xff]   ;;  %v4423_v42 = vld [vmem:[%s5996_s1 + $0x1e0] ss:$16 sps:$4 sm:$0xff]  }
  0x21   : > { %509 = vmatprep.subr.bf16.mxu0 %v4395_v17  ;;  %562 = vmatprep.subr.bf16.mxu1 %v4397_v18  ;;  %v5026_v37 = vcombine.low %v237_v35, %v5023_v36  ;;  %v329_v41 = vshll.u32 %v5028_v38, 16  ;;  %v4424_v43 = vld [vmem:[%s5996_s1 + $0x1e8] ss:$16 sps:$4 sm:$0xff]   ;;  %v4427_v44 = vld [vmem:[%s5996_s1 + $0x4] ss:$16 sps:$4 sm:$0xff]   ;;  %v333_v60 = vshrl.u32 %v5028_v38, 16 }
  0x22   : > { %v4430_v45 = vld [vmem:[%s5996_s1 + $0xc] ss:$16 sps:$4 sm:$0xff]   ;;  %vm320_vm0 = vsmask.f32 7424  ;;  %v4425_v49 = vld [vmem:[%s5996_s1] ss:$16 sps:$4 sm:$0xff]  }
  0x23   : > { %v322_v39 = vshrl.u32 %v5026_v37, 16  ;;  %v324_v40 = vshll.u32 %v5026_v37, 16  ;;  %v331_v47 = vrot.slane %v329_v41, 1  ;;  %v4428_v50 = vld [vmem:[%s5996_s1 + $0x8] ss:$16 sps:$4 sm:$0xff]   ;;  %v916_v35 = vrot.slane %v5028_v38, 1 }
  0x24   : > { %510 = vmatpush1.bf16.msra.mxu0 %v4399_v19  ;;  %563 = vmatpush1.bf16.msra.mxu1 %v4400_v20  ;;  %v4435_v52 = vld [vmem:[%s5996_s1 + $0x24] ss:$16 sps:$4 sm:$0xff]   ;;  %v4438_v53 = vld [vmem:[%s5996_s1 + $0x2c] ss:$16 sps:$4 sm:$0xff]   ;;  %v4433_v54 = vld [vmem:[%s5996_s1 + $0x20] ss:$16 sps:$4 sm:$0xff]  }
  0x25   : > { %511 = vmatprep.subr.bf16.mxu0 %v4401_v21  ;;  %564 = vmatprep.subr.bf16.mxu1 %v4403_v22  ;;  %v326_v46 = vrot.slane %v324_v40, 1  ;;  %v4436_v55 = vld [vmem:[%s5996_s1 + $0x28] ss:$16 sps:$4 sm:$0xff]   ;;  %v4441_v56 = vld [vmem:[%s5996_s1 + $0x44] ss:$16 sps:$4 sm:$0xff]   ;;  %v335_v3 = vor.u32 %v333_v60, %v331_v47 }
  0x26   : > { %v4444_v57 = vld [vmem:[%s5996_s1 + $0x4c] ss:$16 sps:$4 sm:$0xff]   ;;  %v4439_v58 = vld [vmem:[%s5996_s1 + $0x40] ss:$16 sps:$4 sm:$0xff]   ;;  %v4442_v59 = vld [vmem:[%s5996_s1 + $0x48] ss:$16 sps:$4 sm:$0xff]  }
  0x27   : > { %v327_v48 = vor.u32 %v326_v46, %v322_v39  ;;  %v4447_v61 = vld [vmem:[%s5996_s1 + $0x64] ss:$16 sps:$4 sm:$0xff]   ;;  %v4450_v62 = vld [vmem:[%s5996_s1 + $0x6c] ss:$16 sps:$4 sm:$0xff]   ;;  %v4445_v0 = vld [vmem:[%s5996_s1 + $0x60] ss:$16 sps:$4 sm:$0xff]  }
  0x28   : > { %512 = vmatpush1.bf16.msra.mxu0 %v4405_v23  ;;  %565 = vmatpush1.bf16.msra.mxu1 %v4406_v24  ;;  %v5085_v63 = vld [vmem:[#allocation2 + $0x10] ss:$0 sps:$4 sm:$0x11]   ;;  %v4448_v1 = vld [vmem:[%s5996_s1 + $0x68] ss:$16 sps:$4 sm:$0xff]  }
  0x29   : > { %513 = vmatprep.subr.bf16.mxu0 %v4407_v25  ;;  %566 = vmatprep.subr.bf16.mxu1 %v4409_v26  ;;  %v332_v51 = vsel %vm320_vm0, %v327_v48, %v331_v47  ;;  %v4453_v2 = vld [vmem:[%s5996_s1 + $0x84] ss:$16 sps:$4 sm:$0xff]   ;;  %v337_v5 = vshll.u32 %v5085_v63, 16  ;;  %v4456_v6 = vld [vmem:[%s5996_s1 + $0x8c] ss:$16 sps:$4 sm:$0xff]  }
  0x2a   : > { %v4451_v8 = vld [vmem:[%s5996_s1 + $0x80] ss:$16 sps:$4 sm:$0xff]   ;;  %v4454_v9 = vld [vmem:[%s5996_s1 + $0x88] ss:$16 sps:$4 sm:$0xff]   ;;  %v4459_v10 = vld [vmem:[%s5996_s1 + $0xa4] ss:$16 sps:$4 sm:$0xff]  }
  0x2b   : > { %v339_v7 = vrot.slane %v337_v5, 1  ;;  %v4462_v12 = vld [vmem:[%s5996_s1 + $0xac] ss:$16 sps:$4 sm:$0xff]   ;;  %v4457_v13 = vld [vmem:[%s5996_s1 + $0xa0] ss:$16 sps:$4 sm:$0xff]  }
  0x2c   : > { %514 = vmatpush1.bf16.msra.mxu0 %v4411_v27  ;;  %567 = vmatpush1.bf16.msra.mxu1 %v4412_v28  ;;  %v4460_v14 = vld [vmem:[%s5996_s1 + $0xa8] ss:$16 sps:$4 sm:$0xff]   ;;  %v4465_v15 = vld [vmem:[%s5996_s1 + $0xc4] ss:$16 sps:$4 sm:$0xff]   ;;  %v4468_v16 = vld [vmem:[%s5996_s1 + $0xcc] ss:$16 sps:$4 sm:$0xff]  }
  0x2d   : > { %515 = vmatprep.subr.bf16.mxu0 %v4413_v29  ;;  %568 = vmatprep.subr.bf16.mxu1 %v4415_v30  ;;  %v340_v11 = vsel %vm320_vm0, %v335_v3, %v339_v7  ;;  %v4463_v17 = vld [vmem:[%s5996_s1 + $0xc0] ss:$16 sps:$4 sm:$0xff]   ;;  %v4466_v18 = vld [vmem:[%s5996_s1 + $0xc8] ss:$16 sps:$4 sm:$0xff]   ;;  %v4472_v19 = vld [vmem:[%s5996_s1 + $0xe4] ss:$16 sps:$4 sm:$0xff]  }
  0x2e   : > { %v4475_v20 = vld [vmem:[%s5996_s1 + $0xec] ss:$16 sps:$4 sm:$0xff]   ;;  %v4470_v21 = vld [vmem:[%s5996_s1 + $0xe0] ss:$16 sps:$4 sm:$0xff]   ;;  %v4473_v22 = vld [vmem:[%s5996_s1 + $0xe8] ss:$16 sps:$4 sm:$0xff]  }
  0x2f   : > { %v4478_v23 = vld [vmem:[%s5996_s1 + $0x204] ss:$16 sps:$4 sm:$0xff]   ;;  %v4481_v24 = vld [vmem:[%s5996_s1 + $0x20c] ss:$16 sps:$4 sm:$0xff]   ;;  %v4476_v25 = vld [vmem:[%s5996_s1 + $0x200] ss:$16 sps:$4 sm:$0xff]  }
  0x30   : > { %516 = vmatpush1.bf16.msra.mxu0 %v4417_v31  ;;  %569 = vmatpush1.bf16.msra.mxu1 %v4418_v32  ;;  %v4479_v26 = vld [vmem:[%s5996_s1 + $0x208] ss:$16 sps:$4 sm:$0xff]   ;;  %v4484_v27 = vld [vmem:[%s5996_s1 + $0x224] ss:$16 sps:$4 sm:$0xff]   ;;  %v4487_v28 = vld [vmem:[%s5996_s1 + $0x22c] ss:$16 sps:$4 sm:$0xff]  }
  0x31   : > { %517 = vmatprep.subr.bf16.mxu0 %v4419_v33  ;;  %570 = vmatprep.subr.bf16.mxu1 %v4421_v34  ;;  %v4482_v29 = vld [vmem:[%s5996_s1 + $0x220] ss:$16 sps:$4 sm:$0xff]   ;;  %v4485_v30 = vld [vmem:[%s5996_s1 + $0x228] ss:$16 sps:$4 sm:$0xff]   ;;  %v4490_v31 = vld [vmem:[%s5996_s1 + $0x244] ss:$16 sps:$4 sm:$0xff]  }
  0x32   : > { %v4493_v32 = vld [vmem:[%s5996_s1 + $0x24c] ss:$16 sps:$4 sm:$0xff]   ;;  %v877_v33 = vld [vmem:[#allocation2] sm:$0xe]  ;;  %v4491_v39 = vld [vmem:[%s5996_s1 + $0x248] ss:$16 sps:$4 sm:$0xff]  }
  0x33   : > { %v3759_v34 = vcombine.low %v877_v33, %v5023_v36  ;;  %v4496_v36 = vld [vmem:[%s5996_s1 + $0x264] ss:$16 sps:$4 sm:$0xff]   ;;  %v4499_v41 = vld [vmem:[%s5996_s1 + $0x26c] ss:$16 sps:$4 sm:$0xff]   ;;  %v4500_v47 = vld [vmem:[%s5996_s1 + $0x280] ss:$16 sps:$4 sm:$0xff]  }
  0x34   : > { %518 = vmatpush1.bf16.msra.mxu0 %v4423_v42  ;;  %571 = vmatpush1.bf16.msra.mxu1 %v4424_v43  ;;  %v4494_v43 = vld [vmem:[%s5996_s1 + $0x260] ss:$16 sps:$4 sm:$0xff]   ;;  %v4505_v46 = vld [vmem:[%s5996_s1 + $0x28c] ss:$16 sps:$4 sm:$0xff]   ;;  %v4503_v48 = vld [vmem:[%s5996_s1 + $0x288] ss:$16 sps:$4 sm:$0xff]  }
  0x35   : > { %771 = vmatprep.subr.bf16.mxu0 %v4427_v44  ;;  %824 = vmatprep.subr.bf16.mxu1 %v4430_v45  ;;  %v915_v40 = vrot.slane %v3759_v34, 1  ;;  %v4497_v44 = vld [vmem:[%s5996_s1 + $0x268] ss:$16 sps:$4 sm:$0xff]   ;;  %v4502_v45 = vld [vmem:[%s5996_s1 + $0x284] ss:$16 sps:$4 sm:$0xff]  }
  0x36   : > { %v4521_v60 = vld [vmem:[%s5996_s1 + $0x2e8] ss:$16 sps:$4 sm:$0xff]   ;;  %v4536_v3 = vld [vmem:[%s5996_s1 + $0x32c] ss:$16 sps:$4 sm:$0xff]   ;;  %v4531_v5 = vld [vmem:[%s5996_s1 + $0x320] ss:$16 sps:$4 sm:$0xff]  }
  0x37   : > { %536 = vmatmul.mubr.bf16.vlgmr.msra.gmra.mrb[0].mxu0 %v332_v51  ;;  %589 = vmatmul.mubr.bf16.vlgmr.msra.gmra.mrb[0].mxu1 %v332_v51  ;;  %v917_v42 = vsel %vm914_vm1, %v915_v40, %v916_v35  ;;  %v4506_v51 = vld [vmem:[%s5996_s1 + $0x2a0] ss:$16 sps:$4 sm:$0xff]   ;;  %v4539_v7 = vld [vmem:[%s5996_s1 + $0x344] ss:$16 sps:$4 sm:$0xff]   ;;  %v4579_v34 = vld [vmem:[#allocation2 + $0x8] sm:$0xff]  }
  0x38   : > { %772 = vmatpush1.bf16.msra.mxu0 %v4425_v49  ;;  %825 = vmatpush1.bf16.msra.mxu1 %v4428_v50  ;;  %v4508_v49 = vld [vmem:[%s5996_s1 + $0x2a4] ss:$16 sps:$4 sm:$0xff]   ;;  %v4511_v50 = vld [vmem:[%s5996_s1 + $0x2ac] ss:$16 sps:$4 sm:$0xff]   ;;  %v4573_v33 = vld [vmem:[%s5996_s1 + $0x400] ss:$16 sps:$4 sm:$0xff]  }
  0x39   : > { %773 = vmatprep.subr.bf16.mxu0 %v4435_v52  ;;  %826 = vmatprep.subr.bf16.mxu1 %v4438_v53  ;;  %v4509_v52 = vld [vmem:[%s5996_s1 + $0x2a8] ss:$16 sps:$4 sm:$0xff]   ;;  %v4514_v53 = vld [vmem:[%s5996_s1 + $0x2c4] ss:$16 sps:$4 sm:$0xff]   ;;  %v4580_v40 = vld [vmem:[%s5996_s1 + $0x420] ss:$16 sps:$4 sm:$0xff]  }
  0x3a   : > { %545 = vmatprep.mubr.bf16.mxu0 %v4867_v4  ;;  %598 = vmatprep.mubr.bf16.mxu1 %v4867_v4 }
  0x3c   : > { %774 = vmatpush1.bf16.msra.mxu0 %v4433_v54  ;;  %827 = vmatpush1.bf16.msra.mxu1 %v4436_v55  ;;  %v4517_v54 = vld [vmem:[%s5996_s1 + $0x2cc] ss:$16 sps:$4 sm:$0xff]   ;;  %v4512_v55 = vld [vmem:[%s5996_s1 + $0x2c0] ss:$16 sps:$4 sm:$0xff]  }
  0x3d   : > { %775 = vmatprep.subr.bf16.mxu0 %v4441_v56  ;;  %828 = vmatprep.subr.bf16.mxu1 %v4444_v57  ;;  %v4515_v56 = vld [vmem:[%s5996_s1 + $0x2c8] ss:$16 sps:$4 sm:$0xff]   ;;  %v4520_v57 = vld [vmem:[%s5996_s1 + $0x2e4] ss:$16 sps:$4 sm:$0xff]  }
  0x3f   : > { %546 = vmatmul.mubr.bf16.gmra.mrb[4].mxu0 %v340_v11  ;;  %599 = vmatmul.mubr.bf16.gmra.mrb[4].mxu1 %v340_v11  ;;  %v4540_v11 = vld [vmem:[%s5996_s1 + $0x348] ss:$16 sps:$4 sm:$0xff]  }
  0x40   : > { %776 = vmatpush1.bf16.msra.mxu0 %v4439_v58  ;;  %829 = vmatpush1.bf16.msra.mxu1 %v4442_v59  ;;  %v4523_v58 = vld [vmem:[%s5996_s1 + $0x2ec] ss:$16 sps:$4 sm:$0xff]   ;;  %v4518_v59 = vld [vmem:[%s5996_s1 + $0x2e0] ss:$16 sps:$4 sm:$0xff]  }
  0x41   : > { %777 = vmatprep.subr.bf16.mxu0 %v4447_v61  ;;  %830 = vmatprep.subr.bf16.mxu1 %v4450_v62  ;;  %v4526_v61 = vld [vmem:[%s5996_s1 + $0x304] ss:$16 sps:$4 sm:$0xff]   ;;  %v4529_v62 = vld [vmem:[%s5996_s1 + $0x30c] ss:$16 sps:$4 sm:$0xff]  }
  0x42   : > { %803 = vmatprep.mubr.bf16.mxu0 %v4867_v4  ;;  %856 = vmatprep.mubr.bf16.mxu1 %v4867_v4 }
  0x44   : > { %778 = vmatpush1.bf16.msra.mxu0 %v4445_v0  ;;  %831 = vmatpush1.bf16.msra.mxu1 %v4448_v1  ;;  %v4524_v0 = vld [vmem:[%s5996_s1 + $0x300] ss:$16 sps:$4 sm:$0xff]   ;;  %v4527_v1 = vld [vmem:[%s5996_s1 + $0x308] ss:$16 sps:$4 sm:$0xff]  }
  0x45   : > { %779 = vmatprep.subr.bf16.mxu0 %v4453_v2  ;;  %832 = vmatprep.subr.bf16.mxu1 %v4456_v6  ;;  %v4533_v2 = vld [vmem:[%s5996_s1 + $0x324] ss:$16 sps:$4 sm:$0xff]   ;;  %v4534_v6 = vld [vmem:[%s5996_s1 + $0x328] ss:$16 sps:$4 sm:$0xff]  }
  0x48   : > { %780 = vmatpush1.bf16.msra.mxu0 %v4451_v8  ;;  %833 = vmatpush1.bf16.msra.mxu1 %v4454_v9  ;;  %v918_v8 = vrot.slane %v5085_v63, 1  ;;  %v4542_v9 = vld [vmem:[%s5996_s1 + $0x34c] ss:$16 sps:$4 sm:$0xff]   ;;  %v4545_v63 = vld [vmem:[%s5996_s1 + $0x364] ss:$16 sps:$4 sm:$0xff]  }
  0x49   : > { %781 = vmatprep.subr.bf16.mxu0 %v4459_v10  ;;  %834 = vmatprep.subr.bf16.mxu1 %v4462_v12  ;;  %v4537_v10 = vld [vmem:[%s5996_s1 + $0x340] ss:$16 sps:$4 sm:$0xff]  }
  0x4a   : > { %v919_v12 = vsel %vm914_vm1, %v916_v35, %v918_v8  ;;  %v4576_v35 = vld [vmem:[%s5996_s1 + $0x408] ss:$16 sps:$4 sm:$0xff]  }
  0x4c   : > { %782 = vmatpush1.bf16.msra.mxu0 %v4457_v13  ;;  %835 = vmatpush1.bf16.msra.mxu1 %v4460_v14  ;;  %v4548_v13 = vld [vmem:[%s5996_s1 + $0x36c] ss:$16 sps:$4 sm:$0xff]   ;;  %v4543_v14 = vld [vmem:[%s5996_s1 + $0x360] ss:$16 sps:$4 sm:$0xff]  }
  0x4d   : > { %783 = vmatprep.subr.bf16.mxu0 %v4465_v15  ;;  %836 = vmatprep.subr.bf16.mxu1 %v4468_v16  ;;  %v4546_v15 = vld [vmem:[%s5996_s1 + $0x368] ss:$16 sps:$4 sm:$0xff]   ;;  %v4554_v16 = vld [vmem:[%s5996_s1 + $0x38c] ss:$16 sps:$4 sm:$0xff]  }
  0x50   : > { %784 = vmatpush1.bf16.msra.mxu0 %v4463_v17  ;;  %837 = vmatpush1.bf16.msra.mxu1 %v4466_v18  ;;  %v4549_v17 = vld [vmem:[%s5996_s1 + $0x380] ss:$16 sps:$4 sm:$0xff]   ;;  %v4552_v18 = vld [vmem:[%s5996_s1 + $0x388] ss:$16 sps:$4 sm:$0xff]  }
  0x51   : > { %785 = vmatprep.subr.bf16.mxu0 %v4472_v19  ;;  %838 = vmatprep.subr.bf16.mxu1 %v4475_v20  ;;  %v4557_v19 = vld [vmem:[%s5996_s1 + $0x3a4] ss:$16 sps:$4 sm:$0xff]   ;;  %v4560_v20 = vld [vmem:[%s5996_s1 + $0x3ac] ss:$16 sps:$4 sm:$0xff]  }
  0x54   : > { %786 = vmatpush1.bf16.msra.mxu0 %v4470_v21  ;;  %839 = vmatpush1.bf16.msra.mxu1 %v4473_v22  ;;  %v4555_v21 = vld [vmem:[%s5996_s1 + $0x3a0] ss:$16 sps:$4 sm:$0xff]   ;;  %v4558_v22 = vld [vmem:[%s5996_s1 + $0x3a8] ss:$16 sps:$4 sm:$0xff]  }
  0x55   : > { %1082 = vmatprep.subr.bf16.mxu0 %v4478_v23  ;;  %1135 = vmatprep.subr.bf16.mxu1 %v4481_v24  ;;  %v4563_v23 = vld [vmem:[%s5996_s1 + $0x3c4] ss:$16 sps:$4 sm:$0xff]   ;;  %v4566_v24 = vld [vmem:[%s5996_s1 + $0x3cc] ss:$16 sps:$4 sm:$0xff]  }
  0x57   : > { %804 = vmatmul.mubr.bf16.vlgmr.msra.gmra.mrb[0].mxu0 %v5026_v37  ;;  %857 = vmatmul.mubr.bf16.vlgmr.msra.gmra.mrb[0].mxu1 %v5026_v37  ;;  %v4488_v37 = vld [vmem:[%s5996_s1 + $0x240] ss:$16 sps:$4 sm:$0xff]  }
  0x58   : > { %1083 = vmatpush1.bf16.msra.mxu0 %v4476_v25  ;;  %1136 = vmatpush1.bf16.msra.mxu1 %v4479_v26  ;;  %v4561_v25 = vld [vmem:[%s5996_s1 + $0x3c0] ss:$16 sps:$4 sm:$0xff]   ;;  %v4564_v26 = vld [vmem:[%s5996_s1 + $0x3c8] ss:$16 sps:$4 sm:$0xff]  }
  0x59   : > { %1084 = vmatprep.subr.bf16.mxu0 %v4484_v27  ;;  %1137 = vmatprep.subr.bf16.mxu1 %v4487_v28  ;;  %v4569_v27 = vld [vmem:[%s5996_s1 + $0x3e4] ss:$16 sps:$4 sm:$0xff]   ;;  %v4572_v28 = vld [vmem:[%s5996_s1 + $0x3ec] ss:$16 sps:$4 sm:$0xff]  }
  0x5a   : > { %813 = vmatprep.mubr.bf16.mxu0 %v4867_v4  ;;  %866 = vmatprep.mubr.bf16.mxu1 %v4867_v4 }
  0x5c   : > { %1085 = vmatpush1.bf16.msra.mxu0 %v4482_v29  ;;  %1138 = vmatpush1.bf16.msra.mxu1 %v4485_v30  ;;  %v4567_v29 = vld [vmem:[%s5996_s1 + $0x3e0] ss:$16 sps:$4 sm:$0xff]   ;;  %v4570_v30 = vld [vmem:[%s5996_s1 + $0x3e8] ss:$16 sps:$4 sm:$0xff]  }
  0x5d   : > { %1086 = vmatprep.subr.bf16.mxu0 %v4490_v31  ;;  %1139 = vmatprep.subr.bf16.mxu1 %v4493_v32  ;;  %v4575_v31 = vld [vmem:[%s5996_s1 + $0x404] ss:$16 sps:$4 sm:$0xff]   ;;  %v4578_v32 = vld [vmem:[%s5996_s1 + $0x40c] ss:$16 sps:$4 sm:$0xff]  }
  0x5f   : > { %814 = vmatmul.mubr.bf16.gmra.mrb[4].mxu0 %v5028_v38  ;;  %867 = vmatmul.mubr.bf16.gmra.mrb[4].mxu1 %v5028_v38  ;;  %v4551_v38 = vld [vmem:[%s5996_s1 + $0x384] ss:$16 sps:$4 sm:$0xff]  }
  0x60   : > { %1087 = vmatpush1.bf16.msra.mxu0 %v4488_v37  ;;  %1140 = vmatpush1.bf16.msra.mxu1 %v4491_v39  ;;  %v4582_v37 = vld [vmem:[%s5996_s1 + $0x424] ss:$16 sps:$4 sm:$0xff]   ;;  %v4585_v39 = vld [vmem:[%s5996_s1 + $0x42c] ss:$16 sps:$4 sm:$0xff]  }
  0x61   : > { %1088 = vmatprep.subr.bf16.mxu0 %v4496_v36  ;;  %1141 = vmatprep.subr.bf16.mxu1 %v4499_v41  ;;  %v4583_v36 = vld [vmem:[%s5996_s1 + $0x428] ss:$16 sps:$4 sm:$0xff]   ;;  %v4588_v41 = vld [vmem:[%s5996_s1 + $0x444] ss:$16 sps:$4 sm:$0xff]  }
  0x62   : > { %1114 = vmatprep.mubr.bf16.mxu0 %v4867_v4  ;;  %1167 = vmatprep.mubr.bf16.mxu1 %v4867_v4 }
  0x64   : > { %1089 = vmatpush1.bf16.msra.mxu0 %v4494_v43  ;;  %1142 = vmatpush1.bf16.msra.mxu1 %v4497_v44  ;;  %v4586_v43 = vld [vmem:[%s5996_s1 + $0x440] ss:$16 sps:$4 sm:$0xff]  }
  0x65   : > { %1090 = vmatprep.subr.bf16.mxu0 %v4502_v45  ;;  %1143 = vmatprep.subr.bf16.mxu1 %v4505_v46  ;;  %v4616_v44 = vld [vmem:[#allocation2 + $0x10] sm:$0xff]   ;;  %v4589_v45 = vld [vmem:[%s5996_s1 + $0x448] ss:$16 sps:$4 sm:$0xff]  }
  0x66   : > { %v4594_v46 = vld [vmem:[%s5996_s1 + $0x464] ss:$16 sps:$4 sm:$0xff]  }
  0x68   : > { %1091 = vmatpush1.bf16.msra.mxu0 %v4500_v47  ;;  %1144 = vmatpush1.bf16.msra.mxu1 %v4503_v48  ;;  %v4597_v47 = vld [vmem:[%s5996_s1 + $0x46c] ss:$16 sps:$4 sm:$0xff]   ;;  %v4592_v48 = vld [vmem:[%s5996_s1 + $0x460] ss:$16 sps:$4 sm:$0xff]  }
  0x69   : > { %1092 = vmatprep.subr.bf16.mxu0 %v4508_v49  ;;  %1145 = vmatprep.subr.bf16.mxu1 %v4511_v50  ;;  %v4595_v49 = vld [vmem:[%s5996_s1 + $0x468] ss:$16 sps:$4 sm:$0xff]   ;;  %v4600_v50 = vld [vmem:[%s5996_s1 + $0x484] ss:$16 sps:$4 sm:$0xff]  }
  0x6c   : > { %1093 = vmatpush1.bf16.msra.mxu0 %v4506_v51  ;;  %1146 = vmatpush1.bf16.msra.mxu1 %v4509_v52  ;;  %v4603_v51 = vld [vmem:[%s5996_s1 + $0x48c] ss:$16 sps:$4 sm:$0xff]   ;;  %v1535_v52 = vld [vmem:[#allocation2 + $0x8] sm:$0xf] }
  0x6d   : > { %1094 = vmatprep.subr.bf16.mxu0 %v4514_v53  ;;  %1147 = vmatprep.subr.bf16.mxu1 %v4517_v54  ;;  %v5414_v53 = vld [vmem:[#allocation2 + $0xc] sm:$0xf]  ;;  %v4598_v54 = vld [vmem:[%s5996_s1 + $0x480] ss:$16 sps:$4 sm:$0xff]  }
  0x70   : > { %1095 = vmatpush1.bf16.msra.mxu0 %v4512_v55  ;;  %1148 = vmatpush1.bf16.msra.mxu1 %v4515_v56  ;;  %v4601_v55 = vld [vmem:[%s5996_s1 + $0x488] ss:$16 sps:$4 sm:$0xff]   ;;  %v4606_v56 = vld [vmem:[%s5996_s1 + $0x4a4] ss:$16 sps:$4 sm:$0xff]  }
  0x71   : > { %1096 = vmatprep.subr.bf16.mxu0 %v4520_v57  ;;  %1149 = vmatprep.subr.bf16.mxu1 %v4523_v58  ;;  %v3890_v57 = vcombine.low %v1535_v52, %v5414_v53  ;;  %v4609_v58 = vld [vmem:[%s5996_s1 + $0x4ac] ss:$16 sps:$4 sm:$0xff]   ;;  %v4668_v52 = vld [vmem:[%s5996_s1 + $0x5e0] ss:$16 sps:$4 sm:$0xff]  }
  0x74   : > { %1097 = vmatpush1.bf16.msra.mxu0 %v4518_v59  ;;  %1150 = vmatpush1.bf16.msra.mxu1 %v4521_v60  ;;  %v4604_v59 = vld [vmem:[%s5996_s1 + $0x4a0] ss:$16 sps:$4 sm:$0xff]   ;;  %v4607_v60 = vld [vmem:[%s5996_s1 + $0x4a8] ss:$16 sps:$4 sm:$0xff]  }
  0x75   : > { %1413 = vmatprep.subr.bf16.mxu0 %v4526_v61  ;;  %1466 = vmatprep.subr.bf16.mxu1 %v4529_v62  ;;  %v4612_v61 = vld [vmem:[%s5996_s1 + $0x4c4] ss:$16 sps:$4 sm:$0xff]  }
  0x76   : > { %v5440_v62 = vld [vmem:[#allocation2 + $0x10] sm:$0xff]  }
  0x77   : > { %1115 = vmatmul.mubr.bf16.vlgmr.msra.gmra.mrb[0].mxu0 %v917_v42  ;;  %1168 = vmatmul.mubr.bf16.vlgmr.msra.gmra.mrb[0].mxu1 %v917_v42  ;;  %v4591_v42 = vld [vmem:[%s5996_s1 + $0x44c] ss:$16 sps:$4 sm:$0xff]   ;;  %v1594_v8 = vshll.u32 %v5440_v62, 16 }
  0x78   : > { %1414 = vmatpush1.bf16.msra.mxu0 %v4524_v0  ;;  %1467 = vmatpush1.bf16.msra.mxu1 %v4527_v1  ;;  %v1589_v0 = vshll.u32 %v3890_v57, 16  ;;  %v4615_v1 = vld [vmem:[%s5996_s1 + $0x4cc] ss:$16 sps:$4 sm:$0xff]  }
  0x79   : > { %1415 = vmatprep.subr.bf16.mxu0 %v4533_v2  ;;  %1468 = vmatprep.subr.bf16.mxu1 %v4536_v3  ;;  %v4610_v2 = vld [vmem:[%s5996_s1 + $0x4c0] ss:$16 sps:$4 sm:$0xff]   ;;  %v4613_v3 = vld [vmem:[%s5996_s1 + $0x4c8] ss:$16 sps:$4 sm:$0xff]  }
  0x7a   : > { %1124 = vmatprep.mubr.bf16.mxu0 %v4867_v4  ;;  %1177 = vmatprep.mubr.bf16.mxu1 %v4867_v4 }
  0x7c   : > { %1416 = vmatpush1.bf16.msra.mxu0 %v4531_v5  ;;  %1469 = vmatpush1.bf16.msra.mxu1 %v4534_v6  ;;  %v4619_v5 = vld [vmem:[%s5996_s1 + $0x4e4] ss:$16 sps:$4 sm:$0xff]   ;;  %v1587_v6 = vshrl.u32 %v3890_v57, 16  ;;  %v4679_v57 = vld [vmem:[%s5996_s1 + $0x60c] ss:$16 sps:$4 sm:$0xff]  }
  0x7d   : > { %1417 = vmatprep.subr.bf16.mxu0 %v4539_v7  ;;  %1470 = vmatprep.subr.bf16.mxu1 %v4542_v9  ;;  %v1591_v7 = vrot.slane %v1589_v0, 1  ;;  %v4622_v9 = vld [vmem:[%s5996_s1 + $0x4ec] ss:$16 sps:$4 sm:$0xff]   ;;  %v4681_v0 = vld [vmem:[%s5996_s1 + $0x620] ss:$16 sps:$4 sm:$0xff]  }
  0x7f   : > { %1125 = vmatmul.mubr.bf16.gmra.mrb[4].mxu0 %v919_v12  ;;  %1178 = vmatmul.mubr.bf16.gmra.mrb[4].mxu1 %v919_v12  ;;  %v1592_v12 = vor.u32 %v1591_v7, %v1587_v6  ;;  %v4687_v6 = vld [vmem:[%s5996_s1 + $0x640] ss:$16 sps:$4 sm:$0xff]   ;;  %v4690_v7 = vld [vmem:[%s5996_s1 + $0x648] ss:$16 sps:$4 sm:$0xff]  }
  0x80   : > { %1418 = vmatpush1.bf16.msra.mxu0 %v4537_v10  ;;  %1471 = vmatpush1.bf16.msra.mxu1 %v4540_v11  ;;  %v4617_v10 = vld [vmem:[%s5996_s1 + $0x4e0] ss:$16 sps:$4 sm:$0xff]   ;;  %v4620_v11 = vld [vmem:[%s5996_s1 + $0x4e8] ss:$16 sps:$4 sm:$0xff]  }
  0x81   : > { %1419 = vmatprep.subr.bf16.mxu0 %v4545_v63  ;;  %1472 = vmatprep.subr.bf16.mxu1 %v4548_v13  ;;  %v4625_v63 = vld [vmem:[%s5996_s1 + $0x504] ss:$16 sps:$4 sm:$0xff]   ;;  %v1596_v13 = vrot.slane %v1594_v8, 1 }
  0x82   : > { %1445 = vmatprep.mubr.bf16.mxu0 %v4867_v4  ;;  %1498 = vmatprep.mubr.bf16.mxu1 %v4867_v4 }
  0x84   : > { %1420 = vmatpush1.bf16.msra.mxu0 %v4543_v14  ;;  %1473 = vmatpush1.bf16.msra.mxu1 %v4546_v15  ;;  %v5467_v14 = vld [vmem:[#allocation2 + $0x18] ss:$0 sps:$4 sm:$0x11]   ;;  %v4628_v15 = vld [vmem:[%s5996_s1 + $0x50c] ss:$16 sps:$4 sm:$0xff]  }
  0x85   : > { %1421 = vmatprep.subr.bf16.mxu0 %v4551_v38  ;;  %1474 = vmatprep.subr.bf16.mxu1 %v4554_v16  ;;  %v4623_v38 = vld [vmem:[%s5996_s1 + $0x500] ss:$16 sps:$4 sm:$0xff]   ;;  %v4626_v16 = vld [vmem:[%s5996_s1 + $0x508] ss:$16 sps:$4 sm:$0xff]  }
  0x88   : > { %1422 = vmatpush1.bf16.msra.mxu0 %v4549_v17  ;;  %1475 = vmatpush1.bf16.msra.mxu1 %v4552_v18  ;;  %v4633_v17 = vld [vmem:[%s5996_s1 + $0x524] ss:$16 sps:$4 sm:$0xff]   ;;  %v1597_v18 = vsel %vm320_vm0, %v1592_v12, %v1596_v13 }
  0x89   : > { %1423 = vmatprep.subr.bf16.mxu0 %v4557_v19  ;;  %1476 = vmatprep.subr.bf16.mxu1 %v4560_v20  ;;  %v1598_v19 = vshrl.u32 %v5440_v62, 16  ;;  %v1602_v20 = vshll.u32 %v5467_v14, 16  ;;  %v4701_v12 = vld [vmem:[%s5996_s1 + $0x684] ss:$16 sps:$4 sm:$0xff]  }
  0x8c   : > { %1424 = vmatpush1.bf16.msra.mxu0 %v4555_v21  ;;  %1477 = vmatpush1.bf16.msra.mxu1 %v4558_v22  ;;  %v4636_v21 = vld [vmem:[%s5996_s1 + $0x52c] ss:$16 sps:$4 sm:$0xff]   ;;  %v4631_v22 = vld [vmem:[%s5996_s1 + $0x520] ss:$16 sps:$4 sm:$0xff]  }
  0x8d   : > { %1425 = vmatprep.subr.bf16.mxu0 %v4563_v23  ;;  %1478 = vmatprep.subr.bf16.mxu1 %v4566_v24  ;;  %v4634_v23 = vld [vmem:[%s5996_s1 + $0x528] ss:$16 sps:$4 sm:$0xff]   ;;  %v4639_v24 = vld [vmem:[%s5996_s1 + $0x544] ss:$16 sps:$4 sm:$0xff]  }
  0x90   : > { %1426 = vmatpush1.bf16.msra.mxu0 %v4561_v25  ;;  %1479 = vmatpush1.bf16.msra.mxu1 %v4564_v26  ;;  %v1600_v25 = vor.u32 %v1598_v19, %v1596_v13  ;;  %v1604_v26 = vrot.slane %v1602_v20, 1  ;;  %v4704_v13 = vld [vmem:[%s5996_s1 + $0x68c] ss:$16 sps:$4 sm:$0xff]   ;;  %v4713_v19 = vld [vmem:[%s5996_s1 + $0x6c4] ss:$16 sps:$4 sm:$0xff]  }
  0x91   : > { %1427 = vmatprep.subr.bf16.mxu0 %v4569_v27  ;;  %1480 = vmatprep.subr.bf16.mxu1 %v4572_v28  ;;  %v4642_v27 = vld [vmem:[%s5996_s1 + $0x54c] ss:$16 sps:$4 sm:$0xff]   ;;  %v4637_v28 = vld [vmem:[%s5996_s1 + $0x540] ss:$16 sps:$4 sm:$0xff]  }
  0x92   : > { %v4716_v20 = vld [vmem:[%s5996_s1 + $0x6cc] ss:$16 sps:$4 sm:$0xff]  }
  0x94   : > { %1428 = vmatpush1.bf16.msra.mxu0 %v4567_v29  ;;  %1481 = vmatpush1.bf16.msra.mxu1 %v4570_v30  ;;  %v4640_v29 = vld [vmem:[%s5996_s1 + $0x548] ss:$16 sps:$4 sm:$0xff]   ;;  %v4645_v30 = vld [vmem:[%s5996_s1 + $0x564] ss:$16 sps:$4 sm:$0xff]  }
  0x95   : > { %1768 = vmatprep.subr.bf16.mxu0 %v4575_v31  ;;  %1821 = vmatprep.subr.bf16.mxu1 %v4578_v32  ;;  %v1605_v31 = vsel %vm320_vm0, %v1600_v25, %v1604_v26  ;;  %v4648_v32 = vld [vmem:[%s5996_s1 + $0x56c] ss:$16 sps:$4 sm:$0xff]   ;;  %v4717_v25 = vld [vmem:[%s5996_s1 + $0x6e0] ss:$16 sps:$4 sm:$0xff]   ;;  %v4720_v26 = vld [vmem:[%s5996_s1 + $0x6e8] ss:$16 sps:$4 sm:$0xff]  }
  0x97   : > { %1446 = vmatmul.mubr.bf16.vlgmr.msra.gmra.mrb[0].mxu0 %v4579_v34  ;;  %1499 = vmatmul.mubr.bf16.vlgmr.msra.gmra.mrb[0].mxu1 %v4579_v34  ;;  %v4646_v34 = vld [vmem:[%s5996_s1 + $0x568] ss:$16 sps:$4 sm:$0xff]  }
  0x98   : > { %1769 = vmatpush1.bf16.msra.mxu0 %v4573_v33  ;;  %1822 = vmatpush1.bf16.msra.mxu1 %v4576_v35  ;;  %v4643_v33 = vld [vmem:[%s5996_s1 + $0x560] ss:$16 sps:$4 sm:$0xff]   ;;  %v4651_v35 = vld [vmem:[%s5996_s1 + $0x584] ss:$16 sps:$4 sm:$0xff]  }
  0x99   : > { %1770 = vmatprep.subr.bf16.mxu0 %v4582_v37  ;;  %1823 = vmatprep.subr.bf16.mxu1 %v4585_v39  ;;  %v4654_v37 = vld [vmem:[%s5996_s1 + $0x58c] ss:$16 sps:$4 sm:$0xff]   ;;  %v4649_v39 = vld [vmem:[%s5996_s1 + $0x580] ss:$16 sps:$4 sm:$0xff]  }
  0x9a   : > { %1455 = vmatprep.mubr.bf16.mxu0 %v4867_v4  ;;  %1508 = vmatprep.mubr.bf16.mxu1 %v4867_v4 }
  0x9c   : > { %1771 = vmatpush1.bf16.msra.mxu0 %v4580_v40  ;;  %1824 = vmatpush1.bf16.msra.mxu1 %v4583_v36  ;;  %v4652_v40 = vld [vmem:[%s5996_s1 + $0x588] ss:$16 sps:$4 sm:$0xff]   ;;  %v4657_v36 = vld [vmem:[%s5996_s1 + $0x5a4] ss:$16 sps:$4 sm:$0xff]  }
  0x9d   : > { %1772 = vmatprep.subr.bf16.mxu0 %v4588_v41  ;;  %1825 = vmatprep.subr.bf16.mxu1 %v4591_v42  ;;  %v4660_v41 = vld [vmem:[%s5996_s1 + $0x5ac] ss:$16 sps:$4 sm:$0xff]   ;;  %v4655_v42 = vld [vmem:[%s5996_s1 + $0x5a0] ss:$16 sps:$4 sm:$0xff]  }
  0x9f   : > { %1456 = vmatmul.mubr.bf16.gmra.mrb[4].mxu0 %v4616_v44  ;;  %1509 = vmatmul.mubr.bf16.gmra.mrb[4].mxu1 %v4616_v44  ;;  %v4663_v44 = vld [vmem:[%s5996_s1 + $0x5c4] ss:$16 sps:$4 sm:$0xff]  }
  0xa0   : > { %1773 = vmatpush1.bf16.msra.mxu0 %v4586_v43  ;;  %1826 = vmatpush1.bf16.msra.mxu1 %v4589_v45  ;;  %v4658_v43 = vld [vmem:[%s5996_s1 + $0x5a8] ss:$16 sps:$4 sm:$0xff]   ;;  %v4666_v45 = vld [vmem:[%s5996_s1 + $0x5cc] ss:$16 sps:$4 sm:$0xff]  }
  0xa1   : > { %1774 = vmatprep.subr.bf16.mxu0 %v4594_v46  ;;  %1827 = vmatprep.subr.bf16.mxu1 %v4597_v47  ;;  %v1890_v46 = vld [vmem:[#allocation2 + $0x8] sm:$0xe]  ;;  %v4661_v47 = vld [vmem:[%s5996_s1 + $0x5c0] ss:$16 sps:$4 sm:$0xff]  }
  0xa2   : > { %1800 = vmatprep.mubr.bf16.mxu0 %v4867_v4  ;;  %1853 = vmatprep.mubr.bf16.mxu1 %v4867_v4 }
  0xa4   : > { %1775 = vmatpush1.bf16.msra.mxu0 %v4592_v48  ;;  %1828 = vmatpush1.bf16.msra.mxu1 %v4595_v49  ;;  %v4664_v48 = vld [vmem:[%s5996_s1 + $0x5c8] ss:$16 sps:$4 sm:$0xff]   ;;  %v4670_v49 = vld [vmem:[%s5996_s1 + $0x5e4] ss:$16 sps:$4 sm:$0xff]  }
  0xa5   : > { %1776 = vmatprep.subr.bf16.mxu0 %v4600_v50  ;;  %1829 = vmatprep.subr.bf16.mxu1 %v4603_v51  ;;  %v3957_v50 = vcombine.low %v1890_v46, %v5414_v53  ;;  %v4673_v51 = vld [vmem:[%s5996_s1 + $0x5ec] ss:$16 sps:$4 sm:$0xff]   ;;  %v4676_v53 = vld [vmem:[%s5996_s1 + $0x604] ss:$16 sps:$4 sm:$0xff]  }
  0xa6   : > { %v4750_v46 = vld [vmem:[%s5996_s1 + $0x784] ss:$16 sps:$4 sm:$0xff]  }
  0xa8   : > { %1777 = vmatpush1.bf16.msra.mxu0 %v4598_v54  ;;  %1830 = vmatpush1.bf16.msra.mxu1 %v4601_v55  ;;  %v4671_v54 = vld [vmem:[%s5996_s1 + $0x5e8] ss:$16 sps:$4 sm:$0xff]   ;;  %v1927_v55 = vrot.slane %v3957_v50, 1  ;;  %v4748_v50 = vld [vmem:[%s5996_s1 + $0x780] ss:$16 sps:$4 sm:$0xff]  }
  0xa9   : > { %1778 = vmatprep.subr.bf16.mxu0 %v4606_v56  ;;  %1831 = vmatprep.subr.bf16.mxu1 %v4609_v58  ;;  %v1928_v56 = vrot.slane %v5440_v62, 1  ;;  %v4674_v58 = vld [vmem:[%s5996_s1 + $0x600] ss:$16 sps:$4 sm:$0xff]   ;;  %v4686_v62 = vld [vmem:[%s5996_s1 + $0x62c] ss:$16 sps:$4 sm:$0xff]  }
  0xac   : > { %1779 = vmatpush1.bf16.msra.mxu0 %v4604_v59  ;;  %1832 = vmatpush1.bf16.msra.mxu1 %v4607_v60  ;;  %v4677_v59 = vld [vmem:[%s5996_s1 + $0x608] ss:$16 sps:$4 sm:$0xff]   ;;  %v1929_v60 = vsel %vm914_vm1, %v1927_v55, %v1928_v56  ;;  %v4754_v55 = vld [vmem:[%s5996_s1 + $0x7a0] ss:$16 sps:$4 sm:$0xff]  }
  0xad   : > { %1780 = vmatprep.subr.bf16.mxu0 %v4612_v61  ;;  %1833 = vmatprep.subr.bf16.mxu1 %v4615_v1  ;;  %v4683_v61 = vld [vmem:[%s5996_s1 + $0x624] ss:$16 sps:$4 sm:$0xff]   ;;  %v4684_v1 = vld [vmem:[%s5996_s1 + $0x628] ss:$16 sps:$4 sm:$0xff]  }
  0xb0   : > { %1781 = vmatpush1.bf16.msra.mxu0 %v4610_v2  ;;  %1834 = vmatpush1.bf16.msra.mxu1 %v4613_v3  ;;  %v4689_v2 = vld [vmem:[%s5996_s1 + $0x644] ss:$16 sps:$4 sm:$0xff]   ;;  %v1930_v3 = vrot.slane %v5467_v14, 1  ;;  %v4699_v14 = vld [vmem:[%s5996_s1 + $0x680] ss:$16 sps:$4 sm:$0xff]  }
  0xb1   : > { %1782 = vmatprep.subr.bf16.mxu0 %v4619_v5  ;;  %1835 = vmatprep.subr.bf16.mxu1 %v4622_v9  ;;  %v4692_v5 = vld [vmem:[%s5996_s1 + $0x64c] ss:$16 sps:$4 sm:$0xff]   ;;  %v4695_v9 = vld [vmem:[%s5996_s1 + $0x664] ss:$16 sps:$4 sm:$0xff]  }
  0xb2   : > { %v1931_v8 = vsel %vm914_vm1, %v1928_v56, %v1930_v3  ;;  %v4757_v56 = vld [vmem:[%s5996_s1 + $0x7a8] ss:$16 sps:$4 sm:$0xff]   ;;  %v4769_v3 = vld [vmem:[%s5996_s1 + $0x7e4] ss:$16 sps:$4 sm:$0xff]  }
  0xb4   : > { %1783 = vmatpush1.bf16.msra.mxu0 %v4617_v10  ;;  %1836 = vmatpush1.bf16.msra.mxu1 %v4620_v11  ;;  %v4698_v10 = vld [vmem:[%s5996_s1 + $0x66c] ss:$16 sps:$4 sm:$0xff]   ;;  %v4693_v11 = vld [vmem:[%s5996_s1 + $0x660] ss:$16 sps:$4 sm:$0xff]  }
  0xb5   : > { %2094 = vmatprep.subr.bf16.mxu0 %v4625_v63  ;;  %2147 = vmatprep.subr.bf16.mxu1 %v4628_v15  ;;  %v4696_v63 = vld [vmem:[%s5996_s1 + $0x668] ss:$16 sps:$4 sm:$0xff]  }
  0xb6   : > { %v4702_v15 = vld [vmem:[%s5996_s1 + $0x688] ss:$16 sps:$4 sm:$0xff]  }
  0xb7   : > { %1801 = vmatmul.mubr.bf16.vlgmr.msra.gmra.mrb[0].mxu0 %v1597_v18  ;;  %1854 = vmatmul.mubr.bf16.vlgmr.msra.gmra.mrb[0].mxu1 %v1597_v18  ;;  %v4708_v18 = vld [vmem:[%s5996_s1 + $0x6a8] ss:$16 sps:$4 sm:$0xff]  }
  0xb8   : > { %2095 = vmatpush1.bf16.msra.mxu0 %v4623_v38  ;;  %2148 = vmatpush1.bf16.msra.mxu1 %v4626_v16  ;;  %v4707_v38 = vld [vmem:[%s5996_s1 + $0x6a4] ss:$16 sps:$4 sm:$0xff]   ;;  %v4710_v16 = vld [vmem:[%s5996_s1 + $0x6ac] ss:$16 sps:$4 sm:$0xff]  }
  0xb9   : > { %2096 = vmatprep.subr.bf16.mxu0 %v4633_v17  ;;  %2149 = vmatprep.subr.bf16.mxu1 %v4636_v21  ;;  %v4705_v17 = vld [vmem:[%s5996_s1 + $0x6a0] ss:$16 sps:$4 sm:$0xff]  }
  0xba   : > { %1810 = vmatprep.mubr.bf16.mxu0 %v4867_v4  ;;  %1863 = vmatprep.mubr.bf16.mxu1 %v4867_v4  ;;  %v4711_v21 = vld [vmem:[%s5996_s1 + $0x6c0] ss:$16 sps:$4 sm:$0xff]  }
  0xbc   : > { %2097 = vmatpush1.bf16.msra.mxu0 %v4631_v22  ;;  %2150 = vmatpush1.bf16.msra.mxu1 %v4634_v23  ;;  %v4714_v22 = vld [vmem:[%s5996_s1 + $0x6c8] ss:$16 sps:$4 sm:$0xff]   ;;  %v4719_v23 = vld [vmem:[%s5996_s1 + $0x6e4] ss:$16 sps:$4 sm:$0xff]  }
  0xbd   : > { %2098 = vmatprep.subr.bf16.mxu0 %v4639_v24  ;;  %2151 = vmatprep.subr.bf16.mxu1 %v4642_v27  ;;  %v4722_v24 = vld [vmem:[%s5996_s1 + $0x6ec] ss:$16 sps:$4 sm:$0xff]   ;;  %v4725_v27 = vld [vmem:[%s5996_s1 + $0x704] ss:$16 sps:$4 sm:$0xff]  }
  0xbf   : > { %1811 = vmatmul.mubr.bf16.gmra.mrb[4].mxu0 %v1605_v31  ;;  %1864 = vmatmul.mubr.bf16.gmra.mrb[4].mxu1 %v1605_v31  ;;  %v4726_v31 = vld [vmem:[%s5996_s1 + $0x708] ss:$16 sps:$4 sm:$0xff]  }
  0xc0   : > { %2099 = vmatpush1.bf16.msra.mxu0 %v4637_v28  ;;  %2152 = vmatpush1.bf16.msra.mxu1 %v4640_v29  ;;  %v4728_v28 = vld [vmem:[%s5996_s1 + $0x70c] ss:$16 sps:$4 sm:$0xff]   ;;  %v4729_v29 = vld [vmem:[#allocation2 + $0x10] sm:$0xff]  }
  0xc1   : > { %2100 = vmatprep.subr.bf16.mxu0 %v4645_v30  ;;  %2153 = vmatprep.subr.bf16.mxu1 %v4648_v32  ;;  %v4723_v30 = vld [vmem:[%s5996_s1 + $0x700] ss:$16 sps:$4 sm:$0xff]   ;;  %v4732_v32 = vld [vmem:[%s5996_s1 + $0x724] ss:$16 sps:$4 sm:$0xff]  }
  0xc2   : > { %2126 = vmatprep.mubr.bf16.mxu0 %v4867_v4  ;;  %2179 = vmatprep.mubr.bf16.mxu1 %v4867_v4 }
  0xc4   : > { %2101 = vmatpush1.bf16.msra.mxu0 %v4643_v33  ;;  %2154 = vmatpush1.bf16.msra.mxu1 %v4646_v34  ;;  %v4735_v33 = vld [vmem:[%s5996_s1 + $0x72c] ss:$16 sps:$4 sm:$0xff]   ;;  %v4730_v34 = vld [vmem:[%s5996_s1 + $0x720] ss:$16 sps:$4 sm:$0xff]  }
  0xc5   : > { %2102 = vmatprep.subr.bf16.mxu0 %v4651_v35  ;;  %2155 = vmatprep.subr.bf16.mxu1 %v4654_v37  ;;  %v4733_v35 = vld [vmem:[%s5996_s1 + $0x728] ss:$16 sps:$4 sm:$0xff]   ;;  %v4738_v37 = vld [vmem:[%s5996_s1 + $0x744] ss:$16 sps:$4 sm:$0xff]  }
  0xc8   : > { %2103 = vmatpush1.bf16.msra.mxu0 %v4649_v39  ;;  %2156 = vmatpush1.bf16.msra.mxu1 %v4652_v40  ;;  %v4741_v39 = vld [vmem:[%s5996_s1 + $0x74c] ss:$16 sps:$4 sm:$0xff]  }
  0xc9   : > { %2104 = vmatprep.subr.bf16.mxu0 %v4657_v36  ;;  %2157 = vmatprep.subr.bf16.mxu1 %v4660_v41  ;;  %v4766_v40 = vld [vmem:[#allocation2 + $0x18] sm:$0xff]   ;;  %v4736_v36 = vld [vmem:[%s5996_s1 + $0x740] ss:$16 sps:$4 sm:$0xff]  }
  0xca   : > { %v4739_v41 = vld [vmem:[%s5996_s1 + $0x748] ss:$16 sps:$4 sm:$0xff]  }
  0xcc   : > { %2105 = vmatpush1.bf16.msra.mxu0 %v4655_v42  ;;  %2158 = vmatpush1.bf16.msra.mxu1 %v4658_v43  ;;  %v4744_v42 = vld [vmem:[%s5996_s1 + $0x764] ss:$16 sps:$4 sm:$0xff]   ;;  %v4747_v43 = vld [vmem:[%s5996_s1 + $0x76c] ss:$16 sps:$4 sm:$0xff]  }
  0xcd   : > { %2106 = vmatprep.subr.bf16.mxu0 %v4663_v44  ;;  %2159 = vmatprep.subr.bf16.mxu1 %v4666_v45  ;;  %v4742_v44 = vld [vmem:[%s5996_s1 + $0x760] ss:$16 sps:$4 sm:$0xff]   ;;  %v4745_v45 = vld [vmem:[%s5996_s1 + $0x768] ss:$16 sps:$4 sm:$0xff]  }
  0xd0   : > { %2107 = vmatpush1.bf16.msra.mxu0 %v4661_v47  ;;  %2160 = vmatpush1.bf16.msra.mxu1 %v4664_v48  ;;  %v4753_v47 = vld [vmem:[%s5996_s1 + $0x78c] ss:$16 sps:$4 sm:$0xff]   ;;  %v2547_v48 = vld [vmem:[#allocation2 + $0x10] sm:$0xf] }
  0xd1   : > { %2108 = vmatprep.subr.bf16.mxu0 %v4670_v49  ;;  %2161 = vmatprep.subr.bf16.mxu1 %v4673_v51  ;;  %v5731_v49 = vld [vmem:[#allocation2 + $0x14] sm:$0xf]  ;;  %v4751_v51 = vld [vmem:[%s5996_s1 + $0x788] ss:$16 sps:$4 sm:$0xff]  }
  0xd4   : > { %2109 = vmatpush1.bf16.msra.mxu0 %v4668_v52  ;;  %2162 = vmatpush1.bf16.msra.mxu1 %v4671_v54  ;;  %v4088_v52 = vcombine.low %v2547_v48, %v5731_v49  ;;  %v4756_v54 = vld [vmem:[%s5996_s1 + $0x7a4] ss:$16 sps:$4 sm:$0xff]   ;;  %v4818_v48 = vld [vmem:[%s5996_s1 + $0x8e0] ss:$16 sps:$4 sm:$0xff]  }
  0xd5   : > { %2425 = vmatprep.subr.bf16.mxu0 %v4676_v53  ;;  %2478 = vmatprep.subr.bf16.mxu1 %v4679_v57  ;;  %v4759_v53 = vld [vmem:[%s5996_s1 + $0x7ac] ss:$16 sps:$4 sm:$0xff]  }
  0xd6   : > { %v5754_v57 = vld [vmem:[#allocation2 + $0x18] sm:$0xff]  }
  0xd7   : > { %2127 = vmatmul.mubr.bf16.vlgmr.msra.gmra.mrb[0].mxu0 %v1929_v60  ;;  %2180 = vmatmul.mubr.bf16.vlgmr.msra.gmra.mrb[0].mxu1 %v1929_v60  ;;  %v4765_v60 = vld [vmem:[%s5996_s1 + $0x7cc] ss:$16 sps:$4 sm:$0xff]  }
  0xd8   : > { %2426 = vmatpush1.bf16.msra.mxu0 %v4674_v58  ;;  %2479 = vmatpush1.bf16.msra.mxu1 %v4677_v59  ;;  %v2601_v58 = vshll.u32 %v4088_v52, 16  ;;  %v4762_v59 = vld [vmem:[%s5996_s1 + $0x7c4] ss:$16 sps:$4 sm:$0xff]  }
  0xd9   : > { %2427 = vmatprep.subr.bf16.mxu0 %v4683_v61  ;;  %2480 = vmatprep.subr.bf16.mxu1 %v4686_v62  ;;  %v4760_v61 = vld [vmem:[%s5996_s1 + $0x7c0] ss:$16 sps:$4 sm:$0xff]   ;;  %v4763_v62 = vld [vmem:[%s5996_s1 + $0x7c8] ss:$16 sps:$4 sm:$0xff]  }
  0xda   : > { %2136 = vmatprep.mubr.bf16.mxu0 %v4867_v4  ;;  %2189 = vmatprep.mubr.bf16.mxu1 %v4867_v4 }
  0xdc   : > { %2428 = vmatpush1.bf16.msra.mxu0 %v4681_v0  ;;  %2481 = vmatpush1.bf16.msra.mxu1 %v4684_v1  ;;  %v2599_v0 = vshrl.u32 %v4088_v52, 16  ;;  %v2603_v1 = vrot.slane %v2601_v58, 1 }
  0xdd   : > { %2429 = vmatprep.subr.bf16.mxu0 %v4689_v2  ;;  %2482 = vmatprep.subr.bf16.mxu1 %v4692_v5  ;;  %v2606_v2 = vshll.u32 %v5754_v57, 16  ;;  %v4772_v5 = vld [vmem:[%s5996_s1 + $0x7ec] ss:$16 sps:$4 sm:$0xff]  }
  0xdf   : > { %2137 = vmatmul.mubr.bf16.gmra.mrb[4].mxu0 %v1931_v8  ;;  %2190 = vmatmul.mubr.bf16.gmra.mrb[4].mxu1 %v1931_v8  ;;  %v2604_v8 = vor.u32 %v2603_v1, %v2599_v0 }
  0xe0   : > { %2430 = vmatpush1.bf16.msra.mxu0 %v4687_v6  ;;  %2483 = vmatpush1.bf16.msra.mxu1 %v4690_v7  ;;  %v4767_v6 = vld [vmem:[%s5996_s1 + $0x7e0] ss:$16 sps:$4 sm:$0xff]   ;;  %v4770_v7 = vld [vmem:[%s5996_s1 + $0x7e8] ss:$16 sps:$4 sm:$0xff]  }
  0xe1   : > { %2431 = vmatprep.subr.bf16.mxu0 %v4695_v9  ;;  %2484 = vmatprep.subr.bf16.mxu1 %v4698_v10  ;;  %v2608_v9 = vrot.slane %v2606_v2, 1  ;;  %v5781_v10 = vld [vmem:[#allocation2 + $0x20] ss:$0 sps:$4 sm:$0x11]  }
  0xe2   : > { %2457 = vmatprep.mubr.bf16.mxu0 %v4867_v4  ;;  %2510 = vmatprep.mubr.bf16.mxu1 %v4867_v4 }
  0xe4   : > { %2432 = vmatpush1.bf16.msra.mxu0 %v4693_v11  ;;  %2485 = vmatpush1.bf16.msra.mxu1 %v4696_v63  ;;  %v4775_v11 = vld [vmem:[%s5996_s1 + $0x804] ss:$16 sps:$4 sm:$0xff]   ;;  %v4778_v63 = vld [vmem:[%s5996_s1 + $0x80c] ss:$16 sps:$4 sm:$0xff]  }
  0xe5   : > { %2433 = vmatprep.subr.bf16.mxu0 %v4701_v12  ;;  %2486 = vmatprep.subr.bf16.mxu1 %v4704_v13  ;;  %v4773_v12 = vld [vmem:[%s5996_s1 + $0x800] ss:$16 sps:$4 sm:$0xff]   ;;  %v4776_v13 = vld [vmem:[%s5996_s1 + $0x808] ss:$16 sps:$4 sm:$0xff]  }
  0xe8   : > { %2434 = vmatpush1.bf16.msra.mxu0 %v4699_v14  ;;  %2487 = vmatpush1.bf16.msra.mxu1 %v4702_v15  ;;  %v2609_v14 = vsel %vm320_vm0, %v2604_v8, %v2608_v9  ;;  %v2610_v15 = vshrl.u32 %v5754_v57, 16 }
  0xe9   : > { %2435 = vmatprep.subr.bf16.mxu0 %v4707_v38  ;;  %2488 = vmatprep.subr.bf16.mxu1 %v4710_v16  ;;  %v2614_v38 = vshll.u32 %v5781_v10, 16  ;;  %v4783_v16 = vld [vmem:[%s5996_s1 + $0x824] ss:$16 sps:$4 sm:$0xff]  }
  0xec   : > { %2436 = vmatpush1.bf16.msra.mxu0 %v4705_v17  ;;  %2489 = vmatpush1.bf16.msra.mxu1 %v4708_v18  ;;  %v4786_v17 = vld [vmem:[%s5996_s1 + $0x82c] ss:$16 sps:$4 sm:$0xff]   ;;  %v4781_v18 = vld [vmem:[%s5996_s1 + $0x820] ss:$16 sps:$4 sm:$0xff]  }
  0xed   : > { %2437 = vmatprep.subr.bf16.mxu0 %v4713_v19  ;;  %2490 = vmatprep.subr.bf16.mxu1 %v4716_v20  ;;  %v4784_v19 = vld [vmem:[%s5996_s1 + $0x828] ss:$16 sps:$4 sm:$0xff]   ;;  %v2612_v20 = vor.u32 %v2610_v15, %v2608_v9 }
  0xf0   : > { %2438 = vmatpush1.bf16.msra.mxu0 %v4711_v21  ;;  %2491 = vmatpush1.bf16.msra.mxu1 %v4714_v22  ;;  %v2616_v21 = vrot.slane %v2614_v38, 1  ;;  %v4789_v22 = vld [vmem:[%s5996_s1 + $0x844] ss:$16 sps:$4 sm:$0xff]  }
  0xf1   : > { %2439 = vmatprep.subr.bf16.mxu0 %v4719_v23  ;;  %2492 = vmatprep.subr.bf16.mxu1 %v4722_v24  ;;  %v4792_v23 = vld [vmem:[%s5996_s1 + $0x84c] ss:$16 sps:$4 sm:$0xff]   ;;  %v4787_v24 = vld [vmem:[%s5996_s1 + $0x840] ss:$16 sps:$4 sm:$0xff]  }
  0xf4   : > { %2440 = vmatpush1.bf16.msra.mxu0 %v4717_v25  ;;  %2493 = vmatpush1.bf16.msra.mxu1 %v4720_v26  ;;  %v4790_v25 = vld [vmem:[%s5996_s1 + $0x848] ss:$16 sps:$4 sm:$0xff]   ;;  %v2617_v26 = vsel %vm320_vm0, %v2612_v20, %v2616_v21 }
  0xf5   : > { %2780 = vmatprep.subr.bf16.mxu0 %v4725_v27  ;;  %2833 = vmatprep.subr.bf16.mxu1 %v4728_v28  ;;  %v4795_v27 = vld [vmem:[%s5996_s1 + $0x864] ss:$16 sps:$4 sm:$0xff]   ;;  %v4798_v28 = vld [vmem:[%s5996_s1 + $0x86c] ss:$16 sps:$4 sm:$0xff]  }
  0xf7   : > { %2458 = vmatmul.mubr.bf16.vlgmr.msra.gmra.mrb[0].mxu0 %v4729_v29  ;;  %2511 = vmatmul.mubr.bf16.vlgmr.msra.gmra.mrb[0].mxu1 %v4729_v29  ;;  %v4793_v29 = vld [vmem:[%s5996_s1 + $0x860] ss:$16 sps:$4 sm:$0xff]  }
  0xf8   : > { %2781 = vmatpush1.bf16.msra.mxu0 %v4723_v30  ;;  %2834 = vmatpush1.bf16.msra.mxu1 %v4726_v31  ;;  %v4796_v30 = vld [vmem:[%s5996_s1 + $0x868] ss:$16 sps:$4 sm:$0xff]   ;;  %v4801_v31 = vld [vmem:[%s5996_s1 + $0x884] ss:$16 sps:$4 sm:$0xff]  }
  0xf9   : > { %2782 = vmatprep.subr.bf16.mxu0 %v4732_v32  ;;  %2835 = vmatprep.subr.bf16.mxu1 %v4735_v33  ;;  %v4804_v32 = vld [vmem:[%s5996_s1 + $0x88c] ss:$16 sps:$4 sm:$0xff]   ;;  %v4799_v33 = vld [vmem:[%s5996_s1 + $0x880] ss:$16 sps:$4 sm:$0xff]  }
  0xfa   : > { %2467 = vmatprep.mubr.bf16.mxu0 %v4867_v4  ;;  %2520 = vmatprep.mubr.bf16.mxu1 %v4867_v4 }
  0xfc   : > { %2783 = vmatpush1.bf16.msra.mxu0 %v4730_v34  ;;  %2836 = vmatpush1.bf16.msra.mxu1 %v4733_v35  ;;  %v4802_v34 = vld [vmem:[%s5996_s1 + $0x888] ss:$16 sps:$4 sm:$0xff]   ;;  %v4807_v35 = vld [vmem:[%s5996_s1 + $0x8a4] ss:$16 sps:$4 sm:$0xff]  }
  0xfd   : > { %2784 = vmatprep.subr.bf16.mxu0 %v4738_v37  ;;  %2837 = vmatprep.subr.bf16.mxu1 %v4741_v39  ;;  %v4810_v37 = vld [vmem:[%s5996_s1 + $0x8ac] ss:$16 sps:$4 sm:$0xff]   ;;  %v4805_v39 = vld [vmem:[%s5996_s1 + $0x8a0] ss:$16 sps:$4 sm:$0xff]  }
  0xff   : > { %2468 = vmatmul.mubr.bf16.gmra.mrb[4].mxu0 %v4766_v40  ;;  %2521 = vmatmul.mubr.bf16.gmra.mrb[4].mxu1 %v4766_v40  ;;  %v4808_v40 = vld [vmem:[%s5996_s1 + $0x8a8] ss:$16 sps:$4 sm:$0xff]  }
 0x100   : > { %2785 = vmatpush1.bf16.msra.mxu0 %v4736_v36  ;;  %2838 = vmatpush1.bf16.msra.mxu1 %v4739_v41  ;;  %v4814_v36 = vld [vmem:[%s5996_s1 + $0x8c4] ss:$16 sps:$4 sm:$0xff]   ;;  %v4817_v41 = vld [vmem:[%s5996_s1 + $0x8cc] ss:$16 sps:$4 sm:$0xff]  }
 0x101   : > { %2786 = vmatprep.subr.bf16.mxu0 %v4744_v42  ;;  %2839 = vmatprep.subr.bf16.mxu1 %v4747_v43  ;;  %v2902_v42 = vld [vmem:[#allocation2 + $0x10] sm:$0xe] }
 0x102   : > { %2812 = vmatprep.mubr.bf16.mxu0 %v4867_v4  ;;  %2865 = vmatprep.mubr.bf16.mxu1 %v4867_v4  ;;  %v4812_v43 = vld [vmem:[%s5996_s1 + $0x8c0] ss:$16 sps:$4 sm:$0xff]  }
 0x104   : > { %2787 = vmatpush1.bf16.msra.mxu0 %v4742_v44  ;;  %2840 = vmatpush1.bf16.msra.mxu1 %v4745_v45  ;;  %v4815_v44 = vld [vmem:[%s5996_s1 + $0x8c8] ss:$16 sps:$4 sm:$0xff]   ;;  %v4155_v45 = vcombine.low %v2902_v42, %v5731_v49 }
 0x105   : > { %2788 = vmatprep.subr.bf16.mxu0 %v4750_v46  ;;  %2841 = vmatprep.subr.bf16.mxu1 %v4753_v47  ;;  %v4820_v46 = vld [vmem:[%s5996_s1 + $0x8e4] ss:$16 sps:$4 sm:$0xff]   ;;  %v4823_v47 = vld [vmem:[%s5996_s1 + $0x8ec] ss:$16 sps:$4 sm:$0xff]   ;;  %v4821_v49 = vld [vmem:[%s5996_s1 + $0x8e8] ss:$16 sps:$4 sm:$0xff]  }
 0x108   : > { %2789 = vmatpush1.bf16.msra.mxu0 %v4748_v50  ;;  %2842 = vmatpush1.bf16.msra.mxu1 %v4751_v51  ;;  %v2939_v50 = vrot.slane %v4155_v45, 1  ;;  %v2940_v51 = vrot.slane %v5754_v57, 1 }
 0x109   : > { %2790 = vmatprep.subr.bf16.mxu0 %v4756_v54  ;;  %2843 = vmatprep.subr.bf16.mxu1 %v4759_v53  ;;  %v2942_v54 = vrot.slane %v5781_v10, 1 }
 0x10a   : > { %v2941_v52 = vsel %vm914_vm1, %v2939_v50, %v2940_v51 }
 0x10b   : > { %v2943_v53 = vsel %vm914_vm1, %v2940_v51, %v2942_v54 }
 0x10c   : > { %2791 = vmatpush1.bf16.msra.mxu0 %v4754_v55  ;;  %2844 = vmatpush1.bf16.msra.mxu1 %v4757_v56  ;;  %v3230_v55 = vlaneseq }
 0x10d   : > { %2792 = vmatprep.subr.bf16.mxu0 %v4762_v59  ;;  %2845 = vmatprep.subr.bf16.mxu1 %v4765_v60  ;;  %v3228_v59 = vld [vmem:[%s5997_s2] sm:$0xf] }
 0x10e   : > { %v3231_v56 = vshrl.u32 %v3230_v55, 7 }
 0x110   : > { %2793 = vmatpush1.bf16.msra.mxu0 %v4760_v61  ;;  %2846 = vmatpush1.bf16.msra.mxu1 %v4763_v62  ;;  %v3232_v57 = vsub.s32 0, %v3231_v56  ;;  %v3240_v58 = vsub.s32 2, %v3231_v56  ;;  %v3236_v60 = vsub.s32 1, %v3231_v56  ;;  %v3244_v61 = vsub.s32 3, %v3231_v56 }
 0x111   : > { %2794 = vmatprep.subr.bf16.mxu0 %v4769_v3  ;;  %2847 = vmatprep.subr.bf16.mxu1 %v4772_v5 }
 0x112   : > { %v5900_v62 = vrot.slane %v3228_v59, %v3232_v57  ;;  %v5902_v0 = vrot.slane %v3228_v59, %v3240_v58  ;;  %v5904_v1 = vrot.slane %v3228_v59, %v3236_v60  ;;  %v5906_v2 = vrot.slane %v3228_v59, %v3244_v61 }
 0x114   : > { %2795 = vmatpush1.bf16.msra.mxu0 %v4767_v6  ;;  %2848 = vmatpush1.bf16.msra.mxu1 %v4770_v7 }
 0x115   : > { %3106 = vmatprep.subr.bf16.mxu0 %v4775_v11  ;;  %3159 = vmatprep.subr.bf16.mxu1 %v4778_v63 }
 0x117   : > { %2813 = vmatmul.mubr.bf16.vlgmr.msra.gmra.mrb[0].mxu0 %v2609_v14  ;;  %2866 = vmatmul.mubr.bf16.vlgmr.msra.gmra.mrb[0].mxu1 %v2609_v14 }
 0x118   : > { %3107 = vmatpush1.bf16.msra.mxu0 %v4773_v12  ;;  %3160 = vmatpush1.bf16.msra.mxu1 %v4776_v13 }
 0x119   : > { %3108 = vmatprep.subr.bf16.mxu0 %v4783_v16  ;;  %3161 = vmatprep.subr.bf16.mxu1 %v4786_v17 }
 0x11a   : > { %2822 = vmatprep.mubr.bf16.mxu0 %v4867_v4  ;;  %2875 = vmatprep.mubr.bf16.mxu1 %v4867_v4 }
 0x11c   : > { %3109 = vmatpush1.bf16.msra.mxu0 %v4781_v18  ;;  %3162 = vmatpush1.bf16.msra.mxu1 %v4784_v19 }
 0x11d   : > { %3110 = vmatprep.subr.bf16.mxu0 %v4789_v22  ;;  %3163 = vmatprep.subr.bf16.mxu1 %v4792_v23 }
 0x11f   : > { %2823 = vmatmul.mubr.bf16.gmra.mrb[4].mxu0 %v2617_v26  ;;  %2876 = vmatmul.mubr.bf16.gmra.mrb[4].mxu1 %v2617_v26 }
 0x120   : > { %3111 = vmatpush1.bf16.msra.mxu0 %v4787_v24  ;;  %3164 = vmatpush1.bf16.msra.mxu1 %v4790_v25 }
 0x121   : > { %3112 = vmatprep.subr.bf16.mxu0 %v4795_v27  ;;  %3165 = vmatprep.subr.bf16.mxu1 %v4798_v28 }
 0x122   : > { %3138 = vmatprep.mubr.bf16.mxu0 %v4867_v4  ;;  %3191 = vmatprep.mubr.bf16.mxu1 %v4867_v4 }
 0x124   : > { %3113 = vmatpush1.bf16.msra.mxu0 %v4793_v29  ;;  %3166 = vmatpush1.bf16.msra.mxu1 %v4796_v30 }
 0x125   : > { %3114 = vmatprep.subr.bf16.mxu0 %v4801_v31  ;;  %3167 = vmatprep.subr.bf16.mxu1 %v4804_v32 }
 0x128   : > { %3115 = vmatpush1.bf16.msra.mxu0 %v4799_v33  ;;  %3168 = vmatpush1.bf16.msra.mxu1 %v4802_v34 }
 0x129   : > { %3116 = vmatprep.subr.bf16.mxu0 %v4807_v35  ;;  %3169 = vmatprep.subr.bf16.mxu1 %v4810_v37 }
 0x12c   : > { %3117 = vmatpush1.bf16.msra.mxu0 %v4805_v39  ;;  %3170 = vmatpush1.bf16.msra.mxu1 %v4808_v40 }
 0x12d   : > { %3118 = vmatprep.subr.bf16.mxu0 %v4814_v36  ;;  %3171 = vmatprep.subr.bf16.mxu1 %v4817_v41 }
 0x130   : > { %3119 = vmatpush1.bf16.msra.mxu0 %v4812_v43  ;;  %3172 = vmatpush1.bf16.msra.mxu1 %v4815_v44 }
 0x131   : > { %3120 = vmatprep.subr.bf16.mxu0 %v4820_v46  ;;  %3173 = vmatprep.subr.bf16.mxu1 %v4823_v47 }
 0x134   : > { %3121 = vmatpush1.bf16.msra.mxu0 %v4818_v48  ;;  %3174 = vmatpush1.bf16.msra.mxu1 %v4821_v49 }
 0x137   : > { %3139 = vmatmul.mubr.bf16.vlgmr.msra.gmra.mrb[0].mxu0 %v2941_v52  ;;  %3192 = vmatmul.mubr.bf16.vlgmr.msra.gmra.mrb[0].mxu1 %v2941_v52 }
 0x138   : > { %3148 = vmatprep.mubr.bf16.mxu0 %v4867_v4  ;;  %3201 = vmatprep.mubr.bf16.mxu1 %v4867_v4  ;;  %v3266_v4 = vld [vmem:[%s5998_s3] sm:$0xf] }
 0x139   : > { %v5908_v3 = vrot.slane %v3266_v4, %v3232_v57  ;;  %v5910_v5 = vrot.slane %v3266_v4, %v3240_v58  ;;  %v5912_v8 = vrot.slane %v3266_v4, %v3236_v60  ;;  %v5914_v9 = vrot.slane %v3266_v4, %v3244_v61 }
 0x13f   : > { %3149 = vmatmul.mubr.bf16.gmra.mrb[4].mxu0 %v2943_v53  ;;  %3202 = vmatmul.mubr.bf16.gmra.mrb[4].mxu1 %v2943_v53 }
 0x20a   : > { %v3140_v6 = vpop.f32.mrb[0].mxu0  ;;  %v3193_v7 = vpop.f32.mrb[0].mxu1 }
 0x20b   : > { %v3250_v10 = vadd.f32 %v5900_v62, %v3140_v6  ;;  %v3252_v11 = vadd.f32 %v5902_v0, %v3193_v7  ;;  %v3142_v63 = vpop.f32.mrb[1].mxu0  ;;  %v3195_v12 = vpop.f32.mrb[1].mxu1 }
 0x20c   : > { %v3251_v13 = vadd.f32 %v5904_v1, %v3142_v63  ;;  %v3253_v14 = vadd.f32 %v5906_v2, %v3195_v12  ;;  %v3144_v15 = vpop.f32.mrb[2].mxu0  ;;  %v3197_v38 = vpop.f32.mrb[2].mxu1 }
 0x20d   : > { %v3288_v16 = vmul.f32 %v5908_v3, %v3250_v10  ;;  %v3290_v17 = vmul.f32 %v5910_v5, %v3252_v11  ;;  %v3254_v18 = vadd.f32 %v5900_v62, %v3144_v15  ;;  %v3256_v19 = vadd.f32 %v5902_v0, %v3197_v38  ;;  %v3146_v20 = vpop.f32.mrb[3].mxu0  ;;  %v3199_v21 = vpop.f32.mrb[3].mxu1 }
 0x20e   : > { %v3289_v22 = vmul.f32 %v5912_v8, %v3251_v13  ;;  %v3291_v23 = vmul.f32 %v5914_v9, %v3253_v14  ;;  %v3255_v24 = vadd.f32 %v5904_v1, %v3146_v20  ;;  %v3257_v25 = vadd.f32 %v5906_v2, %v3199_v21 }
 0x20f   : > { %v3304_v26 = vadd.f32 512.0, %v3288_v16  ;;  %v3306_v27 = vadd.f32 512.0, %v3290_v17  ;;  %v3292_v28 = vmul.f32 %v5908_v3, %v3254_v18  ;;  %v3294_v29 = vmul.f32 %v5910_v5, %v3256_v19 }
 0x210   : > { %v3305_v30 = vadd.f32 512.0, %v3289_v22  ;;  %v3307_v31 = vadd.f32 512.0, %v3291_v23  ;;  %v3293_v32 = vmul.f32 %v5912_v8, %v3255_v24  ;;  %v3295_v33 = vmul.f32 %v5914_v9, %v3257_v25 }
 0x211   : > { %v3320_v34 = vmul.f32 0.0009765625, %v3304_v26  ;;  %v3322_v35 = vmul.f32 0.0009765625, %v3306_v27  ;;  %v3308_v37 = vadd.f32 512.0, %v3292_v28  ;;  %v3310_v39 = vadd.f32 512.0, %v3294_v29 }
 0x212   : > { %v3321_v40 = vmul.f32 0.0009765625, %v3305_v30  ;;  %v3323_v36 = vmul.f32 0.0009765625, %v3307_v31  ;;  %v3309_v41 = vadd.f32 512.0, %v3293_v32  ;;  %v3311_v42 = vadd.f32 512.0, %v3295_v33  ;;  %v5932_v43 = vpop.f32.mrb[4].mxu0  ;;  %v5934_v44 = vpop.f32.mrb[4].mxu1 }
 0x213   : > { %v3336_v45 = vfloor.f32 %v3320_v34  ;;  %v3338_v46 = vfloor.f32 %v3322_v35  ;;  %v3324_v47 = vmul.f32 0.0009765625, %v3308_v37  ;;  %v3326_v48 = vmul.f32 0.0009765625, %v3310_v39  ;;  %v5936_v49 = vpop.f32.mrb[5].mxu0  ;;  %v5938_v50 = vpop.f32.mrb[5].mxu1 }
 0x214   : > { %v3337_v51 = vfloor.f32 %v3321_v40  ;;  %v3339_v52 = vfloor.f32 %v3323_v36  ;;  %v3325_v54 = vmul.f32 0.0009765625, %v3309_v41  ;;  %v3327_v53 = vmul.f32 0.0009765625, %v3311_v42  ;;  %v5940_v55 = vpop.f32.mrb[6].mxu0  ;;  %v5942_v56 = vpop.f32.mrb[6].mxu1 }
 0x215   : > { %v3352_v57 = vmax.f32 %v3336_v45, 0.0  ;;  %v3354_v58 = vmax.f32 %v3338_v46, 0.0  ;;  %v3340_v59 = vfloor.f32 %v3324_v47  ;;  %v3342_v60 = vfloor.f32 %v3326_v48  ;;  %v5944_v61 = vpop.f32.mrb[7].mxu0  ;;  %v5946_v4 = vpop.f32.mrb[7].mxu1 }
 0x216   : > { %v3353_v6 = vmax.f32 %v3337_v51, 0.0  ;;  %v3355_v7 = vmax.f32 %v3339_v52, 0.0  ;;  %v3341_v10 = vfloor.f32 %v3325_v54  ;;  %v3343_v11 = vfloor.f32 %v3327_v53 }
 0x217   : > { %v3368_v63 = vmin.f32 %v3352_v57, 48.0  ;;  %v3370_v12 = vmin.f32 %v3354_v58, 48.0  ;;  %v3356_v13 = vmax.f32 %v3340_v59, 0.0  ;;  %v3358_v14 = vmax.f32 %v3342_v60, 0.0 }
 0x218   : > { %v3369_v15 = vmin.f32 %v3353_v6, 48.0  ;;  %v3371_v38 = vmin.f32 %v3355_v7, 48.0  ;;  %v3357_v16 = vmax.f32 %v3341_v10, 0.0  ;;  %v3359_v17 = vmax.f32 %v3343_v11, 0.0 }
 0x219   : > { %v3384_v18 = vmul.f32 180000.0, %v3368_v63  ;;  %v3386_v19 = vmul.f32 180000.0, %v3370_v12  ;;  %v3372_v20 = vmin.f32 %v3356_v13, 48.0  ;;  %v3374_v21 = vmin.f32 %v3358_v14, 48.0 }
 0x21a   : > { %v3385_v22 = vmul.f32 180000.0, %v3369_v15  ;;  %v3387_v23 = vmul.f32 180000.0, %v3371_v38  ;;  %v3373_v24 = vmin.f32 %v3357_v16, 48.0  ;;  %v3375_v25 = vmin.f32 %v3359_v17, 48.0 }
 0x21b   : > { %v3400_v26 = vadd.f32 1048576.0, %v3384_v18  ;;  %v3402_v27 = vadd.f32 1048576.0, %v3386_v19  ;;  %v3388_v28 = vmul.f32 180000.0, %v3372_v20  ;;  %v3390_v29 = vmul.f32 180000.0, %v3374_v21 }
 0x21c   : > { %v3401_v30 = vadd.f32 1048576.0, %v3385_v22  ;;  %v3403_v31 = vadd.f32 1048576.0, %v3387_v23  ;;  %v3389_v32 = vmul.f32 180000.0, %v3373_v24  ;;  %v3391_v33 = vmul.f32 180000.0, %v3375_v25 }
 0x21d   : > { %v3416_v34 = vmul.f32 4.7683716e-07, %v3400_v26  ;;  %v3418_v35 = vmul.f32 4.7683716e-07, %v3402_v27  ;;  %v3404_v37 = vadd.f32 1048576.0, %v3388_v28  ;;  %v3406_v39 = vadd.f32 1048576.0, %v3390_v29 }
 0x21e   : > { %v3417_v40 = vmul.f32 4.7683716e-07, %v3401_v30  ;;  %v3419_v36 = vmul.f32 4.7683716e-07, %v3403_v31  ;;  %v3405_v41 = vadd.f32 1048576.0, %v3389_v32  ;;  %v3407_v42 = vadd.f32 1048576.0, %v3391_v33 }
 0x21f   : > { %v3432_v45 = vfloor.f32 %v3416_v34  ;;  %v3434_v46 = vfloor.f32 %v3418_v35  ;;  %v3420_v47 = vmul.f32 4.7683716e-07, %v3404_v37  ;;  %v3422_v48 = vmul.f32 4.7683716e-07, %v3406_v39 }
 0x220   : > { %v3433_v51 = vfloor.f32 %v3417_v40  ;;  %v3435_v52 = vfloor.f32 %v3419_v36  ;;  %v3421_v54 = vmul.f32 4.7683716e-07, %v3405_v41  ;;  %v3423_v53 = vmul.f32 4.7683716e-07, %v3407_v42 }
 0x221   : > { %v3448_v57 = vmul.f32 0.5, %v3432_v45  ;;  %v3450_v58 = vmul.f32 0.5, %v3434_v46  ;;  %v3436_v59 = vfloor.f32 %v3420_v47  ;;  %v3438_v60 = vfloor.f32 %v3422_v48 }
 0x222   : > { %v3449_v6 = vmul.f32 0.5, %v3433_v51  ;;  %v3451_v7 = vmul.f32 0.5, %v3435_v52  ;;  %v3437_v10 = vfloor.f32 %v3421_v54  ;;  %v3439_v11 = vfloor.f32 %v3423_v53 }
 0x223   : > { %v3464_v63 = vfloor.f32 %v3448_v57  ;;  %v3466_v12 = vfloor.f32 %v3450_v58  ;;  %v3452_v13 = vmul.f32 0.5, %v3436_v59  ;;  %v3454_v14 = vmul.f32 0.5, %v3438_v60 }
 0x224   : > { %v3465_v15 = vfloor.f32 %v3449_v6  ;;  %v3467_v38 = vfloor.f32 %v3451_v7  ;;  %v3453_v16 = vmul.f32 0.5, %v3437_v10  ;;  %v3455_v17 = vmul.f32 0.5, %v3439_v11 }
 0x225   : > { %v3468_v18 = vfloor.f32 %v3452_v13  ;;  %v3470_v19 = vfloor.f32 %v3454_v14  ;;  %v3258_v20 = vadd.f32 %v5900_v62, %v5932_v43  ;;  %v3260_v21 = vadd.f32 %v5902_v0, %v5934_v44 }
 0x226   : > { %v4200_v22 = vpack.c.bf16 %v3465_v15, %v3464_v63  ;;  %v4201_v23 = vpack.c.bf16 %v3467_v38, %v3466_v12  ;;  %v3469_v24 = vfloor.f32 %v3453_v16  ;;  %v3471_v25 = vfloor.f32 %v3455_v17 }
 0x227   : > { %v3296_v26 = vmul.f32 %v5908_v3, %v3258_v20  ;;  %v3298_v27 = vmul.f32 %v5910_v5, %v3260_v21  ;;  %v3259_v28 = vadd.f32 %v5904_v1, %v5936_v49  ;;  %v3261_v29 = vadd.f32 %v5906_v2, %v5938_v50 }
 0x228   : > { %3528 = vst [vmem:[%s4929_s10] sm:$0xff] %v4200_v22  ;;  %3529 = vst [vmem:[%s4929_s10 + $0x8] sm:$0xff] %v4201_v23  ;;  %v4202_v43 = vpack.c.bf16 %v3469_v24, %v3468_v18  ;;  %v4203_v44 = vpack.c.bf16 %v3471_v25, %v3470_v19  ;;  %v3262_v30 = vadd.f32 %v5900_v62, %v5940_v55 }
 0x229   : > { %v3264_v31 = vadd.f32 %v5902_v0, %v5942_v56  ;;  %v3312_v32 = vadd.f32 512.0, %v3296_v26  ;;  %v3314_v33 = vadd.f32 512.0, %v3298_v27  ;;  %v3297_v34 = vmul.f32 %v5912_v8, %v3259_v28 }
 0x22a   : > { %v3299_v35 = vmul.f32 %v5914_v9, %v3261_v29  ;;  %3530 = vst [vmem:[%s4929_s10 + $0x10] sm:$0xff] %v4202_v43  ;;  %3531 = vst [vmem:[%s4929_s10 + $0x18] sm:$0xff] %v4203_v44  ;;  %v3300_v49 = vmul.f32 %v5908_v3, %v3262_v30  ;;  %v3263_v37 = vadd.f32 %v5904_v1, %v5944_v61 }
 0x22b   : > { %v3302_v50 = vmul.f32 %v5910_v5, %v3264_v31  ;;  %v3265_v62 = vadd.f32 %v5906_v2, %v5946_v4  ;;  %v3328_v55 = vmul.f32 0.0009765625, %v3312_v32  ;;  %v3330_v0 = vmul.f32 0.0009765625, %v3314_v33 }
 0x22c   : > { %v3313_v56 = vadd.f32 512.0, %v3297_v34  ;;  %v3315_v39 = vadd.f32 512.0, %v3299_v35  ;;  %v3316_v40 = vadd.f32 512.0, %v3300_v49  ;;  %v3301_v41 = vmul.f32 %v5912_v8, %v3263_v37 }
 0x22d   : > { %v3318_v36 = vadd.f32 512.0, %v3302_v50  ;;  %v3303_v42 = vmul.f32 %v5914_v9, %v3265_v62  ;;  %v3344_v45 = vfloor.f32 %v3328_v55  ;;  %v3346_v3 = vfloor.f32 %v3330_v0 }
 0x22e   : > { %v3329_v46 = vmul.f32 0.0009765625, %v3313_v56  ;;  %v3331_v5 = vmul.f32 0.0009765625, %v3315_v39  ;;  %v3332_v47 = vmul.f32 0.0009765625, %v3316_v40  ;;  %v3317_v1 = vadd.f32 512.0, %v3301_v41 }
 0x22f   : > { %v3334_v48 = vmul.f32 0.0009765625, %v3318_v36  ;;  %v3319_v61 = vadd.f32 512.0, %v3303_v42  ;;  %v3360_v51 = vmax.f32 %v3344_v45, 0.0  ;;  %v3362_v2 = vmax.f32 %v3346_v3, 0.0 }
 0x230   : > { %v3345_v4 = vfloor.f32 %v3329_v46  ;;  %v3347_v52 = vfloor.f32 %v3331_v5  ;;  %v3348_v54 = vfloor.f32 %v3332_v47  ;;  %v3333_v57 = vmul.f32 0.0009765625, %v3317_v1 }
 0x231   : > { %v3350_v53 = vfloor.f32 %v3334_v48  ;;  %v3335_v58 = vmul.f32 0.0009765625, %v3319_v61  ;;  %v3376_v59 = vmin.f32 %v3360_v51, 48.0  ;;  %v3378_v8 = vmin.f32 %v3362_v2, 48.0 }
 0x232   : > { %v3361_v60 = vmax.f32 %v3345_v4, 0.0  ;;  %v3363_v9 = vmax.f32 %v3347_v52, 0.0  ;;  %v3364_v6 = vmax.f32 %v3348_v54, 0.0  ;;  %v3349_v10 = vfloor.f32 %v3333_v57 }
 0x233   : > { %v3366_v7 = vmax.f32 %v3350_v53, 0.0  ;;  %v3351_v11 = vfloor.f32 %v3335_v58  ;;  %v3392_v63 = vmul.f32 180000.0, %v3376_v59  ;;  %v3394_v12 = vmul.f32 180000.0, %v3378_v8 }
 0x234   : > { %v3377_v13 = vmin.f32 %v3361_v60, 48.0  ;;  %v3379_v14 = vmin.f32 %v3363_v9, 48.0  ;;  %v3380_v15 = vmin.f32 %v3364_v6, 48.0  ;;  %v3365_v16 = vmax.f32 %v3349_v10, 0.0 }
 0x235   : > { %v3382_v38 = vmin.f32 %v3366_v7, 48.0  ;;  %v3367_v17 = vmax.f32 %v3351_v11, 0.0  ;;  %v3408_v18 = vadd.f32 1048576.0, %v3392_v63  ;;  %v3410_v19 = vadd.f32 1048576.0, %v3394_v12 }
 0x236   : > { %v3393_v20 = vmul.f32 180000.0, %v3377_v13  ;;  %v3395_v21 = vmul.f32 180000.0, %v3379_v14  ;;  %v3396_v22 = vmul.f32 180000.0, %v3380_v15 }
 0x237   : > { %v3398_v23 = vmul.f32 180000.0, %v3382_v38  ;;  %v3381_v24 = vmin.f32 %v3365_v16, 48.0  ;;  %v3383_v25 = vmin.f32 %v3367_v17, 48.0  ;;  %v3424_v26 = vmul.f32 4.7683716e-07, %v3408_v18 }
 0x238   : > { %v3426_v27 = vmul.f32 4.7683716e-07, %v3410_v19  ;;  %v3409_v28 = vadd.f32 1048576.0, %v3393_v20  ;;  %v3411_v29 = vadd.f32 1048576.0, %v3395_v21  ;;  %v3412_v43 = vadd.f32 1048576.0, %v3396_v22 }
 0x239   : > { %v3414_v44 = vadd.f32 1048576.0, %v3398_v23  ;;  %v3397_v30 = vmul.f32 180000.0, %v3381_v24  ;;  %v3399_v31 = vmul.f32 180000.0, %v3383_v25  ;;  %v3440_v32 = vfloor.f32 %v3424_v26 }
 0x23a   : > { %v3442_v33 = vfloor.f32 %v3426_v27  ;;  %v3425_v34 = vmul.f32 4.7683716e-07, %v3409_v28  ;;  %v3427_v35 = vmul.f32 4.7683716e-07, %v3411_v29  ;;  %v3428_v49 = vmul.f32 4.7683716e-07, %v3412_v43 }
 0x23b   : > { %v3430_v50 = vmul.f32 4.7683716e-07, %v3414_v44  ;;  %v3413_v37 = vadd.f32 1048576.0, %v3397_v30  ;;  %v3415_v62 = vadd.f32 1048576.0, %v3399_v31  ;;  %v3456_v55 = vmul.f32 0.5, %v3440_v32 }
 0x23c   : > { %v3458_v0 = vmul.f32 0.5, %v3442_v33  ;;  %v3441_v56 = vfloor.f32 %v3425_v34  ;;  %v3443_v39 = vfloor.f32 %v3427_v35  ;;  %v3444_v40 = vfloor.f32 %v3428_v49 }
 0x23d   : > { %v3446_v36 = vfloor.f32 %v3430_v50  ;;  %v3429_v41 = vmul.f32 4.7683716e-07, %v3413_v37  ;;  %v3431_v42 = vmul.f32 4.7683716e-07, %v3415_v62  ;;  %v3472_v45 = vfloor.f32 %v3456_v55 }
 0x23e   : > { %v3474_v3 = vfloor.f32 %v3458_v0  ;;  %v3457_v46 = vmul.f32 0.5, %v3441_v56  ;;  %v3459_v5 = vmul.f32 0.5, %v3443_v39  ;;  %v3460_v47 = vmul.f32 0.5, %v3444_v40 }
 0x23f   : > { %v3462_v48 = vmul.f32 0.5, %v3446_v36  ;;  %v3445_v1 = vfloor.f32 %v3429_v41  ;;  %v3447_v61 = vfloor.f32 %v3431_v42 }
 0x240   : > { %v3473_v51 = vfloor.f32 %v3457_v46  ;;  %v3475_v2 = vfloor.f32 %v3459_v5  ;;  %v3476_v4 = vfloor.f32 %v3460_v47 }
 0x241   : > { %v3478_v52 = vfloor.f32 %v3462_v48  ;;  %v3461_v54 = vmul.f32 0.5, %v3445_v1  ;;  %v3463_v53 = vmul.f32 0.5, %v3447_v61 }
 0x242   : > { %v4204_v57 = vpack.c.bf16 %v3473_v51, %v3472_v45  ;;  %v4205_v58 = vpack.c.bf16 %v3475_v2, %v3474_v3 }
 0x243   : > { %v3477_v59 = vfloor.f32 %v3461_v54  ;;  %v3479_v8 = vfloor.f32 %v3463_v53 }
 0x244   : > { %3532 = vst [vmem:[%s4929_s10 + $0x20] sm:$0xff] %v4204_v57  ;;  %3533 = vst [vmem:[%s4929_s10 + $0x28] sm:$0xff] %v4205_v58 }
 0x245   : > { %v4206_v60 = vpack.c.bf16 %v3477_v59, %v3476_v4  ;;  %v4207_v9 = vpack.c.bf16 %v3479_v8, %v3478_v52 }
 0x247   : > { %3534 = vst [vmem:[%s4929_s10 + $0x30] sm:$0xff] %v4206_v60  ;;  %3535 = vst [vmem:[%s4929_s10 + $0x38] sm:$0xff] %v4207_v9 }
 0x248 PF: > { %s14_s19 = sadd.s32 1, %s4865_s19   ;;  %s6000_s15 = smov %s4857_s17 }
 0x249   : > { %p11_p6 = scmp.ge.s32.totalorder %s14_s19, 10   ;;  %s6001_s16 = smov %s4861_s18 }
 0x24a   : > { %s6002_s17 = smov %s6005_s20  ;;  %s6003_s18 = smov %s6009_s21 }
 0x24b   :  { %13 = sbr.rel (!%p11_p6) target bundleno = 3 (0x3), region = 110 }
 0x252   :  { %3566 = vsyncmov [#allocation3] }
 0x255   :  { %s3567_s10 = vpop.sfrf %3566 }
 0x256   :  { %p4198_p7 = scmp.ne.s32.totalorder %s3567_s10, 0 }
 0x258   :  { %3571 = shalt.err (%p4198_p7)  }

// kernel: prior_decoder_forward.3
= control target key start
LH: loop header
LB: loop body
LE: loop exit
PB: predicated region body
PF: predicated region fallthrough
CT: control target
= control target key end

     0   :  { %9 = vsyncpa [#allocation5], 0  ;;  %s4285_s0 = inlined_call_operand.vmem [shape: bf16[96,128], index: 0, kind: input, shape index: {}]   ;;  %s4286_s1 = inlined_call_operand.hbm [shape: bf16[9,128,512], index: 1, kind: input, shape index: {}]   ;;  %s4287_s2 = inlined_call_operand.hbm [shape: f32[1,512], index: 2, kind: input, shape index: {}]   ;;  %s4288_s3 = inlined_call_operand.hbm [shape: f32[1,512], index: 3, kind: input, shape index: {}]   ;;  %s4289_s4 = inlined_call_operand.vmem [shape: bf16[64,512], index: 4, kind: output, shape index: {}]  }
   0x1   :  { %10 = vsyncpa [#allocation7], 0  ;;  %s4093_s15 = smov 0   ;;  %s4095_s16 = smov 0  }
   0x2   :  { %s4097_s17 = smov 0   ;;  %s4099_s18 = smov 0  }
   0x3   :  { %s4101_s19 = smov 0  }
   0x4 LB: > { %s4062_s20 = smov [#allocation6]   ;;  %s3107_s22 = sadd.s32 4294967295, %s4060_s19   ;;  %s4060_s19 = sphi %s4101_s19, %s16_s19   ;;  %s4056_s18 = sphi %s4099_s18, %s4305_s18   ;;  %s4052_s17 = sphi %s4097_s17, %s4304_s17   ;;  %s4048_s16 = sphi %s4095_s16, %s4303_s16   ;;  %s4044_s15 = sphi %s4093_s15, %s4302_s15  }
   0x5   : > { %s152_s21 = sshll.u32 %s4062_s20, 4  ;;  %p3111_p0 = scmp.ge.s32.totalorder %s4060_s19, 1  ;;  %s153_s21 = int_to_ptr.vmem [resolvable:$true] %s152_s21 }
   0x6   : > { %p126_p1 = scmp.lt.s32.totalorder %s4060_s19, 9  ;;  %p4121_p2 = scmp.eq.s32.totalorder %s3107_s22, 0 }
   0x7   : > { %s25_s26 = sadd.s32 1, %s4052_s17  ;;  %s3928_s30 = scalar_lea.hbm %s4287_s2, 64 }
   0x8   : > { %s4294_s23 = scalar_select %p4121_p2, 1, 0 }
   0x9   : > { %p4125_p3 = pnand %p3111_p0, %p126_p1  ;;  %p4138_p6 = scmp.ge.s32.totalorder %s25_s26, 4 }
   0xa   : > { %p3929_p7 = scmp.ne.s32.totalorder %s4287_s2, %s3928_s30  ;;  %p3935_p11 = scmp.lt.u32.totalorder %s3928_s30, %s4287_s2 }
   0xb   : > { %s4295_s24 = scalar_select %p4125_p3, 1, 0 }
   0xc   : > { %p3434_p4 = pneg %p4125_p3 }
   0xd   : > { %s4297_s27 = scalar_select %p4138_p6, 1, 0 }
   0xe   : > { %p4133_p5 = pnand %p4121_p2, %p3434_p4 }
  0x10   : > { %p4150_p8 = pneg %p4133_p5 }
  0x12   : > { %p3931_p9 = pnand %p4150_p8, %p3929_p7 }
  0x14   : > { %p3932_p10 = pneg %p3931_p9 }
  0x16   : > { %p3937_p12 = pnand %p3935_p11, %p3932_p10 }
  0x18   : > { %3940 = shalt.err (!%p3937_p12)
}
  0x19   : > { %s3941_s10 = scalar_lea.vmem %s153_s21, 64  ;;  %p3949_p4 = scmp.lt.s32.totalorder %s153_s21, %s153_s21 }
  0x1a   : > { %p3942_p13 = scmp.ne.s32.totalorder %s153_s21, %s3941_s10  ;;  %p3950_p2 = scmp.lt.s32.totalorder %s3941_s10, %s3941_s10 }
  0x1c   : > { %p3944_p0 = pnand %p3942_p13, %p4150_p8  ;;  %p3951_p3 = por %p3950_p2, %p3949_p4 }
  0x1e   : > { %p3945_p1 = pneg %p3944_p0 }
  0x20   : > { %p3952_p6 = pnand %p3951_p3, %p3945_p1 }
  0x22   : > { %3955 = shalt.err (!%p3952_p6)
}
  0x23   : > { %3440 = dma.hbm_to_vmem [thread:$0]  (!%p4133_p5), %s4287_s2, 64, %s153_s21, [#allocation7]  }
  0x24   : > { %p4299_p7 = scmp.ne.s32.totalorder %s4297_s27, 0  ;;  %s28_s13 = sadd.s32 1, %s4056_s18 }
  0x25   : > { %s4063_s14 = smov [#allocation4]   ;;  %s3956_s29 = scalar_lea.hbm %s4286_s1, 36864 }
  0x26   : > { %s4307_s26 = smov (%p4299_p7, %s25_s26), 0  ;;  %s4309_s13 = smov (!%p4299_p7, %s28_s13), %s4056_s18 }
  0x27   : > { %s138_s20 = sshll.u32 %s4063_s14, 4  ;;  %p30_p2 = scmp.ge.s32.totalorder %s4309_s13, 2  ;;  %s139_s20 = int_to_ptr.vmem [resolvable:$true] %s138_s20 }
  0x28   : > { %p3957_p3 = scmp.ne.s32.totalorder %s4286_s1, %s3956_s29  ;;  %p3963_p10 = scmp.lt.u32.totalorder %s3956_s29, %s4286_s1 }
  0x29   : > { %s4311_s13 = smov (%p30_p2, %s4309_s13), 0 }
  0x2a   : > { %p3959_p6 = pnand %p3957_p3, %p4150_p8 }
  0x2c   : > { %p3960_p9 = pneg %p3959_p6 }
  0x2e   : > { %p3965_p11 = pnand %p3963_p10, %p3960_p9 }
  0x30   : > { %3968 = shalt.err (!%p3965_p11)
}
  0x31   : > { %s3969_s6 = scalar_lea.vmem %s139_s20, 36864  ;;  %p3977_p1 = scmp.lt.s32.totalorder %s139_s20, %s139_s20 }
  0x32   : > { %p3970_p12 = scmp.ne.s32.totalorder %s139_s20, %s3969_s6  ;;  %p3978_p4 = scmp.lt.s32.totalorder %s3969_s6, %s3969_s6 }
  0x34   : > { %p3972_p13 = pnand %p3970_p12, %p4150_p8  ;;  %p3979_p7 = por %p3978_p4, %p3977_p1 }
  0x36   : > { %p3973_p0 = pneg %p3972_p13 }
  0x38   : > { %p3980_p2 = pnand %p3979_p7, %p3973_p0 }
  0x3a   : > { %3983 = shalt.err (!%p3980_p2)
}
  0x3b   : > { %s4064_s8 = smov 256   ;;  %s4065_s9 = smov 16  }
  0x3c   : > { %3437 = dma.hbm_to_vmem [thread:$0]  (!%p4133_p5), %s4286_s1, 36864, %s139_s20, [#allocation5], %s4064_s8, %s4064_s8, %s4065_s9  }
  0x3d   : > { %s4066_s12 = smov [#allocation8]   ;;  %s3984_s29 = scalar_lea.hbm %s4288_s3, 64 }
  0x3e   : > { %s163_s14 = sshll.u32 %s4066_s12, 4  ;;  %p3985_p3 = scmp.ne.s32.totalorder %s4288_s3, %s3984_s29  ;;  %s164_s14 = int_to_ptr.vmem [resolvable:$true] %s163_s14 }
  0x3f   : > { %p3991_p10 = scmp.lt.u32.totalorder %s3984_s29, %s4288_s3 }
  0x40   : > { %p3987_p6 = pnand %p3985_p3, %p4150_p8 }
  0x42   : > { %p3988_p9 = pneg %p3987_p6 }
  0x44   : > { %p3993_p11 = pnand %p3991_p10, %p3988_p9 }
  0x46   : > { %3996 = shalt.err (!%p3993_p11)
}
  0x47   : > { %s3997_s20 = scalar_lea.vmem %s164_s14, 64  ;;  %p4005_p1 = scmp.lt.s32.totalorder %s164_s14, %s164_s14 }
  0x48   : > { %p3998_p12 = scmp.ne.s32.totalorder %s164_s14, %s3997_s20  ;;  %p4006_p4 = scmp.lt.s32.totalorder %s3997_s20, %s3997_s20 }
  0x4a   : > { %p4000_p13 = pnand %p3998_p12, %p4150_p8  ;;  %p4007_p7 = por %p4006_p4, %p4005_p1 }
  0x4c   : > { %p4001_p0 = pneg %p4000_p13 }
  0x4e   : > { %p4008_p2 = pnand %p4007_p7, %p4001_p0 }
  0x50   : > { %4011 = shalt.err (!%p4008_p2)
}
  0x51   : > { %3443 = dma.hbm_to_vmem [thread:$0]  (!%p4133_p5), %s4288_s3, 64, %s164_s14, [#allocation7]  }
  0x52   : > { %p4300_p3 = scmp.ne.s32.totalorder %s4295_s24, 0 }
  0x53   : > { %p4301_p6 = scmp.ne.s32.totalorder (!%p4300_p3), %s4294_s23, 0 }
  0x54   : > { %176 = sbr.rel (%p4300_p3) target bundleno = 640 (0x280), region = 32 }
  0x5b   : > { %4033 = dma.done.wait (%p4301_p6), [#allocation5], 36864  }
  0x5c   : > { %4035 = vsyncadd (%p4301_p6), [#allocation5], 4294930432 }
  0x5d   : > { %4037 = dma.done.wait (%p4301_p6), [#allocation7], 128  }
  0x5e   : > { %4039 = vsyncadd (%p4301_p6), [#allocation7], 4294967168  ;;  %s3119_s25 = sshll.u32 %s4048_s16, 2  ;;  %s215_s7 = smul.u32 48, %s4048_s16 }
  0x5f   : > { %s206_s24 = sadd.s32 %s4044_s15, %s3119_s25  ;;  %s3122_s9 = sshll.u32 %s4044_s15, 3 }
  0x60   : > { %p207_p5 = scmp.lt.s32.totalorder %s206_s24, 7  ;;  %s217_s10 = sadd.s32 %s3122_s9, %s215_s7 }
  0x61   : > { %s218_s11 = sshra.s32 %s217_s10, 3 }
  0x62   : > { %s4313_s24 = smov (!%p207_p5, %s206_s24), 7  ;;  %s3123_s12 = sshll.u32 %s218_s11, 2 }
  0x63   : > { %s3419_s14 = sshll.u32 %s4313_s24, 4  ;;  %s221_s29 = scalar_lea.vmem %s4285_s0, %s3123_s12 }
  0x64   : > { %s4232_s5 = scalar_lea.vmem %s4289_s4, %s3419_s14  ;;  %v254_v0 = vld [vmem:[%s221_s29] sm:$0xff] }
  0x65   : > { %255 = vst [vmem:[#allocation2] sm:$0xff] %v254_v0 }
  0x66   : > { %263 = vsyncadd [#allocation3], 128  ;;  %v3125_v1 = vld [vmem:[%s221_s29 + $0x8] sm:$0xf] }
  0x67   : > { %284 = vst [vmem:[#allocation2 + $0x8] sm:$0xf] %v3125_v1 }
  0x68   : > { %309 = vsyncadd [#allocation3], 64 }
  0x69   : > { %4040 = dma.done.wait [#allocation3], 192 }
  0x6a   : > { %4041 = vsyncadd [#allocation3], 4294967104  ;;  %v4067_v2 = vmov 0   ;;  %v3496_v3 = vld [vmem:[#allocation4 + $0x104] ss:$16 sps:$4 sm:$0xff]   ;;  %vm1771_vm1 = vcmask 1042432  }
  0x6b   : > { %581 = vmatprep.mubr.bf16.mxu0 %v4067_v2  ;;  %622 = vmatprep.mubr.bf16.mxu1 %v4067_v2  ;;  %v3498_v4 = vld [vmem:[#allocation4 + $0x10c] ss:$16 sps:$4 sm:$0xff]   ;;  %v3500_v5 = vld [vmem:[#allocation4 + $0x100] ss:$16 sps:$4 sm:$0xff]   ;;  %v3501_v6 = vld [vmem:[#allocation4 + $0x108] ss:$16 sps:$4 sm:$0xff]  }
  0x6c   : > { %549 = vmatprep.subr.bf16.mxu0 %v3496_v3  ;;  %590 = vmatprep.subr.bf16.mxu1 %v3498_v4  ;;  %v3502_v7 = vld [vmem:[#allocation4 + $0x124] ss:$16 sps:$4 sm:$0xff]   ;;  %v3504_v8 = vld [vmem:[#allocation4 + $0x12c] ss:$16 sps:$4 sm:$0xff]   ;;  %v3506_v9 = vld [vmem:[#allocation4 + $0x120] ss:$16 sps:$4 sm:$0xff]  }
  0x6d   : > { %550 = vmatpush1.bf16.msra.mxu0 %v3500_v5  ;;  %591 = vmatpush1.bf16.msra.mxu1 %v3501_v6  ;;  %v3507_v10 = vld [vmem:[#allocation4 + $0x128] ss:$16 sps:$4 sm:$0xff]   ;;  %v3508_v11 = vld [vmem:[#allocation4 + $0x144] ss:$16 sps:$4 sm:$0xff]   ;;  %v3510_v12 = vld [vmem:[#allocation4 + $0x14c] ss:$16 sps:$4 sm:$0xff]  }
  0x6e   : > { %551 = vmatprep.subr.bf16.mxu0 %v3502_v7  ;;  %592 = vmatprep.subr.bf16.mxu1 %v3504_v8  ;;  %v3512_v13 = vld [vmem:[#allocation4 + $0x140] ss:$16 sps:$4 sm:$0xff]   ;;  %v3513_v14 = vld [vmem:[#allocation4 + $0x148] ss:$16 sps:$4 sm:$0xff]   ;;  %v3514_v15 = vld [vmem:[#allocation4 + $0x164] ss:$16 sps:$4 sm:$0xff]  }
  0x6f   : > { %v3516_v16 = vld [vmem:[#allocation4 + $0x16c] ss:$16 sps:$4 sm:$0xff]   ;;  %v3518_v17 = vld [vmem:[#allocation4 + $0x160] ss:$16 sps:$4 sm:$0xff]   ;;  %v3519_v18 = vld [vmem:[#allocation4 + $0x168] ss:$16 sps:$4 sm:$0xff]  }
  0x70   : > { %v3520_v19 = vld [vmem:[#allocation4 + $0x184] ss:$16 sps:$4 sm:$0xff]   ;;  %v3522_v20 = vld [vmem:[#allocation4 + $0x18c] ss:$16 sps:$4 sm:$0xff]   ;;  %v3524_v21 = vld [vmem:[#allocation4 + $0x180] ss:$16 sps:$4 sm:$0xff]  }
  0x71   : > { %552 = vmatpush1.bf16.msra.mxu0 %v3506_v9  ;;  %593 = vmatpush1.bf16.msra.mxu1 %v3507_v10  ;;  %v3525_v22 = vld [vmem:[#allocation4 + $0x188] ss:$16 sps:$4 sm:$0xff]   ;;  %v3526_v23 = vld [vmem:[#allocation4 + $0x1a4] ss:$16 sps:$4 sm:$0xff]   ;;  %v3528_v24 = vld [vmem:[#allocation4 + $0x1ac] ss:$16 sps:$4 sm:$0xff]  }
  0x72   : > { %553 = vmatprep.subr.bf16.mxu0 %v3508_v11  ;;  %594 = vmatprep.subr.bf16.mxu1 %v3510_v12  ;;  %v3530_v25 = vld [vmem:[#allocation4 + $0x1a0] ss:$16 sps:$4 sm:$0xff]   ;;  %v3531_v26 = vld [vmem:[#allocation4 + $0x1a8] ss:$16 sps:$4 sm:$0xff]   ;;  %v3532_v27 = vld [vmem:[#allocation4 + $0x1c4] ss:$16 sps:$4 sm:$0xff]  }
  0x73   : > { %v3534_v28 = vld [vmem:[#allocation4 + $0x1cc] ss:$16 sps:$4 sm:$0xff]   ;;  %v347_v29 = vld [vmem:[#allocation2] sm:$0x1f]  ;;  %v3537_v32 = vld [vmem:[#allocation4 + $0x1c8] ss:$16 sps:$4 sm:$0xff]  }
  0x74   : > { %v3536_v30 = vld [vmem:[#allocation4 + $0x1c0] ss:$16 sps:$4 sm:$0xff]   ;;  %v384_v31 = vshll.u32 %v347_v29, 16  ;;  %v3538_v33 = vld [vmem:[#allocation4 + $0x1e4] ss:$16 sps:$4 sm:$0xff]   ;;  %v382_v36 = vshrl.u32 %v347_v29, 16 }
  0x75   : > { %554 = vmatpush1.bf16.msra.mxu0 %v3512_v13  ;;  %595 = vmatpush1.bf16.msra.mxu1 %v3513_v14  ;;  %v3540_v34 = vld [vmem:[#allocation4 + $0x1ec] ss:$16 sps:$4 sm:$0xff]   ;;  %v3542_v35 = vld [vmem:[#allocation4 + $0x1e0] ss:$16 sps:$4 sm:$0xff]   ;;  %v3543_v38 = vld [vmem:[#allocation4 + $0x1e8] ss:$16 sps:$4 sm:$0xff]  }
  0x76   : > { %555 = vmatprep.subr.bf16.mxu0 %v3514_v15  ;;  %596 = vmatprep.subr.bf16.mxu1 %v3516_v16  ;;  %v386_v37 = vrot.slane %v384_v31, 1  ;;  %v3546_v39 = vld [vmem:[#allocation4 + $0x4] ss:$16 sps:$4 sm:$0xff]   ;;  %v3549_v40 = vld [vmem:[#allocation4 + $0xc] ss:$16 sps:$4 sm:$0xff]  }
  0x77   : > { %v3544_v42 = vld [vmem:[#allocation4] ss:$16 sps:$4 sm:$0xff]   ;;  %v3547_v43 = vld [vmem:[#allocation4 + $0x8] ss:$16 sps:$4 sm:$0xff]   ;;  %v3552_v44 = vld [vmem:[#allocation4 + $0x24] ss:$16 sps:$4 sm:$0xff]  }
  0x78   : > { %v387_v41 = vor.u32 %v386_v37, %v382_v36  ;;  %v3555_v45 = vld [vmem:[#allocation4 + $0x2c] ss:$16 sps:$4 sm:$0xff]   ;;  %v3550_v46 = vld [vmem:[#allocation4 + $0x20] ss:$16 sps:$4 sm:$0xff]   ;;  %v3553_v47 = vld [vmem:[#allocation4 + $0x28] ss:$16 sps:$4 sm:$0xff]  }
  0x79   : > { %556 = vmatpush1.bf16.msra.mxu0 %v3518_v17  ;;  %597 = vmatpush1.bf16.msra.mxu1 %v3519_v18  ;;  %v3558_v48 = vld [vmem:[#allocation4 + $0x44] ss:$16 sps:$4 sm:$0xff]   ;;  %v3561_v49 = vld [vmem:[#allocation4 + $0x4c] ss:$16 sps:$4 sm:$0xff]   ;;  %v3556_v50 = vld [vmem:[#allocation4 + $0x40] ss:$16 sps:$4 sm:$0xff]  }
  0x7a   : > { %557 = vmatprep.subr.bf16.mxu0 %v3520_v19  ;;  %598 = vmatprep.subr.bf16.mxu1 %v3522_v20  ;;  %v3559_v51 = vld [vmem:[#allocation4 + $0x48] ss:$16 sps:$4 sm:$0xff]   ;;  %v3564_v52 = vld [vmem:[#allocation4 + $0x64] ss:$16 sps:$4 sm:$0xff]   ;;  %v3567_v53 = vld [vmem:[#allocation4 + $0x6c] ss:$16 sps:$4 sm:$0xff]  }
  0x7b   : > { %v3562_v54 = vld [vmem:[#allocation4 + $0x60] ss:$16 sps:$4 sm:$0xff]   ;;  %v3565_v55 = vld [vmem:[#allocation4 + $0x68] ss:$16 sps:$4 sm:$0xff]   ;;  %v3570_v56 = vld [vmem:[#allocation4 + $0x84] ss:$16 sps:$4 sm:$0xff]  }
  0x7c   : > { %v3573_v57 = vld [vmem:[#allocation4 + $0x8c] ss:$16 sps:$4 sm:$0xff]   ;;  %v3568_v58 = vld [vmem:[#allocation4 + $0x80] ss:$16 sps:$4 sm:$0xff]   ;;  %v3571_v59 = vld [vmem:[#allocation4 + $0x88] ss:$16 sps:$4 sm:$0xff]  }
  0x7d   : > { %558 = vmatpush1.bf16.msra.mxu0 %v3524_v21  ;;  %599 = vmatpush1.bf16.msra.mxu1 %v3525_v22  ;;  %v3576_v60 = vld [vmem:[#allocation4 + $0xa4] ss:$16 sps:$4 sm:$0xff]   ;;  %v3579_v61 = vld [vmem:[#allocation4 + $0xac] ss:$16 sps:$4 sm:$0xff]   ;;  %v3574_v62 = vld [vmem:[#allocation4 + $0xa0] ss:$16 sps:$4 sm:$0xff]  }
  0x7e   : > { %559 = vmatprep.subr.bf16.mxu0 %v3526_v23  ;;  %600 = vmatprep.subr.bf16.mxu1 %v3528_v24  ;;  %v3577_v63 = vld [vmem:[#allocation4 + $0xa8] ss:$16 sps:$4 sm:$0xff]   ;;  %v3582_v0 = vld [vmem:[#allocation4 + $0xc4] ss:$16 sps:$4 sm:$0xff]   ;;  %v3585_v1 = vld [vmem:[#allocation4 + $0xcc] ss:$16 sps:$4 sm:$0xff]  }
  0x7f   : > { %v3580_v3 = vld [vmem:[#allocation4 + $0xc0] ss:$16 sps:$4 sm:$0xff]   ;;  %v3583_v4 = vld [vmem:[#allocation4 + $0xc8] ss:$16 sps:$4 sm:$0xff]   ;;  %v3588_v5 = vld [vmem:[#allocation4 + $0xe4] ss:$16 sps:$4 sm:$0xff]  }
  0x80   : > { %v3591_v6 = vld [vmem:[#allocation4 + $0xec] ss:$16 sps:$4 sm:$0xff]   ;;  %v3586_v7 = vld [vmem:[#allocation4 + $0xe0] ss:$16 sps:$4 sm:$0xff]   ;;  %v3589_v8 = vld [vmem:[#allocation4 + $0xe8] ss:$16 sps:$4 sm:$0xff]  }
  0x81   : > { %560 = vmatpush1.bf16.msra.mxu0 %v3530_v25  ;;  %601 = vmatpush1.bf16.msra.mxu1 %v3531_v26  ;;  %v3594_v9 = vld [vmem:[#allocation4 + $0x204] ss:$16 sps:$4 sm:$0xff]   ;;  %v3597_v10 = vld [vmem:[#allocation4 + $0x20c] ss:$16 sps:$4 sm:$0xff]   ;;  %v314_v11 = vld [vmem:[#allocation2] sm:$0xf] }
  0x82   : > { %561 = vmatprep.subr.bf16.mxu0 %v3532_v27  ;;  %602 = vmatprep.subr.bf16.mxu1 %v3534_v28  ;;  %v3592_v12 = vld [vmem:[#allocation4 + $0x200] ss:$16 sps:$4 sm:$0xff]   ;;  %v3595_v13 = vld [vmem:[#allocation4 + $0x208] ss:$16 sps:$4 sm:$0xff]   ;;  %v3600_v14 = vld [vmem:[#allocation4 + $0x224] ss:$16 sps:$4 sm:$0xff]  }
  0x83   : > { %v3603_v15 = vld [vmem:[#allocation4 + $0x22c] ss:$16 sps:$4 sm:$0xff]   ;;  %v3598_v16 = vld [vmem:[#allocation4 + $0x220] ss:$16 sps:$4 sm:$0xff]   ;;  %v3601_v17 = vld [vmem:[#allocation4 + $0x228] ss:$16 sps:$4 sm:$0xff]  }
  0x84   : > { %v3606_v18 = vld [vmem:[#allocation4 + $0x244] ss:$16 sps:$4 sm:$0xff]   ;;  %v3609_v19 = vld [vmem:[#allocation4 + $0x24c] ss:$16 sps:$4 sm:$0xff]   ;;  %v3604_v20 = vld [vmem:[#allocation4 + $0x240] ss:$16 sps:$4 sm:$0xff]  }
  0x85   : > { %562 = vmatpush1.bf16.msra.mxu0 %v3536_v30  ;;  %603 = vmatpush1.bf16.msra.mxu1 %v3537_v32  ;;  %v3607_v21 = vld [vmem:[#allocation4 + $0x248] ss:$16 sps:$4 sm:$0xff]   ;;  %v3612_v22 = vld [vmem:[#allocation4 + $0x264] ss:$16 sps:$4 sm:$0xff]   ;;  %v3615_v23 = vld [vmem:[#allocation4 + $0x26c] ss:$16 sps:$4 sm:$0xff]  }
  0x86   : > { %563 = vmatprep.subr.bf16.mxu0 %v3538_v33  ;;  %604 = vmatprep.subr.bf16.mxu1 %v3540_v34  ;;  %v3610_v24 = vld [vmem:[#allocation4 + $0x260] ss:$16 sps:$4 sm:$0xff]   ;;  %v3613_v25 = vld [vmem:[#allocation4 + $0x268] ss:$16 sps:$4 sm:$0xff]   ;;  %v3618_v26 = vld [vmem:[#allocation4 + $0x284] ss:$16 sps:$4 sm:$0xff]  }
  0x87   : > { %v3621_v27 = vld [vmem:[#allocation4 + $0x28c] ss:$16 sps:$4 sm:$0xff]   ;;  %v3616_v28 = vld [vmem:[#allocation4 + $0x280] ss:$16 sps:$4 sm:$0xff]   ;;  %v3619_v29 = vld [vmem:[#allocation4 + $0x288] ss:$16 sps:$4 sm:$0xff]  }
  0x88   : > { %v3624_v30 = vld [vmem:[#allocation4 + $0x2a4] ss:$16 sps:$4 sm:$0xff]   ;;  %v3627_v31 = vld [vmem:[#allocation4 + $0x2ac] ss:$16 sps:$4 sm:$0xff]   ;;  %v3622_v32 = vld [vmem:[#allocation4 + $0x2a0] ss:$16 sps:$4 sm:$0xff]  }
  0x89   : > { %564 = vmatpush1.bf16.msra.mxu0 %v3542_v35  ;;  %605 = vmatpush1.bf16.msra.mxu1 %v3543_v38  ;;  %v3625_v33 = vld [vmem:[#allocation4 + $0x2a8] ss:$16 sps:$4 sm:$0xff]   ;;  %v3630_v34 = vld [vmem:[#allocation4 + $0x2c4] ss:$16 sps:$4 sm:$0xff]   ;;  %v3633_v35 = vld [vmem:[#allocation4 + $0x2cc] ss:$16 sps:$4 sm:$0xff]  }
  0x8a   : > { %791 = vmatprep.subr.bf16.mxu0 %v3546_v39  ;;  %832 = vmatprep.subr.bf16.mxu1 %v3549_v40  ;;  %v3628_v36 = vld [vmem:[#allocation4 + $0x2c0] ss:$16 sps:$4 sm:$0xff]   ;;  %v3631_v37 = vld [vmem:[#allocation4 + $0x2c8] ss:$16 sps:$4 sm:$0xff]   ;;  %v3636_v38 = vld [vmem:[#allocation4 + $0x2e4] ss:$16 sps:$4 sm:$0xff]  }
  0x8b   : > { %v3639_v39 = vld [vmem:[#allocation4 + $0x2ec] ss:$16 sps:$4 sm:$0xff]   ;;  %v3634_v40 = vld [vmem:[#allocation4 + $0x2e0] ss:$16 sps:$4 sm:$0xff]   ;;  %vm1474_vm0 = vsmask.f32 3328 }
  0x8c   : > { %582 = vmatmul.mubr.bf16.vlgmr.msra.gmra.mrb[0].mxu0 %v387_v41  ;;  %623 = vmatmul.mubr.bf16.vlgmr.msra.gmra.mrb[0].mxu1 %v387_v41  ;;  %v3637_v41 = vld [vmem:[#allocation4 + $0x2e8] ss:$16 sps:$4 sm:$0xff]  }
  0x8d   : > { %792 = vmatpush1.bf16.msra.mxu0 %v3544_v42  ;;  %833 = vmatpush1.bf16.msra.mxu1 %v3547_v43  ;;  %v873_v42 = vld [vmem:[#allocation2] sm:$0x1e] }
  0x8e   : > { %793 = vmatprep.subr.bf16.mxu0 %v3552_v44  ;;  %834 = vmatprep.subr.bf16.mxu1 %v3555_v45  ;;  %v3642_v43 = vld [vmem:[#allocation4 + $0x304] ss:$16 sps:$4 sm:$0xff]   ;;  %v3645_v44 = vld [vmem:[#allocation4 + $0x30c] ss:$16 sps:$4 sm:$0xff]   ;;  %v908_v45 = vrot.slane %v873_v42, 1 }
  0x8f   : > { %823 = vmatprep.mubr.bf16.mxu0 %v4067_v2  ;;  %864 = vmatprep.mubr.bf16.mxu1 %v4067_v2 }
  0x91   : > { %794 = vmatpush1.bf16.msra.mxu0 %v3550_v46  ;;  %835 = vmatpush1.bf16.msra.mxu1 %v3553_v47  ;;  %v3640_v46 = vld [vmem:[#allocation4 + $0x300] ss:$16 sps:$4 sm:$0xff]   ;;  %v3643_v47 = vld [vmem:[#allocation4 + $0x308] ss:$16 sps:$4 sm:$0xff]  }
  0x92   : > { %795 = vmatprep.subr.bf16.mxu0 %v3558_v48  ;;  %836 = vmatprep.subr.bf16.mxu1 %v3561_v49  ;;  %v3648_v48 = vld [vmem:[#allocation4 + $0x324] ss:$16 sps:$4 sm:$0xff]   ;;  %v3651_v49 = vld [vmem:[#allocation4 + $0x32c] ss:$16 sps:$4 sm:$0xff]  }
  0x95   : > { %796 = vmatpush1.bf16.msra.mxu0 %v3556_v50  ;;  %837 = vmatpush1.bf16.msra.mxu1 %v3559_v51  ;;  %v3646_v50 = vld [vmem:[#allocation4 + $0x320] ss:$16 sps:$4 sm:$0xff]   ;;  %v3649_v51 = vld [vmem:[#allocation4 + $0x328] ss:$16 sps:$4 sm:$0xff]  }
  0x96   : > { %797 = vmatprep.subr.bf16.mxu0 %v3564_v52  ;;  %838 = vmatprep.subr.bf16.mxu1 %v3567_v53  ;;  %v3654_v52 = vld [vmem:[#allocation4 + $0x344] ss:$16 sps:$4 sm:$0xff]   ;;  %v3657_v53 = vld [vmem:[#allocation4 + $0x34c] ss:$16 sps:$4 sm:$0xff]  }
  0x99   : > { %798 = vmatpush1.bf16.msra.mxu0 %v3562_v54  ;;  %839 = vmatpush1.bf16.msra.mxu1 %v3565_v55  ;;  %v3652_v54 = vld [vmem:[#allocation4 + $0x340] ss:$16 sps:$4 sm:$0xff]   ;;  %v3655_v55 = vld [vmem:[#allocation4 + $0x348] ss:$16 sps:$4 sm:$0xff]  }
  0x9a   : > { %799 = vmatprep.subr.bf16.mxu0 %v3570_v56  ;;  %840 = vmatprep.subr.bf16.mxu1 %v3573_v57  ;;  %v3660_v56 = vld [vmem:[#allocation4 + $0x364] ss:$16 sps:$4 sm:$0xff]   ;;  %v3663_v57 = vld [vmem:[#allocation4 + $0x36c] ss:$16 sps:$4 sm:$0xff]  }
  0x9d   : > { %800 = vmatpush1.bf16.msra.mxu0 %v3568_v58  ;;  %841 = vmatpush1.bf16.msra.mxu1 %v3571_v59  ;;  %v3658_v58 = vld [vmem:[#allocation4 + $0x360] ss:$16 sps:$4 sm:$0xff]   ;;  %v3661_v59 = vld [vmem:[#allocation4 + $0x368] ss:$16 sps:$4 sm:$0xff]  }
  0x9e   : > { %801 = vmatprep.subr.bf16.mxu0 %v3576_v60  ;;  %842 = vmatprep.subr.bf16.mxu1 %v3579_v61  ;;  %v3666_v60 = vld [vmem:[#allocation4 + $0x384] ss:$16 sps:$4 sm:$0xff]   ;;  %v3669_v61 = vld [vmem:[#allocation4 + $0x38c] ss:$16 sps:$4 sm:$0xff]  }
  0xa1   : > { %802 = vmatpush1.bf16.msra.mxu0 %v3574_v62  ;;  %843 = vmatpush1.bf16.msra.mxu1 %v3577_v63  ;;  %v3664_v62 = vld [vmem:[#allocation4 + $0x380] ss:$16 sps:$4 sm:$0xff]   ;;  %v3667_v63 = vld [vmem:[#allocation4 + $0x388] ss:$16 sps:$4 sm:$0xff]  }
  0xa2   : > { %803 = vmatprep.subr.bf16.mxu0 %v3582_v0  ;;  %844 = vmatprep.subr.bf16.mxu1 %v3585_v1  ;;  %v3672_v0 = vld [vmem:[#allocation4 + $0x3a4] ss:$16 sps:$4 sm:$0xff]   ;;  %v3675_v1 = vld [vmem:[#allocation4 + $0x3ac] ss:$16 sps:$4 sm:$0xff]  }
  0xa5   : > { %804 = vmatpush1.bf16.msra.mxu0 %v3580_v3  ;;  %845 = vmatpush1.bf16.msra.mxu1 %v3583_v4  ;;  %v3670_v3 = vld [vmem:[#allocation4 + $0x3a0] ss:$16 sps:$4 sm:$0xff]   ;;  %v3673_v4 = vld [vmem:[#allocation4 + $0x3a8] ss:$16 sps:$4 sm:$0xff]  }
  0xa6   : > { %805 = vmatprep.subr.bf16.mxu0 %v3588_v5  ;;  %846 = vmatprep.subr.bf16.mxu1 %v3591_v6  ;;  %v3678_v5 = vld [vmem:[#allocation4 + $0x3c4] ss:$16 sps:$4 sm:$0xff]   ;;  %v3681_v6 = vld [vmem:[#allocation4 + $0x3cc] ss:$16 sps:$4 sm:$0xff]  }
  0xa9   : > { %806 = vmatpush1.bf16.msra.mxu0 %v3586_v7  ;;  %847 = vmatpush1.bf16.msra.mxu1 %v3589_v8  ;;  %v3676_v7 = vld [vmem:[#allocation4 + $0x3c0] ss:$16 sps:$4 sm:$0xff]   ;;  %v3679_v8 = vld [vmem:[#allocation4 + $0x3c8] ss:$16 sps:$4 sm:$0xff]  }
  0xaa   : > { %1070 = vmatprep.subr.bf16.mxu0 %v3594_v9  ;;  %1111 = vmatprep.subr.bf16.mxu1 %v3597_v10  ;;  %v3684_v9 = vld [vmem:[#allocation4 + $0x3e4] ss:$16 sps:$4 sm:$0xff]   ;;  %v3687_v10 = vld [vmem:[#allocation4 + $0x3ec] ss:$16 sps:$4 sm:$0xff]  }
  0xac   : > { %824 = vmatmul.mubr.bf16.vlgmr.msra.gmra.mrb[4].mxu0 %v314_v11  ;;  %865 = vmatmul.mubr.bf16.vlgmr.msra.gmra.mrb[4].mxu1 %v314_v11  ;;  %v3682_v11 = vld [vmem:[#allocation4 + $0x3e0] ss:$16 sps:$4 sm:$0xff]  }
  0xad   : > { %1071 = vmatpush1.bf16.msra.mxu0 %v3592_v12  ;;  %1112 = vmatpush1.bf16.msra.mxu1 %v3595_v13  ;;  %v3685_v12 = vld [vmem:[#allocation4 + $0x3e8] ss:$16 sps:$4 sm:$0xff]   ;;  %v1156_v13 = vld [vmem:[#allocation2] sm:$0xf0] }
  0xae   : > { %1072 = vmatprep.subr.bf16.mxu0 %v3600_v14  ;;  %1113 = vmatprep.subr.bf16.mxu1 %v3603_v15  ;;  %v3690_v14 = vld [vmem:[#allocation4 + $0x404] ss:$16 sps:$4 sm:$0xff]   ;;  %v3693_v15 = vld [vmem:[#allocation4 + $0x40c] ss:$16 sps:$4 sm:$0xff]  }
  0xaf   : > { %1102 = vmatprep.mubr.bf16.mxu0 %v4067_v2  ;;  %1143 = vmatprep.mubr.bf16.mxu1 %v4067_v2 }
  0xb1   : > { %1073 = vmatpush1.bf16.msra.mxu0 %v3598_v16  ;;  %1114 = vmatpush1.bf16.msra.mxu1 %v3601_v17  ;;  %v1191_v16 = vrot.slane %v1156_v13, 4  ;;  %v3688_v17 = vld [vmem:[#allocation4 + $0x400] ss:$16 sps:$4 sm:$0xff]   ;;  %v3763_v13 = vld [vmem:[#allocation4 + $0x588] ss:$16 sps:$4 sm:$0xff]  }
  0xb2   : > { %1074 = vmatprep.subr.bf16.mxu0 %v3606_v18  ;;  %1115 = vmatprep.subr.bf16.mxu1 %v3609_v19  ;;  %v3691_v18 = vld [vmem:[#allocation4 + $0x408] ss:$16 sps:$4 sm:$0xff]   ;;  %v3696_v19 = vld [vmem:[#allocation4 + $0x424] ss:$16 sps:$4 sm:$0xff]  }
  0xb5   : > { %1075 = vmatpush1.bf16.msra.mxu0 %v3604_v20  ;;  %1116 = vmatpush1.bf16.msra.mxu1 %v3607_v21  ;;  %v3699_v20 = vld [vmem:[#allocation4 + $0x42c] ss:$16 sps:$4 sm:$0xff]   ;;  %v3694_v21 = vld [vmem:[#allocation4 + $0x420] ss:$16 sps:$4 sm:$0xff]  }
  0xb6   : > { %1076 = vmatprep.subr.bf16.mxu0 %v3612_v22  ;;  %1117 = vmatprep.subr.bf16.mxu1 %v3615_v23  ;;  %v3697_v22 = vld [vmem:[#allocation4 + $0x428] ss:$16 sps:$4 sm:$0xff]   ;;  %v3702_v23 = vld [vmem:[#allocation4 + $0x444] ss:$16 sps:$4 sm:$0xff]  }
  0xb9   : > { %1077 = vmatpush1.bf16.msra.mxu0 %v3610_v24  ;;  %1118 = vmatpush1.bf16.msra.mxu1 %v3613_v25  ;;  %v3705_v24 = vld [vmem:[#allocation4 + $0x44c] ss:$16 sps:$4 sm:$0xff]   ;;  %v3700_v25 = vld [vmem:[#allocation4 + $0x440] ss:$16 sps:$4 sm:$0xff]  }
  0xba   : > { %1078 = vmatprep.subr.bf16.mxu0 %v3618_v26  ;;  %1119 = vmatprep.subr.bf16.mxu1 %v3621_v27  ;;  %v3703_v26 = vld [vmem:[#allocation4 + $0x448] ss:$16 sps:$4 sm:$0xff]   ;;  %v3708_v27 = vld [vmem:[#allocation4 + $0x464] ss:$16 sps:$4 sm:$0xff]  }
  0xbd   : > { %1079 = vmatpush1.bf16.msra.mxu0 %v3616_v28  ;;  %1120 = vmatpush1.bf16.msra.mxu1 %v3619_v29  ;;  %v3711_v28 = vld [vmem:[#allocation4 + $0x46c] ss:$16 sps:$4 sm:$0xff]   ;;  %v3706_v29 = vld [vmem:[#allocation4 + $0x460] ss:$16 sps:$4 sm:$0xff]  }
  0xbe   : > { %1080 = vmatprep.subr.bf16.mxu0 %v3624_v30  ;;  %1121 = vmatprep.subr.bf16.mxu1 %v3627_v31  ;;  %v3709_v30 = vld [vmem:[#allocation4 + $0x468] ss:$16 sps:$4 sm:$0xff]   ;;  %v3714_v31 = vld [vmem:[#allocation4 + $0x484] ss:$16 sps:$4 sm:$0xff]  }
  0xc1   : > { %1081 = vmatpush1.bf16.msra.mxu0 %v3622_v32  ;;  %1122 = vmatpush1.bf16.msra.mxu1 %v3625_v33  ;;  %v3717_v32 = vld [vmem:[#allocation4 + $0x48c] ss:$16 sps:$4 sm:$0xff]   ;;  %v3712_v33 = vld [vmem:[#allocation4 + $0x480] ss:$16 sps:$4 sm:$0xff]  }
  0xc2   : > { %1082 = vmatprep.subr.bf16.mxu0 %v3630_v34  ;;  %1123 = vmatprep.subr.bf16.mxu1 %v3633_v35  ;;  %v3715_v34 = vld [vmem:[#allocation4 + $0x488] ss:$16 sps:$4 sm:$0xff]   ;;  %v3720_v35 = vld [vmem:[#allocation4 + $0x4a4] ss:$16 sps:$4 sm:$0xff]  }
  0xc5   : > { %1083 = vmatpush1.bf16.msra.mxu0 %v3628_v36  ;;  %1124 = vmatpush1.bf16.msra.mxu1 %v3631_v37  ;;  %v3723_v36 = vld [vmem:[#allocation4 + $0x4ac] ss:$16 sps:$4 sm:$0xff]   ;;  %v1439_v37 = vld [vmem:[#allocation2] sm:$0xf0] }
  0xc6   : > { %1084 = vmatprep.subr.bf16.mxu0 %v3636_v38  ;;  %1125 = vmatprep.subr.bf16.mxu1 %v3639_v39  ;;  %v3718_v38 = vld [vmem:[#allocation4 + $0x4a0] ss:$16 sps:$4 sm:$0xff]   ;;  %v3721_v39 = vld [vmem:[#allocation4 + $0x4a8] ss:$16 sps:$4 sm:$0xff]   ;;  %v1479_v42 = vshll.u32 %v1439_v37, 16 }
  0xc9   : > { %1085 = vmatpush1.bf16.msra.mxu0 %v3634_v40  ;;  %1126 = vmatpush1.bf16.msra.mxu1 %v3637_v41  ;;  %v3726_v40 = vld [vmem:[#allocation4 + $0x4c4] ss:$16 sps:$4 sm:$0xff]   ;;  %v1476_v41 = vshrl.u32 %v1439_v37, 16  ;;  %v3793_v37 = vld [vmem:[#allocation4 + $0x628] ss:$16 sps:$4 sm:$0xff]  }
  0xca   : > { %1353 = vmatprep.subr.bf16.mxu0 %v3642_v43  ;;  %1394 = vmatprep.subr.bf16.mxu1 %v3645_v44  ;;  %v3729_v43 = vld [vmem:[#allocation4 + $0x4cc] ss:$16 sps:$4 sm:$0xff]   ;;  %v4244_v44 = vld [vmem:[#allocation2 + $0x8] sm:$0x1] }
  0xcc   : > { %1103 = vmatmul.mubr.bf16.vlgmr.msra.gmra.mrb[8].mxu0 %v908_v45  ;;  %1144 = vmatmul.mubr.bf16.vlgmr.msra.gmra.mrb[8].mxu1 %v908_v45  ;;  %v3724_v45 = vld [vmem:[#allocation4 + $0x4c0] ss:$16 sps:$4 sm:$0xff]  }
  0xcd   : > { %1354 = vmatpush1.bf16.msra.mxu0 %v3640_v46  ;;  %1395 = vmatpush1.bf16.msra.mxu1 %v3643_v47  ;;  %v3727_v46 = vld [vmem:[#allocation4 + $0x4c8] ss:$16 sps:$4 sm:$0xff]   ;;  %v1478_v47 = vrot.slane %v1476_v41, 4 }
  0xce   : > { %1355 = vmatprep.subr.bf16.mxu0 %v3648_v48  ;;  %1396 = vmatprep.subr.bf16.mxu1 %v3651_v49  ;;  %v1481_v48 = vrot.slane %v1479_v42, 5  ;;  %v1484_v49 = vshll.u32 %v4244_v44, 16  ;;  %v3799_v41 = vld [vmem:[#allocation4 + $0x648] ss:$16 sps:$4 sm:$0xff]   ;;  %v3804_v42 = vld [vmem:[#allocation4 + $0x664] ss:$16 sps:$4 sm:$0xff]  }
  0xcf   : > { %1385 = vmatprep.mubr.bf16.mxu0 %v4067_v2  ;;  %1426 = vmatprep.mubr.bf16.mxu1 %v4067_v2 }
  0xd1   : > { %1356 = vmatpush1.bf16.msra.mxu0 %v3646_v50  ;;  %1397 = vmatpush1.bf16.msra.mxu1 %v3649_v51  ;;  %v3732_v50 = vld [vmem:[#allocation4 + $0x4e4] ss:$16 sps:$4 sm:$0xff]   ;;  %v3735_v51 = vld [vmem:[#allocation4 + $0x4ec] ss:$16 sps:$4 sm:$0xff]  }
  0xd2   : > { %1357 = vmatprep.subr.bf16.mxu0 %v3654_v52  ;;  %1398 = vmatprep.subr.bf16.mxu1 %v3657_v53  ;;  %v3730_v52 = vld [vmem:[#allocation4 + $0x4e0] ss:$16 sps:$4 sm:$0xff]   ;;  %v3733_v53 = vld [vmem:[#allocation4 + $0x4e8] ss:$16 sps:$4 sm:$0xff]  }
  0xd5   : > { %1358 = vmatpush1.bf16.msra.mxu0 %v3652_v54  ;;  %1399 = vmatpush1.bf16.msra.mxu1 %v3655_v55  ;;  %v1482_v54 = vor.u32 %v1481_v48, %v1478_v47  ;;  %v1486_v55 = vrot.slane %v1484_v49, 5  ;;  %v3813_v47 = vld [vmem:[#allocation4 + $0x68c] ss:$16 sps:$4 sm:$0xff]   ;;  %v3808_v48 = vld [vmem:[#allocation4 + $0x680] ss:$16 sps:$4 sm:$0xff]  }
  0xd6   : > { %1359 = vmatprep.subr.bf16.mxu0 %v3660_v56  ;;  %1400 = vmatprep.subr.bf16.mxu1 %v3663_v57  ;;  %v3738_v56 = vld [vmem:[#allocation4 + $0x504] ss:$16 sps:$4 sm:$0xff]   ;;  %v3741_v57 = vld [vmem:[#allocation4 + $0x50c] ss:$16 sps:$4 sm:$0xff]   ;;  %v3811_v49 = vld [vmem:[#allocation4 + $0x688] ss:$16 sps:$4 sm:$0xff]  }
  0xd9   : > { %1360 = vmatpush1.bf16.msra.mxu0 %v3658_v58  ;;  %1401 = vmatpush1.bf16.msra.mxu1 %v3661_v59  ;;  %v1487_v58 = vsel %vm1474_vm0, %v1482_v54, %v1486_v55  ;;  %v3736_v59 = vld [vmem:[#allocation4 + $0x500] ss:$16 sps:$4 sm:$0xff]   ;;  %v3822_v54 = vld [vmem:[#allocation4 + $0x6c4] ss:$16 sps:$4 sm:$0xff]   ;;  %v3825_v55 = vld [vmem:[#allocation4 + $0x6cc] ss:$16 sps:$4 sm:$0xff]  }
  0xda   : > { %1361 = vmatprep.subr.bf16.mxu0 %v3666_v60  ;;  %1402 = vmatprep.subr.bf16.mxu1 %v3669_v61  ;;  %v3739_v60 = vld [vmem:[#allocation4 + $0x508] ss:$16 sps:$4 sm:$0xff]   ;;  %v3744_v61 = vld [vmem:[#allocation4 + $0x524] ss:$16 sps:$4 sm:$0xff]  }
  0xdd   : > { %1362 = vmatpush1.bf16.msra.mxu0 %v3664_v62  ;;  %1403 = vmatpush1.bf16.msra.mxu1 %v3667_v63  ;;  %v3747_v62 = vld [vmem:[#allocation4 + $0x52c] ss:$16 sps:$4 sm:$0xff]   ;;  %v3742_v63 = vld [vmem:[#allocation4 + $0x520] ss:$16 sps:$4 sm:$0xff]  }
  0xde   : > { %1363 = vmatprep.subr.bf16.mxu0 %v3672_v0  ;;  %1404 = vmatprep.subr.bf16.mxu1 %v3675_v1  ;;  %v3745_v0 = vld [vmem:[#allocation4 + $0x528] ss:$16 sps:$4 sm:$0xff]   ;;  %v3750_v1 = vld [vmem:[#allocation4 + $0x544] ss:$16 sps:$4 sm:$0xff]  }
  0xe1   : > { %1364 = vmatpush1.bf16.msra.mxu0 %v3670_v3  ;;  %1405 = vmatpush1.bf16.msra.mxu1 %v3673_v4  ;;  %v3753_v3 = vld [vmem:[#allocation4 + $0x54c] ss:$16 sps:$4 sm:$0xff]   ;;  %v3748_v4 = vld [vmem:[#allocation4 + $0x540] ss:$16 sps:$4 sm:$0xff]  }
  0xe2   : > { %1365 = vmatprep.subr.bf16.mxu0 %v3678_v5  ;;  %1406 = vmatprep.subr.bf16.mxu1 %v3681_v6  ;;  %v3751_v5 = vld [vmem:[#allocation4 + $0x548] ss:$16 sps:$4 sm:$0xff]   ;;  %v3756_v6 = vld [vmem:[#allocation4 + $0x564] ss:$16 sps:$4 sm:$0xff]  }
  0xe5   : > { %1366 = vmatpush1.bf16.msra.mxu0 %v3676_v7  ;;  %1407 = vmatpush1.bf16.msra.mxu1 %v3679_v8  ;;  %v3759_v7 = vld [vmem:[#allocation4 + $0x56c] ss:$16 sps:$4 sm:$0xff]   ;;  %v3754_v8 = vld [vmem:[#allocation4 + $0x560] ss:$16 sps:$4 sm:$0xff]  }
  0xe6   : > { %1367 = vmatprep.subr.bf16.mxu0 %v3684_v9  ;;  %1408 = vmatprep.subr.bf16.mxu1 %v3687_v10  ;;  %v3757_v9 = vld [vmem:[#allocation4 + $0x568] ss:$16 sps:$4 sm:$0xff]   ;;  %v3762_v10 = vld [vmem:[#allocation4 + $0x584] ss:$16 sps:$4 sm:$0xff]  }
  0xe9   : > { %1368 = vmatpush1.bf16.msra.mxu0 %v3682_v11  ;;  %1409 = vmatpush1.bf16.msra.mxu1 %v3685_v12  ;;  %v3765_v11 = vld [vmem:[#allocation4 + $0x58c] ss:$16 sps:$4 sm:$0xff]   ;;  %v3760_v12 = vld [vmem:[#allocation4 + $0x580] ss:$16 sps:$4 sm:$0xff]  }
  0xea   : > { %1649 = vmatprep.subr.bf16.mxu0 %v3690_v14  ;;  %1690 = vmatprep.subr.bf16.mxu1 %v3693_v15  ;;  %v3768_v14 = vld [vmem:[#allocation4 + $0x5a4] ss:$16 sps:$4 sm:$0xff]   ;;  %v3771_v15 = vld [vmem:[#allocation4 + $0x5ac] ss:$16 sps:$4 sm:$0xff]  }
  0xec   : > { %1386 = vmatmul.mubr.bf16.vlgmr.msra.gmra.mrb[12].mxu0 %v1191_v16  ;;  %1427 = vmatmul.mubr.bf16.vlgmr.msra.gmra.mrb[12].mxu1 %v1191_v16  ;;  %v3766_v16 = vld [vmem:[#allocation4 + $0x5a0] ss:$16 sps:$4 sm:$0xff]  }
  0xed   : > { %1650 = vmatpush1.bf16.msra.mxu0 %v3688_v17  ;;  %1691 = vmatpush1.bf16.msra.mxu1 %v3691_v18  ;;  %v3769_v17 = vld [vmem:[#allocation4 + $0x5a8] ss:$16 sps:$4 sm:$0xff]   ;;  %v3774_v18 = vld [vmem:[#allocation4 + $0x5c4] ss:$16 sps:$4 sm:$0xff]  }
  0xee   : > { %1651 = vmatprep.subr.bf16.mxu0 %v3696_v19  ;;  %1692 = vmatprep.subr.bf16.mxu1 %v3699_v20  ;;  %v3777_v19 = vld [vmem:[#allocation4 + $0x5cc] ss:$16 sps:$4 sm:$0xff]   ;;  %v3772_v20 = vld [vmem:[#allocation4 + $0x5c0] ss:$16 sps:$4 sm:$0xff]  }
  0xef   : > { %1681 = vmatprep.mubr.bf16.mxu0 %v4067_v2  ;;  %1722 = vmatprep.mubr.bf16.mxu1 %v4067_v2 }
  0xf1   : > { %1652 = vmatpush1.bf16.msra.mxu0 %v3694_v21  ;;  %1693 = vmatpush1.bf16.msra.mxu1 %v3697_v22  ;;  %v3775_v21 = vld [vmem:[#allocation4 + $0x5c8] ss:$16 sps:$4 sm:$0xff]   ;;  %v3780_v22 = vld [vmem:[#allocation4 + $0x5e4] ss:$16 sps:$4 sm:$0xff]  }
  0xf2   : > { %1653 = vmatprep.subr.bf16.mxu0 %v3702_v23  ;;  %1694 = vmatprep.subr.bf16.mxu1 %v3705_v24  ;;  %v3783_v23 = vld [vmem:[#allocation4 + $0x5ec] ss:$16 sps:$4 sm:$0xff]   ;;  %v1735_v24 = vld [vmem:[#allocation2] sm:$0xe0] }
  0xf5   : > { %1654 = vmatpush1.bf16.msra.mxu0 %v3700_v25  ;;  %1695 = vmatpush1.bf16.msra.mxu1 %v3703_v26  ;;  %v3778_v25 = vld [vmem:[#allocation4 + $0x5e0] ss:$16 sps:$4 sm:$0xff]   ;;  %v3781_v26 = vld [vmem:[#allocation4 + $0x5e8] ss:$16 sps:$4 sm:$0xff]  }
  0xf6   : > { %1655 = vmatprep.subr.bf16.mxu0 %v3708_v27  ;;  %1696 = vmatprep.subr.bf16.mxu1 %v3711_v28  ;;  %v1772_v27 = vrot.slane %v1735_v24, 5  ;;  %v1773_v28 = vrot.slane %v4244_v44, 5  ;;  %v3802_v44 = vld [vmem:[#allocation4 + $0x660] ss:$16 sps:$4 sm:$0xff]   ;;  %v2302_v24 = vld [vmem:[#allocation2 + $0x8] sm:$0x1f] }
  0xf9   : > { %1656 = vmatpush1.bf16.msra.mxu0 %v3706_v29  ;;  %1697 = vmatpush1.bf16.msra.mxu1 %v3709_v30  ;;  %v3786_v29 = vld [vmem:[#allocation4 + $0x604] ss:$16 sps:$4 sm:$0xff]   ;;  %v3789_v30 = vld [vmem:[#allocation4 + $0x60c] ss:$16 sps:$4 sm:$0xff]  }
  0xfa   : > { %1657 = vmatprep.subr.bf16.mxu0 %v3714_v31  ;;  %1698 = vmatprep.subr.bf16.mxu1 %v3717_v32  ;;  %v3784_v31 = vld [vmem:[#allocation4 + $0x600] ss:$16 sps:$4 sm:$0xff]   ;;  %v3787_v32 = vld [vmem:[#allocation4 + $0x608] ss:$16 sps:$4 sm:$0xff]  }
  0xfd   : > { %1658 = vmatpush1.bf16.msra.mxu0 %v3712_v33  ;;  %1699 = vmatpush1.bf16.msra.mxu1 %v3715_v34  ;;  %v1774_v33 = vsel %vm1771_vm1, %v1772_v27, %v1773_v28  ;;  %v3792_v34 = vld [vmem:[#allocation4 + $0x624] ss:$16 sps:$4 sm:$0xff]  }
  0xfe   : > { %1659 = vmatprep.subr.bf16.mxu0 %v3720_v35  ;;  %1700 = vmatprep.subr.bf16.mxu1 %v3723_v36  ;;  %v3795_v35 = vld [vmem:[#allocation4 + $0x62c] ss:$16 sps:$4 sm:$0xff]   ;;  %v3790_v36 = vld [vmem:[#allocation4 + $0x620] ss:$16 sps:$4 sm:$0xff]  }
 0x101   : > { %1660 = vmatpush1.bf16.msra.mxu0 %v3718_v38  ;;  %1701 = vmatpush1.bf16.msra.mxu1 %v3721_v39  ;;  %v3798_v38 = vld [vmem:[#allocation4 + $0x644] ss:$16 sps:$4 sm:$0xff]   ;;  %v3801_v39 = vld [vmem:[#allocation4 + $0x64c] ss:$16 sps:$4 sm:$0xff]  }
 0x102   : > { %1661 = vmatprep.subr.bf16.mxu0 %v3726_v40  ;;  %1702 = vmatprep.subr.bf16.mxu1 %v3729_v43  ;;  %v3796_v40 = vld [vmem:[#allocation4 + $0x640] ss:$16 sps:$4 sm:$0xff]   ;;  %v3807_v43 = vld [vmem:[#allocation4 + $0x66c] ss:$16 sps:$4 sm:$0xff]  }
 0x105   : > { %1662 = vmatpush1.bf16.msra.mxu0 %v3724_v45  ;;  %1703 = vmatpush1.bf16.msra.mxu1 %v3727_v46  ;;  %v3805_v45 = vld [vmem:[#allocation4 + $0x668] ss:$16 sps:$4 sm:$0xff]   ;;  %v3810_v46 = vld [vmem:[#allocation4 + $0x684] ss:$16 sps:$4 sm:$0xff]  }
 0x106   : > { %1663 = vmatprep.subr.bf16.mxu0 %v3732_v50  ;;  %1704 = vmatprep.subr.bf16.mxu1 %v3735_v51  ;;  %v3816_v50 = vld [vmem:[#allocation4 + $0x6a4] ss:$16 sps:$4 sm:$0xff]   ;;  %v3819_v51 = vld [vmem:[#allocation4 + $0x6ac] ss:$16 sps:$4 sm:$0xff]  }
 0x109   : > { %1664 = vmatpush1.bf16.msra.mxu0 %v3730_v52  ;;  %1705 = vmatpush1.bf16.msra.mxu1 %v3733_v53  ;;  %v3814_v52 = vld [vmem:[#allocation4 + $0x6a0] ss:$16 sps:$4 sm:$0xff]   ;;  %v3817_v53 = vld [vmem:[#allocation4 + $0x6a8] ss:$16 sps:$4 sm:$0xff]  }
 0x10a   : > { %1936 = vmatprep.subr.bf16.mxu0 %v3738_v56  ;;  %1977 = vmatprep.subr.bf16.mxu1 %v3741_v57  ;;  %v3820_v56 = vld [vmem:[#allocation4 + $0x6c0] ss:$16 sps:$4 sm:$0xff]   ;;  %v3823_v57 = vld [vmem:[#allocation4 + $0x6c8] ss:$16 sps:$4 sm:$0xff]  }
 0x10c   : > { %1682 = vmatmul.mubr.bf16.vlgmr.msra.gmra.mrb[16].mxu0 %v1487_v58  ;;  %1723 = vmatmul.mubr.bf16.vlgmr.msra.gmra.mrb[16].mxu1 %v1487_v58  ;;  %v3828_v58 = vld [vmem:[#allocation4 + $0x6e4] ss:$16 sps:$4 sm:$0xff]  }
 0x10d   : > { %1937 = vmatpush1.bf16.msra.mxu0 %v3736_v59  ;;  %1978 = vmatpush1.bf16.msra.mxu1 %v3739_v60  ;;  %v3831_v59 = vld [vmem:[#allocation4 + $0x6ec] ss:$16 sps:$4 sm:$0xff]   ;;  %v3826_v60 = vld [vmem:[#allocation4 + $0x6e0] ss:$16 sps:$4 sm:$0xff]  }
 0x10e   : > { %1938 = vmatprep.subr.bf16.mxu0 %v3744_v61  ;;  %1979 = vmatprep.subr.bf16.mxu1 %v3747_v62  ;;  %v3829_v61 = vld [vmem:[#allocation4 + $0x6e8] ss:$16 sps:$4 sm:$0xff]   ;;  %v3834_v62 = vld [vmem:[#allocation4 + $0x704] ss:$16 sps:$4 sm:$0xff]  }
 0x10f   : > { %1968 = vmatprep.mubr.bf16.mxu0 %v4067_v2  ;;  %2009 = vmatprep.mubr.bf16.mxu1 %v4067_v2 }
 0x111   : > { %1939 = vmatpush1.bf16.msra.mxu0 %v3742_v63  ;;  %1980 = vmatpush1.bf16.msra.mxu1 %v3745_v0  ;;  %v3837_v63 = vld [vmem:[#allocation4 + $0x70c] ss:$16 sps:$4 sm:$0xff]   ;;  %v2022_v0 = vld [vmem:[#allocation2 + $0x8] sm:$0xf] }
 0x112   : > { %1940 = vmatprep.subr.bf16.mxu0 %v3750_v1  ;;  %1981 = vmatprep.subr.bf16.mxu1 %v3753_v3  ;;  %v3832_v1 = vld [vmem:[#allocation4 + $0x700] ss:$16 sps:$4 sm:$0xff]   ;;  %v3835_v3 = vld [vmem:[#allocation4 + $0x708] ss:$16 sps:$4 sm:$0xff]  }
 0x115   : > { %1941 = vmatpush1.bf16.msra.mxu0 %v3748_v4  ;;  %1982 = vmatpush1.bf16.msra.mxu1 %v3751_v5  ;;  %v3840_v4 = vld [vmem:[#allocation4 + $0x724] ss:$16 sps:$4 sm:$0xff]   ;;  %v3843_v5 = vld [vmem:[#allocation4 + $0x72c] ss:$16 sps:$4 sm:$0xff]  }
 0x116   : > { %1942 = vmatprep.subr.bf16.mxu0 %v3756_v6  ;;  %1983 = vmatprep.subr.bf16.mxu1 %v3759_v7  ;;  %v3838_v6 = vld [vmem:[#allocation4 + $0x720] ss:$16 sps:$4 sm:$0xff]   ;;  %v3841_v7 = vld [vmem:[#allocation4 + $0x728] ss:$16 sps:$4 sm:$0xff]  }
 0x119   : > { %1943 = vmatpush1.bf16.msra.mxu0 %v3754_v8  ;;  %1984 = vmatpush1.bf16.msra.mxu1 %v3757_v9  ;;  %v3846_v8 = vld [vmem:[#allocation4 + $0x744] ss:$16 sps:$4 sm:$0xff]   ;;  %v3849_v9 = vld [vmem:[#allocation4 + $0x74c] ss:$16 sps:$4 sm:$0xff]  }
 0x11a   : > { %1944 = vmatprep.subr.bf16.mxu0 %v3762_v10  ;;  %1985 = vmatprep.subr.bf16.mxu1 %v3765_v11  ;;  %v3844_v10 = vld [vmem:[#allocation4 + $0x740] ss:$16 sps:$4 sm:$0xff]   ;;  %v3847_v11 = vld [vmem:[#allocation4 + $0x748] ss:$16 sps:$4 sm:$0xff]  }
 0x11d   : > { %1945 = vmatpush1.bf16.msra.mxu0 %v3760_v12  ;;  %1986 = vmatpush1.bf16.msra.mxu1 %v3763_v13  ;;  %v3852_v12 = vld [vmem:[#allocation4 + $0x764] ss:$16 sps:$4 sm:$0xff]   ;;  %v3855_v13 = vld [vmem:[#allocation4 + $0x76c] ss:$16 sps:$4 sm:$0xff]  }
 0x11e   : > { %1946 = vmatprep.subr.bf16.mxu0 %v3768_v14  ;;  %1987 = vmatprep.subr.bf16.mxu1 %v3771_v15  ;;  %v3850_v14 = vld [vmem:[#allocation4 + $0x760] ss:$16 sps:$4 sm:$0xff]   ;;  %v3853_v15 = vld [vmem:[#allocation4 + $0x768] ss:$16 sps:$4 sm:$0xff]  }
 0x121   : > { %1947 = vmatpush1.bf16.msra.mxu0 %v3766_v16  ;;  %1988 = vmatpush1.bf16.msra.mxu1 %v3769_v17  ;;  %v3858_v16 = vld [vmem:[#allocation4 + $0x784] ss:$16 sps:$4 sm:$0xff]   ;;  %v3861_v17 = vld [vmem:[#allocation4 + $0x78c] ss:$16 sps:$4 sm:$0xff]  }
 0x122   : > { %1948 = vmatprep.subr.bf16.mxu0 %v3774_v18  ;;  %1989 = vmatprep.subr.bf16.mxu1 %v3777_v19  ;;  %v3856_v18 = vld [vmem:[#allocation4 + $0x780] ss:$16 sps:$4 sm:$0xff]   ;;  %v3859_v19 = vld [vmem:[#allocation4 + $0x788] ss:$16 sps:$4 sm:$0xff]  }
 0x125   : > { %1949 = vmatpush1.bf16.msra.mxu0 %v3772_v20  ;;  %1990 = vmatpush1.bf16.msra.mxu1 %v3775_v21  ;;  %v3864_v20 = vld [vmem:[#allocation4 + $0x7a4] ss:$16 sps:$4 sm:$0xff]   ;;  %v3867_v21 = vld [vmem:[#allocation4 + $0x7ac] ss:$16 sps:$4 sm:$0xff]  }
 0x126   : > { %1950 = vmatprep.subr.bf16.mxu0 %v3780_v22  ;;  %1991 = vmatprep.subr.bf16.mxu1 %v3783_v23  ;;  %v3862_v22 = vld [vmem:[#allocation4 + $0x7a0] ss:$16 sps:$4 sm:$0xff]   ;;  %v3865_v23 = vld [vmem:[#allocation4 + $0x7a8] ss:$16 sps:$4 sm:$0xff]  }
 0x129   : > { %1951 = vmatpush1.bf16.msra.mxu0 %v3778_v25  ;;  %1992 = vmatpush1.bf16.msra.mxu1 %v3781_v26  ;;  %v3870_v25 = vld [vmem:[#allocation4 + $0x7c4] ss:$16 sps:$4 sm:$0xff]   ;;  %v3873_v26 = vld [vmem:[#allocation4 + $0x7cc] ss:$16 sps:$4 sm:$0xff]  }
 0x12a   : > { %2216 = vmatprep.subr.bf16.mxu0 %v3786_v29  ;;  %2257 = vmatprep.subr.bf16.mxu1 %v3789_v30 }
 0x12c   : > { %1969 = vmatmul.mubr.bf16.vlgmr.msra.gmra.mrb[20].mxu0 %v1774_v33  ;;  %2010 = vmatmul.mubr.bf16.vlgmr.msra.gmra.mrb[20].mxu1 %v1774_v33 }
 0x12d   : > { %2217 = vmatpush1.bf16.msra.mxu0 %v3784_v31  ;;  %2258 = vmatpush1.bf16.msra.mxu1 %v3787_v32  ;;  %v2339_v31 = vshll.u32 %v2302_v24, 16 }
 0x12e   : > { %2218 = vmatprep.subr.bf16.mxu0 %v3792_v34  ;;  %2259 = vmatprep.subr.bf16.mxu1 %v3795_v35  ;;  %v3868_v34 = vld [vmem:[#allocation4 + $0x7c0] ss:$16 sps:$4 sm:$0xff]   ;;  %v3871_v35 = vld [vmem:[#allocation4 + $0x7c8] ss:$16 sps:$4 sm:$0xff]  }
 0x12f   : > { %2248 = vmatprep.mubr.bf16.mxu0 %v4067_v2  ;;  %2289 = vmatprep.mubr.bf16.mxu1 %v4067_v2 }
 0x131   : > { %2219 = vmatpush1.bf16.msra.mxu0 %v3790_v36  ;;  %2260 = vmatpush1.bf16.msra.mxu1 %v3793_v37 }
 0x132   : > { %2220 = vmatprep.subr.bf16.mxu0 %v3798_v38  ;;  %2261 = vmatprep.subr.bf16.mxu1 %v3801_v39  ;;  %v3876_v38 = vld [vmem:[#allocation4 + $0x7e4] ss:$16 sps:$4 sm:$0xff]   ;;  %v3879_v39 = vld [vmem:[#allocation4 + $0x7ec] ss:$16 sps:$4 sm:$0xff]  }
 0x135   : > { %2221 = vmatpush1.bf16.msra.mxu0 %v3796_v40  ;;  %2262 = vmatpush1.bf16.msra.mxu1 %v3799_v41  ;;  %v2337_v40 = vshrl.u32 %v2302_v24, 16  ;;  %v2341_v41 = vrot.slane %v2339_v31, 1  ;;  %v3925_v24 = vld [vmem:[#allocation4 + $0x8e8] ss:$16 sps:$4 sm:$0xff]  }
 0x136   : > { %2222 = vmatprep.subr.bf16.mxu0 %v3804_v42  ;;  %2263 = vmatprep.subr.bf16.mxu1 %v3807_v43  ;;  %v3874_v42 = vld [vmem:[#allocation4 + $0x7e0] ss:$16 sps:$4 sm:$0xff]   ;;  %v3877_v43 = vld [vmem:[#allocation4 + $0x7e8] ss:$16 sps:$4 sm:$0xff]  }
 0x139   : > { %2223 = vmatpush1.bf16.msra.mxu0 %v3802_v44  ;;  %2264 = vmatpush1.bf16.msra.mxu1 %v3805_v45  ;;  %v3882_v44 = vld [vmem:[#allocation4 + $0x804] ss:$16 sps:$4 sm:$0xff]   ;;  %v3885_v45 = vld [vmem:[#allocation4 + $0x80c] ss:$16 sps:$4 sm:$0xff]  }
 0x13a   : > { %2224 = vmatprep.subr.bf16.mxu0 %v3810_v46  ;;  %2265 = vmatprep.subr.bf16.mxu1 %v3813_v47  ;;  %v2342_v46 = vor.u32 %v2341_v41, %v2337_v40  ;;  %v3880_v47 = vld [vmem:[#allocation4 + $0x800] ss:$16 sps:$4 sm:$0xff]  }
 0x13d   : > { %2225 = vmatpush1.bf16.msra.mxu0 %v3808_v48  ;;  %2266 = vmatpush1.bf16.msra.mxu1 %v3811_v49  ;;  %v3883_v48 = vld [vmem:[#allocation4 + $0x808] ss:$16 sps:$4 sm:$0xff]   ;;  %v3888_v49 = vld [vmem:[#allocation4 + $0x824] ss:$16 sps:$4 sm:$0xff]  }
 0x13e   : > { %2226 = vmatprep.subr.bf16.mxu0 %v3816_v50  ;;  %2267 = vmatprep.subr.bf16.mxu1 %v3819_v51  ;;  %v3891_v50 = vld [vmem:[#allocation4 + $0x82c] ss:$16 sps:$4 sm:$0xff]   ;;  %v3886_v51 = vld [vmem:[#allocation4 + $0x820] ss:$16 sps:$4 sm:$0xff]  }
 0x141   : > { %2227 = vmatpush1.bf16.msra.mxu0 %v3814_v52  ;;  %2268 = vmatpush1.bf16.msra.mxu1 %v3817_v53  ;;  %v3889_v52 = vld [vmem:[#allocation4 + $0x828] ss:$16 sps:$4 sm:$0xff]   ;;  %v3894_v53 = vld [vmem:[#allocation4 + $0x844] ss:$16 sps:$4 sm:$0xff]  }
 0x142   : > { %2228 = vmatprep.subr.bf16.mxu0 %v3822_v54  ;;  %2269 = vmatprep.subr.bf16.mxu1 %v3825_v55  ;;  %v3897_v54 = vld [vmem:[#allocation4 + $0x84c] ss:$16 sps:$4 sm:$0xff]   ;;  %v3892_v55 = vld [vmem:[#allocation4 + $0x840] ss:$16 sps:$4 sm:$0xff]  }
 0x145   : > { %2229 = vmatpush1.bf16.msra.mxu0 %v3820_v56  ;;  %2270 = vmatpush1.bf16.msra.mxu1 %v3823_v57  ;;  %v3895_v56 = vld [vmem:[#allocation4 + $0x848] ss:$16 sps:$4 sm:$0xff]   ;;  %v3900_v57 = vld [vmem:[#allocation4 + $0x864] ss:$16 sps:$4 sm:$0xff]  }
 0x146   : > { %2230 = vmatprep.subr.bf16.mxu0 %v3828_v58  ;;  %2271 = vmatprep.subr.bf16.mxu1 %v3831_v59  ;;  %v3903_v58 = vld [vmem:[#allocation4 + $0x86c] ss:$16 sps:$4 sm:$0xff]   ;;  %v3898_v59 = vld [vmem:[#allocation4 + $0x860] ss:$16 sps:$4 sm:$0xff]  }
 0x149   : > { %2231 = vmatpush1.bf16.msra.mxu0 %v3826_v60  ;;  %2272 = vmatpush1.bf16.msra.mxu1 %v3829_v61  ;;  %v3901_v60 = vld [vmem:[#allocation4 + $0x868] ss:$16 sps:$4 sm:$0xff]   ;;  %v3906_v61 = vld [vmem:[#allocation4 + $0x884] ss:$16 sps:$4 sm:$0xff]  }
 0x14a   : > { %2504 = vmatprep.subr.bf16.mxu0 %v3834_v62  ;;  %2545 = vmatprep.subr.bf16.mxu1 %v3837_v63  ;;  %v3909_v62 = vld [vmem:[#allocation4 + $0x88c] ss:$16 sps:$4 sm:$0xff]   ;;  %v3904_v63 = vld [vmem:[#allocation4 + $0x880] ss:$16 sps:$4 sm:$0xff]  }
 0x14c   : > { %2249 = vmatmul.mubr.bf16.vlgmr.msra.gmra.mrb[24].mxu0 %v2022_v0  ;;  %2290 = vmatmul.mubr.bf16.vlgmr.msra.gmra.mrb[24].mxu1 %v2022_v0  ;;  %v3912_v0 = vld [vmem:[#allocation4 + $0x8a4] ss:$16 sps:$4 sm:$0xff]  }
 0x14d   : > { %2505 = vmatpush1.bf16.msra.mxu0 %v3832_v1  ;;  %2546 = vmatpush1.bf16.msra.mxu1 %v3835_v3  ;;  %v3915_v1 = vld [vmem:[#allocation4 + $0x8ac] ss:$16 sps:$4 sm:$0xff]   ;;  %v3910_v3 = vld [vmem:[#allocation4 + $0x8a0] ss:$16 sps:$4 sm:$0xff]  }
 0x14e   : > { %2506 = vmatprep.subr.bf16.mxu0 %v3840_v4  ;;  %2547 = vmatprep.subr.bf16.mxu1 %v3843_v5  ;;  %v3913_v4 = vld [vmem:[#allocation4 + $0x8a8] ss:$16 sps:$4 sm:$0xff]   ;;  %v3918_v5 = vld [vmem:[#allocation4 + $0x8c4] ss:$16 sps:$4 sm:$0xff]  }
 0x14f   : > { %2536 = vmatprep.mubr.bf16.mxu0 %v4067_v2  ;;  %2577 = vmatprep.mubr.bf16.mxu1 %v4067_v2 }
 0x151   : > { %2507 = vmatpush1.bf16.msra.mxu0 %v3838_v6  ;;  %2548 = vmatpush1.bf16.msra.mxu1 %v3841_v7  ;;  %v3921_v6 = vld [vmem:[#allocation4 + $0x8cc] ss:$16 sps:$4 sm:$0xff]  }
 0x152   : > { %2508 = vmatprep.subr.bf16.mxu0 %v3846_v8  ;;  %2549 = vmatprep.subr.bf16.mxu1 %v3849_v9 }
 0x155   : > { %2509 = vmatpush1.bf16.msra.mxu0 %v3844_v10  ;;  %2550 = vmatpush1.bf16.msra.mxu1 %v3847_v11 }
 0x156   : > { %2510 = vmatprep.subr.bf16.mxu0 %v3852_v12  ;;  %2551 = vmatprep.subr.bf16.mxu1 %v3855_v13 }
 0x159   : > { %2511 = vmatpush1.bf16.msra.mxu0 %v3850_v14  ;;  %2552 = vmatpush1.bf16.msra.mxu1 %v3853_v15 }
 0x15a   : > { %2512 = vmatprep.subr.bf16.mxu0 %v3858_v16  ;;  %2553 = vmatprep.subr.bf16.mxu1 %v3861_v17  ;;  %v3916_v17 = vld [vmem:[#allocation4 + $0x8c0] ss:$16 sps:$4 sm:$0xff]  }
 0x15d   : > { %2513 = vmatpush1.bf16.msra.mxu0 %v3856_v18  ;;  %2554 = vmatpush1.bf16.msra.mxu1 %v3859_v19  ;;  %v3919_v18 = vld [vmem:[#allocation4 + $0x8c8] ss:$16 sps:$4 sm:$0xff]  }
 0x15e   : > { %2514 = vmatprep.subr.bf16.mxu0 %v3864_v20  ;;  %2555 = vmatprep.subr.bf16.mxu1 %v3867_v21  ;;  %v3924_v21 = vld [vmem:[#allocation4 + $0x8e4] ss:$16 sps:$4 sm:$0xff]  }
 0x15f   : > { %v4254_v27 = vpop.f32.mrb[0].mxu0  ;;  %v4256_v28 = vpop.f32.mrb[0].mxu1 }
 0x160   : > { %v4258_v29 = vpop.f32.mrb[1].mxu0  ;;  %v4260_v30 = vpop.f32.mrb[1].mxu1 }
 0x161   : > { %v587_v32 = vpop.f32.mrb[2].mxu0  ;;  %v628_v33 = vpop.f32.mrb[2].mxu1  ;;  %2515 = vmatpush1.bf16.msra.mxu0 %v3862_v22  ;;  %2556 = vmatpush1.bf16.msra.mxu1 %v3865_v23  ;;  %v3927_v22 = vld [vmem:[#allocation4 + $0x8ec] ss:$16 sps:$4 sm:$0xff]   ;;  %v3922_v23 = vld [vmem:[#allocation4 + $0x8e0] ss:$16 sps:$4 sm:$0xff]  }
 0x162   : > { %v588_v36 = vpop.f32.mrb[3].mxu0  ;;  %v629_v37 = vpop.f32.mrb[3].mxu1  ;;  %2516 = vmatprep.subr.bf16.mxu0 %v3870_v25  ;;  %2557 = vmatprep.subr.bf16.mxu1 %v3873_v26  ;;  %v2590_v25 = vld [vmem:[#allocation2 + $0x8] sm:$0x1e] }
 0x163   : > { %v2625_v26 = vrot.slane %v2590_v25, 1 }
 0x165   : > { %2517 = vmatpush1.bf16.msra.mxu0 %v3868_v34  ;;  %2558 = vmatpush1.bf16.msra.mxu1 %v3871_v35 }
 0x166   : > { %2518 = vmatprep.subr.bf16.mxu0 %v3876_v38  ;;  %2559 = vmatprep.subr.bf16.mxu1 %v3879_v39 }
 0x169   : > { %2519 = vmatpush1.bf16.msra.mxu0 %v3874_v42  ;;  %2560 = vmatpush1.bf16.msra.mxu1 %v3877_v43 }
 0x16a   : > { %2787 = vmatprep.subr.bf16.mxu0 %v3882_v44  ;;  %2828 = vmatprep.subr.bf16.mxu1 %v3885_v45 }
 0x16c   : > { %2537 = vmatmul.mubr.bf16.vlgmr.msra.gmra.mrb[28].mxu0 %v2342_v46  ;;  %2578 = vmatmul.mubr.bf16.vlgmr.msra.gmra.mrb[28].mxu1 %v2342_v46 }
 0x16d   : > { %2788 = vmatpush1.bf16.msra.mxu0 %v3880_v47  ;;  %2829 = vmatpush1.bf16.msra.mxu1 %v3883_v48 }
 0x16e   : > { %2789 = vmatprep.subr.bf16.mxu0 %v3888_v49  ;;  %2830 = vmatprep.subr.bf16.mxu1 %v3891_v50 }
 0x16f   : > { %2819 = vmatprep.mubr.bf16.mxu0 %v4067_v2  ;;  %2860 = vmatprep.mubr.bf16.mxu1 %v4067_v2  ;;  %v3907_v2 = vld [vmem:[#allocation4 + $0x888] ss:$16 sps:$4 sm:$0xff]  }
 0x171   : > { %2790 = vmatpush1.bf16.msra.mxu0 %v3886_v51  ;;  %2831 = vmatpush1.bf16.msra.mxu1 %v3889_v52 }
 0x172   : > { %2791 = vmatprep.subr.bf16.mxu0 %v3894_v53  ;;  %2832 = vmatprep.subr.bf16.mxu1 %v3897_v54 }
 0x175   : > { %2792 = vmatpush1.bf16.msra.mxu0 %v3892_v55  ;;  %2833 = vmatpush1.bf16.msra.mxu1 %v3895_v56 }
 0x176   : > { %2793 = vmatprep.subr.bf16.mxu0 %v3900_v57  ;;  %2834 = vmatprep.subr.bf16.mxu1 %v3903_v58 }
 0x179   : > { %2794 = vmatpush1.bf16.msra.mxu0 %v3898_v59  ;;  %2835 = vmatpush1.bf16.msra.mxu1 %v3901_v60 }
 0x17a   : > { %2795 = vmatprep.subr.bf16.mxu0 %v3906_v61  ;;  %2836 = vmatprep.subr.bf16.mxu1 %v3909_v62 }
 0x17d   : > { %2796 = vmatpush1.bf16.msra.mxu0 %v3904_v63  ;;  %2837 = vmatpush1.bf16.msra.mxu1 %v3907_v2 }
 0x17e   : > { %2797 = vmatprep.subr.bf16.mxu0 %v3912_v0  ;;  %2838 = vmatprep.subr.bf16.mxu1 %v3915_v1 }
 0x17f   : > { %v825_v7 = vpop.f32.mrb[4].mxu0  ;;  %v866_v8 = vpop.f32.mrb[4].mxu1 }
 0x180   : > { %v826_v9 = vadd.f32 %v825_v7, %v4254_v27  ;;  %v867_v10 = vadd.f32 %v866_v8, %v4256_v28  ;;  %v827_v11 = vpop.f32.mrb[5].mxu0  ;;  %v868_v12 = vpop.f32.mrb[5].mxu1 }
 0x181   : > { %v828_v13 = vadd.f32 %v827_v11, %v4258_v29  ;;  %v869_v14 = vadd.f32 %v868_v12, %v4260_v30  ;;  %v829_v15 = vpop.f32.mrb[6].mxu0  ;;  %v870_v16 = vpop.f32.mrb[6].mxu1  ;;  %2798 = vmatpush1.bf16.msra.mxu0 %v3910_v3  ;;  %2839 = vmatpush1.bf16.msra.mxu1 %v3913_v4 }
 0x182   : > { %v830_v19 = vpop.f32.mrb[7].mxu0  ;;  %v871_v20 = vpop.f32.mrb[7].mxu1  ;;  %2799 = vmatprep.subr.bf16.mxu0 %v3918_v5  ;;  %2840 = vmatprep.subr.bf16.mxu1 %v3921_v6 }
 0x185   : > { %2800 = vmatpush1.bf16.msra.mxu0 %v3916_v17  ;;  %2841 = vmatpush1.bf16.msra.mxu1 %v3919_v18 }
 0x186   : > { %2801 = vmatprep.subr.bf16.mxu0 %v3924_v21  ;;  %2842 = vmatprep.subr.bf16.mxu1 %v3927_v22 }
 0x189   : > { %2802 = vmatpush1.bf16.msra.mxu0 %v3922_v23  ;;  %2843 = vmatpush1.bf16.msra.mxu1 %v3925_v24 }
 0x18c   : > { %2820 = vmatmul.mubr.bf16.vlgmr.msra.gmra.mrb[32].mxu0 %v2625_v26  ;;  %2861 = vmatmul.mubr.bf16.vlgmr.msra.gmra.mrb[32].mxu1 %v2625_v26 }
 0x19f   : > { %v1104_v27 = vpop.f32.mrb[8].mxu0  ;;  %v1145_v28 = vpop.f32.mrb[8].mxu1 }
 0x1a0   : > { %v1152_v29 = vadd.f32 %v1104_v27, %v826_v9  ;;  %v1154_v30 = vadd.f32 %v1145_v28, %v867_v10  ;;  %v1106_v31 = vpop.f32.mrb[9].mxu0  ;;  %v1147_v32 = vpop.f32.mrb[9].mxu1 }
 0x1a1   : > { %v1153_v33 = vadd.f32 %v1106_v31, %v828_v13  ;;  %v1155_v34 = vadd.f32 %v1147_v32, %v869_v14  ;;  %v1108_v35 = vpop.f32.mrb[10].mxu0  ;;  %v1149_v36 = vpop.f32.mrb[10].mxu1 }
 0x1a2   : > { %v1109_v37 = vpop.f32.mrb[11].mxu0  ;;  %v1150_v38 = vpop.f32.mrb[11].mxu1  ;;  %v2875_v35 = vlaneseq }
 0x1a4   : > { %v2876_v36 = vshrl.u32 %v2875_v35, 7 }
 0x1a6   : > { %v2877_v37 = vsub.s32 0, %v2876_v36  ;;  %v2885_v38 = vsub.s32 2, %v2876_v36 }
 0x1bf   : > { %v1387_v39 = vpop.f32.mrb[12].mxu0  ;;  %v1428_v40 = vpop.f32.mrb[12].mxu1 }
 0x1c0   : > { %v1435_v41 = vadd.f32 %v1387_v39, %v1152_v29  ;;  %v1437_v42 = vadd.f32 %v1428_v40, %v1154_v30  ;;  %v1389_v43 = vpop.f32.mrb[13].mxu0  ;;  %v1430_v44 = vpop.f32.mrb[13].mxu1  ;;  %v2873_v39 = vld [vmem:[#allocation6] sm:$0xf]  ;;  %v2881_v40 = vsub.s32 1, %v2876_v36 }
 0x1c1   : > { %v1436_v45 = vadd.f32 %v1389_v43, %v1153_v33  ;;  %v1438_v46 = vadd.f32 %v1430_v44, %v1155_v34  ;;  %v1391_v47 = vpop.f32.mrb[14].mxu0  ;;  %v1432_v48 = vpop.f32.mrb[14].mxu1  ;;  %v2878_v43 = vrot.slane %v2873_v39, %v2877_v37  ;;  %v2886_v44 = vrot.slane %v2873_v39, %v2885_v38 }
 0x1c2   : > { %v1392_v49 = vpop.f32.mrb[15].mxu0  ;;  %v1433_v50 = vpop.f32.mrb[15].mxu1  ;;  %v2882_v47 = vrot.slane %v2873_v39, %v2881_v40 }
 0x1df   : > { %v1683_v51 = vpop.f32.mrb[16].mxu0  ;;  %v1724_v52 = vpop.f32.mrb[16].mxu1 }
 0x1e0   : > { %v1731_v53 = vadd.f32 %v1683_v51, %v1435_v41  ;;  %v1733_v54 = vadd.f32 %v1724_v52, %v1437_v42  ;;  %v1685_v55 = vpop.f32.mrb[17].mxu0  ;;  %v1726_v56 = vpop.f32.mrb[17].mxu1  ;;  %v2889_v41 = vsub.s32 3, %v2876_v36  ;;  %v2899_v42 = vld [vmem:[#allocation8] sm:$0xf] }
 0x1e1   : > { %v1732_v57 = vadd.f32 %v1685_v55, %v1436_v45  ;;  %v1734_v58 = vadd.f32 %v1726_v56, %v1438_v46  ;;  %v1687_v59 = vpop.f32.mrb[18].mxu0  ;;  %v1728_v60 = vpop.f32.mrb[18].mxu1  ;;  %v2904_v50 = vrot.slane %v2899_v42, %v2877_v37  ;;  %v2912_v52 = vrot.slane %v2899_v42, %v2885_v38 }
 0x1e2   : > { %v1688_v61 = vpop.f32.mrb[19].mxu0  ;;  %v1729_v62 = vpop.f32.mrb[19].mxu1  ;;  %v2890_v48 = vrot.slane %v2873_v39, %v2889_v41  ;;  %v2908_v56 = vrot.slane %v2899_v42, %v2881_v40 }
 0x1ff   : > { %v1970_v63 = vpop.f32.mrb[20].mxu0  ;;  %v2011_v2 = vpop.f32.mrb[20].mxu1 }
 0x200   : > { %v2018_v0 = vadd.f32 %v1970_v63, %v1731_v53  ;;  %v2020_v1 = vadd.f32 %v2011_v2, %v1733_v54  ;;  %v1972_v3 = vpop.f32.mrb[21].mxu0  ;;  %v2013_v4 = vpop.f32.mrb[21].mxu1 }
 0x201   : > { %v2019_v5 = vadd.f32 %v1972_v3, %v1732_v57  ;;  %v2021_v6 = vadd.f32 %v2013_v4, %v1734_v58  ;;  %v1974_v7 = vpop.f32.mrb[22].mxu0  ;;  %v2015_v8 = vpop.f32.mrb[22].mxu1  ;;  %v2916_v58 = vrot.slane %v2899_v42, %v2889_v41 }
 0x202   : > { %v1975_v9 = vpop.f32.mrb[23].mxu0  ;;  %v2016_v10 = vpop.f32.mrb[23].mxu1 }
 0x21f   : > { %v2250_v11 = vpop.f32.mrb[24].mxu0  ;;  %v2291_v12 = vpop.f32.mrb[24].mxu1 }
 0x220   : > { %v2298_v13 = vadd.f32 %v2250_v11, %v2018_v0  ;;  %v2300_v14 = vadd.f32 %v2291_v12, %v2020_v1  ;;  %v2252_v15 = vpop.f32.mrb[25].mxu0  ;;  %v2293_v16 = vpop.f32.mrb[25].mxu1 }
 0x221   : > { %v2299_v17 = vadd.f32 %v2252_v15, %v2019_v5  ;;  %v2301_v18 = vadd.f32 %v2293_v16, %v2021_v6  ;;  %v2254_v19 = vpop.f32.mrb[26].mxu0  ;;  %v2295_v20 = vpop.f32.mrb[26].mxu1 }
 0x222   : > { %v2255_v21 = vpop.f32.mrb[27].mxu0  ;;  %v2296_v22 = vpop.f32.mrb[27].mxu1 }
 0x23f   : > { %v2538_v23 = vpop.f32.mrb[28].mxu0  ;;  %v2579_v24 = vpop.f32.mrb[28].mxu1 }
 0x240   : > { %v2586_v25 = vadd.f32 %v2538_v23, %v2298_v13  ;;  %v2588_v26 = vadd.f32 %v2579_v24, %v2300_v14  ;;  %v2540_v27 = vpop.f32.mrb[29].mxu0  ;;  %v2581_v28 = vpop.f32.mrb[29].mxu1 }
 0x241   : > { %v2587_v29 = vadd.f32 %v2540_v27, %v2299_v17  ;;  %v2589_v30 = vadd.f32 %v2581_v28, %v2301_v18  ;;  %v2542_v31 = vpop.f32.mrb[30].mxu0  ;;  %v2583_v32 = vpop.f32.mrb[30].mxu1 }
 0x242   : > { %v2543_v33 = vpop.f32.mrb[31].mxu0  ;;  %v2584_v34 = vpop.f32.mrb[31].mxu1 }
 0x25f   : > { %v2821_v45 = vpop.f32.mrb[32].mxu0  ;;  %v2862_v46 = vpop.f32.mrb[32].mxu1 }
 0x260   : > { %v2869_v49 = vadd.f32 %v2821_v45, %v2586_v25  ;;  %v2871_v51 = vadd.f32 %v2862_v46, %v2588_v26  ;;  %v2823_v53 = vpop.f32.mrb[33].mxu0  ;;  %v2864_v54 = vpop.f32.mrb[33].mxu1 }
 0x261   : > { %v2870_v55 = vadd.f32 %v2823_v53, %v2587_v29  ;;  %v2872_v57 = vadd.f32 %v2864_v54, %v2589_v30  ;;  %v2825_v59 = vpop.f32.mrb[34].mxu0  ;;  %v2866_v60 = vpop.f32.mrb[34].mxu1 }
 0x262   : > { %v2895_v61 = vadd.f32 %v2878_v43, %v2869_v49  ;;  %v2897_v62 = vadd.f32 %v2886_v44, %v2871_v51  ;;  %v2826_v63 = vpop.f32.mrb[35].mxu0  ;;  %v2867_v2 = vpop.f32.mrb[35].mxu1 }
 0x263   : > { %v2896_v0 = vadd.f32 %v2882_v47, %v2870_v55  ;;  %v2898_v1 = vadd.f32 %v2890_v48, %v2872_v57 }
 0x264   : > { %v2921_v3 = vmul.f32 %v2904_v50, %v2895_v61  ;;  %v2923_v4 = vmul.f32 %v2912_v52, %v2897_v62 }
 0x265   : > { %v2922_v5 = vmul.f32 %v2908_v56, %v2896_v0  ;;  %v2924_v6 = vmul.f32 %v2916_v58, %v2898_v1 }
 0x266   : > { %v2925_v7 = vadd.f32 256.0, %v2921_v3  ;;  %v2927_v8 = vadd.f32 256.0, %v2923_v4 }
 0x267   : > { %v2926_v9 = vadd.f32 256.0, %v2922_v5  ;;  %v2928_v10 = vadd.f32 256.0, %v2924_v6 }
 0x268   : > { %v2929_v11 = vmul.f32 0.001953125, %v2925_v7  ;;  %v2931_v12 = vmul.f32 0.001953125, %v2927_v8 }
 0x269   : > { %v2930_v13 = vmul.f32 0.001953125, %v2926_v9  ;;  %v2932_v14 = vmul.f32 0.001953125, %v2928_v10 }
 0x26a   : > { %v2933_v15 = vfloor.f32 %v2929_v11  ;;  %v2935_v16 = vfloor.f32 %v2931_v12 }
 0x26b   : > { %v2934_v17 = vfloor.f32 %v2930_v13  ;;  %v2936_v18 = vfloor.f32 %v2932_v14 }
 0x26c   : > { %v2937_v19 = vmax.f32 %v2933_v15, 0.0  ;;  %v2939_v20 = vmax.f32 %v2935_v16, 0.0 }
 0x26d   : > { %v2938_v21 = vmax.f32 %v2934_v17, 0.0  ;;  %v2940_v22 = vmax.f32 %v2936_v18, 0.0 }
 0x26e   : > { %v2941_v23 = vmin.f32 %v2937_v19, 60.0  ;;  %v2943_v24 = vmin.f32 %v2939_v20, 60.0 }
 0x26f   : > { %v2942_v25 = vmin.f32 %v2938_v21, 60.0  ;;  %v2944_v26 = vmin.f32 %v2940_v22, 60.0 }
 0x270   : > { %v2945_v27 = vmul.f32 200000.0, %v2941_v23  ;;  %v2947_v28 = vmul.f32 200000.0, %v2943_v24 }
 0x271   : > { %v2946_v29 = vmul.f32 200000.0, %v2942_v25  ;;  %v2948_v30 = vmul.f32 200000.0, %v2944_v26 }
 0x272   : > { %v2949_v31 = vadd.f32 1048576.0, %v2945_v27  ;;  %v2951_v32 = vadd.f32 1048576.0, %v2947_v28 }
 0x273   : > { %v2950_v33 = vadd.f32 1048576.0, %v2946_v29  ;;  %v2952_v34 = vadd.f32 1048576.0, %v2948_v30 }
 0x274   : > { %v2953_v35 = vmul.f32 4.7683716e-07, %v2949_v31  ;;  %v2955_v36 = vmul.f32 4.7683716e-07, %v2951_v32 }
 0x275   : > { %v2954_v37 = vmul.f32 4.7683716e-07, %v2950_v33  ;;  %v2956_v38 = vmul.f32 4.7683716e-07, %v2952_v34 }
 0x276   : > { %v2957_v39 = vfloor.f32 %v2953_v35  ;;  %v2959_v40 = vfloor.f32 %v2955_v36 }
 0x277   : > { %v2958_v41 = vfloor.f32 %v2954_v37  ;;  %v2960_v42 = vfloor.f32 %v2956_v38 }
 0x278   : > { %v2961_v43 = vmul.f32 0.5, %v2957_v39  ;;  %v2963_v44 = vmul.f32 0.5, %v2959_v40 }
 0x279   : > { %v2962_v45 = vmul.f32 0.5, %v2958_v41  ;;  %v2964_v46 = vmul.f32 0.5, %v2960_v42 }
 0x27a   : > { %v2965_v47 = vfloor.f32 %v2961_v43  ;;  %v2967_v48 = vfloor.f32 %v2963_v44 }
 0x27b   : > { %v2966_v49 = vfloor.f32 %v2962_v45  ;;  %v2968_v50 = vfloor.f32 %v2964_v46 }
 0x27d   : > { %v3420_v51 = vpack.c.bf16 %v2966_v49, %v2965_v47  ;;  %v3421_v52 = vpack.c.bf16 %v2968_v50, %v2967_v48 }
 0x27f   : > { %2985 = vst [vmem:[%s4232_s5] sm:$0xff] %v3420_v51  ;;  %2986 = vst [vmem:[%s4232_s5 + $0x8] sm:$0xff] %v3421_v52 }
 0x280 PF: > { %s16_s19 = sadd.s32 1, %s4060_s19   ;;  %s4302_s15 = smov %s4052_s17 }
 0x281   : > { %p13_p8 = scmp.ge.s32.totalorder %s16_s19, 10   ;;  %s4303_s16 = smov %s4056_s18 }
 0x282   : > { %s4304_s17 = smov %s4307_s26  ;;  %s4305_s18 = smov %s4311_s13 }
 0x283   :  { %15 = sbr.rel (!%p13_p8) target bundleno = 4 (0x4), region = 165 }
 0x28a   :  { %3014 = vsyncpa [#allocation5], 1 }
 0x28b   :  { %3016 = vsyncpa [#allocation5 + $0x1], 1 }
 0x28c   :  { %3017 = vsyncpa [#allocation7], 1 }
 0x28d   :  { %3018 = vsyncmov [#allocation3] }
 0x290   :  { %s3019_s21 = vpop.sfrf %3018 }
 0x291   :  { %p3418_p9 = scmp.ne.s32.totalorder %s3019_s21, 0 }
 0x293   :  { %3023 = shalt.err (%p3418_p9)  }

// kernel: prior_decoder_forward.5
= control target key start
LH: loop header
LB: loop body
LE: loop exit
PB: predicated region body
PF: predicated region fallthrough
CT: control target
= control target key end

     0   :  { %s3246_s15 = smov 0   ;;  %s3248_s16 = smov 0   ;;  %s3730_s0 = inlined_call_operand.vmem [shape: bf16[864,128], index: 0, kind: input, shape index: {}]   ;;  %s3731_s1 = inlined_call_operand.vmem [shape: bf16[9,128,128], index: 1, kind: input, shape index: {}]   ;;  %s3732_s2 = inlined_call_operand.vmem [shape: f32[1,128], index: 2, kind: input, shape index: {}]   ;;  %s3733_s3 = inlined_call_operand.vmem [shape: f32[1,128], index: 3, kind: input, shape index: {}]   ;;  %s3734_s4 = inlined_call_operand.vmem [shape: f32[768,128], index: 4, kind: output, shape index: {}]  }
   0x1   :  { %s3250_s17 = smov 0   ;;  %s3252_s18 = smov 0  }
   0x2   :  { %s3254_s19 = smov 0  }
   0x3 LB: > { %s23_s20 = sadd.s32 1, %s3211_s17  ;;  %s26_s21 = sadd.s32 1, %s3215_s18  ;;  %s3219_s19 = sphi %s3254_s19, %s14_s19   ;;  %s3215_s18 = sphi %s3252_s18, %s3738_s18   ;;  %s3211_s17 = sphi %s3250_s17, %s3737_s17   ;;  %s3207_s16 = sphi %s3248_s16, %s3736_s16   ;;  %s3203_s15 = sphi %s3246_s15, %s3735_s15  }
   0x4   : > { %p24_p0 = scmp.ge.s32.totalorder %s23_s20, 4  ;;  %p2296_p1 = scmp.ge.s32.totalorder %s3219_s19, 1 }
   0x5   : > { %p144_p2 = scmp.lt.s32.totalorder %s3219_s19, 9 }
   0x6   : > { %s3740_s20 = smov (%p24_p0, %s23_s20), 0  ;;  %s3742_s21 = smov (!%p24_p0, %s26_s21), %s3215_s18 }
   0x7   : > { %p145_p3 = pnand %p2296_p1, %p144_p2  ;;  %p28_p4 = scmp.ge.s32.totalorder %s3742_s21, 2 }
   0x8   : > { %s2297_s22 = sshll.u32 (!%p145_p3), %s3207_s16, 2  ;;  %s176_s23 = smul.u32 (!%p145_p3), 432, %s3207_s16 }
   0x9   : > { %s3744_s21 = smov (%p28_p4, %s3742_s21), 0  ;;  %148 = sbr.rel (%p145_p3) target bundleno = 424 (0x1a8), region = 32 }
   0xa   : > { %s166_s24 = sadd.s32 (!%p145_p3), %s3203_s15, %s2297_s22  ;;  %s177_s25 = smul.u32 (!%p145_p3), 96, %s3203_s15 }
   0xb   : > { %s167_s26 = smul.u32 (!%p145_p3), 12, %s166_s24 }
   0xc   : > { %s178_s27 = sadd.s32 (!%p145_p3), %s177_s25, %s176_s23 }
   0xd   : > { %p168_p5 = scmp.lt.s32.totalorder (!%p145_p3), %s167_s26, 95  ;;  %s179_s28 = sshra.s32 (!%p145_p3), %s178_s27, 3 }
   0xe   : > { %s2299_s29 = sshll.u32 (!%p145_p3), %s179_s28, 2 }
   0xf   : > { %s182_s6 = scalar_lea.vmem (!%p145_p3), %s3730_s0, %s2299_s29 }
  0x10   : > { %s3746_s26 = smov (!%p168_p5, %s167_s26), 95  ;;  %v215_v0 = vld [vmem:[%s182_s6] sm:$0xff]  ;;  %v217_v1 = vld [vmem:[%s182_s6 + $0x8] sm:$0xff]  ;;  %v219_v2 = vld [vmem:[%s182_s6 + $0x10] sm:$0xff] }
  0x11   : > { %s2298_s7 = sshll.u32 %s3746_s26, 3  ;;  %216 = vst [vmem:[#allocation2] sm:$0xff] %v215_v0  ;;  %218 = vst [vmem:[#allocation2 + $0x8] sm:$0xff] %v217_v1  ;;  %v221_v3 = vld [vmem:[%s182_s6 + $0x18] sm:$0xff]  ;;  %v223_v4 = vld [vmem:[%s182_s6 + $0x20] sm:$0xff] }
  0x12   : > { %s3282_s10 = scalar_lea.vmem %s3734_s4, %s2298_s7  ;;  %220 = vst [vmem:[#allocation2 + $0x10] sm:$0xff] %v219_v2  ;;  %v225_v5 = vld [vmem:[%s182_s6 + $0x28] sm:$0xff]  ;;  %222 = vst [vmem:[#allocation2 + $0x18] sm:$0xff] %v221_v3  ;;  %v227_v6 = vld [vmem:[%s182_s6 + $0x30] sm:$0xff] }
  0x13   : > { %224 = vst [vmem:[#allocation2 + $0x20] sm:$0xff] %v223_v4  ;;  %226 = vst [vmem:[#allocation2 + $0x28] sm:$0xff] %v225_v5  ;;  %v229_v7 = vld [vmem:[%s182_s6 + $0x38] sm:$0xff]  ;;  %v231_v8 = vld [vmem:[%s182_s6 + $0x40] sm:$0xff] }
  0x14   : > { %228 = vst [vmem:[#allocation2 + $0x30] sm:$0xff] %v227_v6  ;;  %230 = vst [vmem:[#allocation2 + $0x38] sm:$0xff] %v229_v7 }
  0x15   : > { %232 = vst [vmem:[#allocation2 + $0x40] sm:$0xff] %v231_v8 }
  0x16   : > { %240 = vsyncadd [#allocation3], 1152 }
  0x17   : > { %3199 = dma.done.wait [#allocation3], 1152 }
  0x18   : > { %3200 = vsyncadd [#allocation3], 4294966144  ;;  %v3071_v9 = vld [vmem:[%s3731_s1 + $0x40] sm:$0xff]   ;;  %v3073_v11 = vld [vmem:[%s3731_s1 + $0x48] sm:$0xff]   ;;  %vm324_vm0 = vsmask.f32 7424 }
  0x19   : > { %v3072_v10 = vld [vmem:[%s3731_s1 + $0x100] sm:$0xff]   ;;  %2667 = vmatprep.subr.bf16.mxu1 %v3071_v9  ;;  %v3074_v12 = vld [vmem:[%s3731_s1 + $0x108] sm:$0xff]   ;;  %v3075_v13 = vld [vmem:[%s3731_s1 + $0x50] sm:$0xff]   ;;  %vm668_vm1 = vcmask 1046528  }
  0x1a   : > { %2779 = vmatprep.subr.bf16.mxu0 %v3072_v10  ;;  %2668 = vmatpush3.bf16.msra.mxu1 %v3071_v9  ;;  %v3076_v14 = vld [vmem:[%s3731_s1 + $0x110] sm:$0xff]   ;;  %v3077_v15 = vld [vmem:[%s3731_s1 + $0x58] sm:$0xff]   ;;  %v3079_v17 = vld [vmem:[%s3731_s1 + $0x60] sm:$0xff]  }
  0x1b   : > { %2780 = vmatpush3.bf16.msra.mxu0 %v3072_v10  ;;  %2669 = vmatprep.subr.bf16.mxu1 %v3073_v11  ;;  %v3078_v16 = vld [vmem:[%s3731_s1 + $0x118] sm:$0xff]   ;;  %v3080_v18 = vld [vmem:[%s3731_s1 + $0x120] sm:$0xff]   ;;  %v3081_v19 = vld [vmem:[%s3731_s1 + $0x68] sm:$0xff]  }
  0x1c   : > { %2781 = vmatprep.subr.bf16.mxu0 %v3074_v12  ;;  %v3082_v20 = vld [vmem:[%s3731_s1 + $0x128] sm:$0xff]   ;;  %v245_v21 = vld [vmem:[#allocation2] sm:$0xf]  ;;  %v3320_v22 = vld [vmem:[#allocation2 + $0x4] sm:$0xf] }
  0x1d   : > { %v3323_v23 = vcombine.low %v245_v21, %v3320_v22  ;;  %v3325_v24 = vld [vmem:[#allocation2 + $0x8] sm:$0xff]   ;;  %v3083_v25 = vld [vmem:[%s3731_s1 + $0x70] sm:$0xff]   ;;  %v3085_v37 = vld [vmem:[%s3731_s1 + $0x78] sm:$0xff]  }
  0x1e   : > { %2670 = vmatpush3.bf16.msra.mxu1 %v3073_v11  ;;  %v1035_v26 = vld [vmem:[#allocation2 + $0xc] sm:$0xf]  ;;  %v333_v29 = vshll.u32 %v3325_v24, 16  ;;  %v3333_v30 = vld [vmem:[#allocation2 + $0x10] sm:$0xf]  ;;  %v3335_v31 = vld [vmem:[#allocation2 + $0x14] sm:$0xff]  }
  0x1f   : > { %2782 = vmatpush3.bf16.msra.mxu0 %v3074_v12  ;;  %2671 = vmatprep.subr.bf16.mxu1 %v3075_v13  ;;  %v326_v27 = vshrl.u32 %v3323_v23, 16  ;;  %v328_v28 = vshll.u32 %v3323_v23, 16  ;;  %v2410_v32 = vcombine.low %v1035_v26, %v3333_v30  ;;  %v3084_v33 = vld [vmem:[%s3731_s1 + $0x130] sm:$0xff]   ;;  %v1106_v36 = vshll.u32 %v3335_v31, 16  ;;  %v3348_v44 = vld [vmem:[#allocation2 + $0x1c] sm:$0xff]   ;;  %v3095_v60 = vld [vmem:[%s3731_s1 + $0x8] sm:$0xff]  }
  0x20   : > { %2783 = vmatprep.subr.bf16.mxu0 %v3076_v14  ;;  %v335_v35 = vrot.slane %v333_v29, 1  ;;  %v3345_v42 = vld [vmem:[#allocation2 + $0x10] sm:$0xff]   ;;  %v337_v43 = vshrl.u32 %v3325_v24, 16  ;;  %v1110_v46 = vshrl.u32 %v3335_v31, 16  ;;  %v3086_v47 = vld [vmem:[%s3731_s1 + $0x138] sm:$0xff]   ;;  %v1114_v50 = vshll.u32 %v3348_v44, 16 }
  0x21   : > { %v330_v34 = vrot.slane %v328_v28, 1  ;;  %v1099_v38 = vshrl.u32 %v2410_v32, 16  ;;  %v1101_v39 = vshll.u32 %v2410_v32, 16  ;;  %v1108_v41 = vrot.slane %v1106_v36, 1  ;;  %v3089_v52 = vld [vmem:[%s3731_s1] sm:$0xff]   ;;  %v3369_v62 = vld [vmem:[#allocation2 + $0x18] sm:$0xff]  }
  0x22   : > { %2672 = vmatpush3.bf16.msra.mxu1 %v3075_v13  ;;  %v341_v49 = vshll.u32 %v3345_v42, 16  ;;  %v339_v53 = vor.u32 %v337_v43, %v335_v35  ;;  %v1116_v55 = vrot.slane %v1114_v50, 1  ;;  %v3092_v58 = vld [vmem:[%s3731_s1 + $0x140] sm:$0xff]   ;;  %v345_v59 = vshrl.u32 %v3345_v42, 16  ;;  %v3096_v1 = vld [vmem:[%s3731_s1 + $0x148] sm:$0xff]   ;;  %v3097_v5 = vld [vmem:[%s3731_s1 + $0x10] sm:$0xff]  }
  0x23   : > { %2784 = vmatpush3.bf16.msra.mxu0 %v3076_v14  ;;  %2673 = vmatprep.subr.bf16.mxu1 %v3077_v15  ;;  %v331_v40 = vor.u32 %v330_v34, %v326_v27  ;;  %v1103_v45 = vrot.slane %v1101_v39, 1  ;;  %v1112_v57 = vor.u32 %v1110_v46, %v1108_v41  ;;  %v1118_v63 = vshrl.u32 %v3348_v44, 16  ;;  %v3377_v4 = vld [vmem:[#allocation2 + $0x24] sm:$0xff]   ;;  %v3386_v11 = vld [vmem:[#allocation2 + $0x2c] sm:$0xff]   ;;  %v3100_v29 = vld [vmem:[%s3731_s1 + $0x158] sm:$0xff]  }
  0x24   : > { %2785 = vmatprep.subr.bf16.mxu0 %v3078_v16  ;;  %v343_v54 = vrot.slane %v341_v49, 1  ;;  %v349_v3 = vshll.u32 %v3369_v62, 16  ;;  %v353_v6 = vshrl.u32 %v3369_v62, 16  ;;  %v1122_v9 = vshll.u32 %v3377_v4, 16  ;;  %v3384_v10 = vld [vmem:[#allocation2 + $0x20] sm:$0xff]   ;;  %v3098_v12 = vld [vmem:[%s3731_s1 + $0x150] sm:$0xff]  }
  0x25   : > { %v336_v48 = vsel %vm324_vm0, %v331_v40, %v335_v35  ;;  %v1104_v51 = vor.u32 %v1103_v45, %v1099_v38  ;;  %v1117_v0 = vsel %vm324_vm0, %v1112_v57, %v1116_v55  ;;  %v1120_v8 = vor.u32 %v1118_v63, %v1116_v55  ;;  %v3399_v26 = vld [vmem:[#allocation2 + $0x28] sm:$0xff]   ;;  %v3408_v36 = vld [vmem:[#allocation2 + $0x34] sm:$0xff]   ;;  %v3102_v38 = vld [vmem:[%s3731_s1 + $0x20] sm:$0xff]  }
  0x26   : > { %2674 = vmatpush3.bf16.msra.mxu1 %v3077_v15  ;;  %2683 = vmatprep.mubr.bf16.mxu1 %v336_v48  ;;  %v344_v61 = vsel %vm324_vm0, %v339_v53, %v343_v54  ;;  %v347_v2 = vor.u32 %v345_v59, %v343_v54  ;;  %v351_v7 = vrot.slane %v349_v3, 1  ;;  %v1126_v13 = vshrl.u32 %v3377_v4, 16  ;;  %v3104_v39 = vld [vmem:[%s3731_s1 + $0x160] sm:$0xff]   ;;  %v3113_v46 = vld [vmem:[#allocation2 + $0x30] ss:$0 sps:$4 sm:$0x11]  }
  0x27   : > { %2786 = vmatpush3.bf16.msra.mxu0 %v3078_v16  ;;  %2675 = vmatprep.subr.bf16.mxu1 %v3079_v17  ;;  %v1109_v56 = vsel %vm324_vm0, %v1104_v51, %v1108_v41  ;;  %v1124_v15 = vrot.slane %v1122_v9, 1  ;;  %v361_v28 = vshrl.u32 %v3384_v10, 16  ;;  %v369_v41 = vshrl.u32 %v3399_v26, 16  ;;  %v3420_v48 = vld [vmem:[#allocation2 + $0x3c] ss:$0 sps:$4 sm:$0x11]  }
  0x28   : > { %2787 = vmatprep.subr.bf16.mxu0 %v3080_v18  ;;  %2795 = vmatprep.mubr.bf16.mxu0 %v1109_v56  ;;  %v352_v14 = vsel %vm324_vm0, %v347_v2, %v351_v7  ;;  %v355_v16 = vor.u32 %v353_v6, %v351_v7  ;;  %v1138_v45 = vshll.u32 %v3408_v36, 16  ;;  %v1142_v49 = vshrl.u32 %v3408_v36, 16  ;;  %v3107_v55 = vld [vmem:[%s3731_s1 + $0x28] sm:$0xff]   ;;  %v3110_v2 = vld [vmem:[%s3731_s1 + $0x30] sm:$0xff]   ;;  %v3116_v6 = vld [vmem:[%s3731_s1 + $0x178] sm:$0xff]  }
  0x29   : > { %v1146_v53 = vshll.u32 %v3420_v48, 16  ;;  %v1319_v54 = vrot.slane %v3335_v31, 1  ;;  %v1297_v59 = vld [vmem:[#allocation2 + $0xc] sm:$0xe]  ;;  %v3112_v3 = vld [vmem:[%s3731_s1 + $0x170] sm:$0xff]   ;;  %v672_v7 = vrot.slane %v3345_v42, 1 }
  0x2a   : > { %2676 = vmatpush3.bf16.msra.mxu1 %v3079_v17  ;;  %v357_v17 = vshll.u32 %v3384_v10, 16  ;;  %v1140_v50 = vrot.slane %v1138_v45, 1  ;;  %v2441_v31 = vcombine.low %v1297_v59, %v3333_v30  ;;  %v676_v9 = vrot.slane %v3384_v10, 1  ;;  %v3129_v45 = vld [vmem:[%s3731_s1 + $0x1a8] sm:$0xff]   ;;  %v3142_v59 = vld [vmem:[%s3731_s1 + $0x1d0] sm:$0xff]  }
  0x2b   : > { %2788 = vmatpush3.bf16.msra.mxu0 %v3080_v18  ;;  %2677 = vmatprep.subr.bf16.mxu1 %v3081_v19  ;;  %v3099_v18 = vld [vmem:[%s3731_s1 + $0x18] sm:$0xff]  }
  0x2c   : > { %2789 = vmatprep.subr.bf16.mxu0 %v3082_v20  ;;  %v359_v21 = vrot.slane %v357_v17, 1 }
  0x2e   : > { %2678 = vmatpush3.bf16.msra.mxu1 %v3081_v19  ;;  %v1130_v19 = vshll.u32 %v3386_v11, 16  ;;  %v360_v32 = vsel %vm324_vm0, %v355_v16, %v359_v21  ;;  %v363_v35 = vor.u32 %v361_v28, %v359_v21  ;;  %v680_v16 = vrot.slane %v3113_v46, 1  ;;  %v3120_v21 = vld [vmem:[%s3731_s1 + $0x88] sm:$0xff]  }
  0x2f   : > { %2790 = vmatpush3.bf16.msra.mxu0 %v3082_v20  ;;  %2679 = vmatprep.subr.bf16.mxu1 %v3083_v25  ;;  %v1125_v20 = vsel %vm324_vm0, %v1120_v8, %v1124_v15  ;;  %v674_v8 = vrot.slane %v3369_v62, 1  ;;  %v1325_v28 = vrot.slane %v3386_v11, 1 }
  0x30   : > { %2791 = vmatprep.subr.bf16.mxu0 %v3084_v33  ;;  %v1132_v27 = vrot.slane %v1130_v19, 1  ;;  %v1323_v19 = vrot.slane %v3377_v4, 1  ;;  %v3122_v4 = vld [vmem:[%s3731_s1 + $0x90] sm:$0xff]  }
  0x32   : > { %2680 = vmatpush3.bf16.msra.mxu1 %v3083_v25  ;;  %v1128_v25 = vor.u32 %v1126_v13, %v1124_v15  ;;  %v678_v13 = vrot.slane %v3399_v26, 1  ;;  %v3463_v15 = vsel %vm668_vm1, %v674_v8, %v676_v9 }
  0x33   : > { %2792 = vmatpush3.bf16.msra.mxu0 %v3084_v33  ;;  %2681 = vmatprep.subr.bf16.mxu1 %v3085_v37  ;;  %v365_v33 = vshll.u32 %v3399_v26, 16 }
  0x34   : > { %2793 = vmatprep.subr.bf16.mxu0 %v3086_v47  ;;  %v1133_v34 = vsel %vm324_vm0, %v1128_v25, %v1132_v27  ;;  %v3469_v17 = vsel %vm668_vm1, %v676_v9, %v678_v13  ;;  %v3121_v25 = vld [vmem:[%s3731_s1 + $0x188] sm:$0xff]  }
  0x35   : > { %v367_v40 = vrot.slane %v365_v33, 1  ;;  %v647_v33 = vld [vmem:[#allocation2] sm:$0xe] }
  0x36   : > { %2682 = vmatpush3.bf16.msra.mxu1 %v3085_v37  ;;  %v1134_v37 = vshrl.u32 %v3386_v11, 16  ;;  %v1326_v11 = vsel %vm668_vm1, %v1323_v19, %v1325_v28 }
  0x37   : > { %2794 = vmatpush3.bf16.msra.mxu0 %v3086_v47  ;;  %2695 = vmatprep.subr.bf16.mxu1 %v3089_v52  ;;  %v368_v47 = vsel %vm324_vm0, %v363_v35, %v367_v40  ;;  %v371_v51 = vor.u32 %v369_v41, %v367_v40  ;;  %v3125_v35 = vld [vmem:[%s3731_s1 + $0x198] sm:$0xff]   ;;  %v3127_v40 = vld [vmem:[%s3731_s1 + $0x1a0] sm:$0xff]   ;;  %v3128_v41 = vld [vmem:[%s3731_s1 + $0xa8] sm:$0xff]  }
  0x38   : > { %2807 = vmatprep.subr.bf16.mxu0 %v3092_v58  ;;  %v1136_v43 = vor.u32 %v1134_v37, %v1132_v27  ;;  %v2355_v37 = vcombine.low %v647_v33, %v3320_v22  ;;  %v3160_v33 = vld [vmem:[#allocation2 + $0x14] sm:$0xff]  }
  0x39   : > { %2684 = vmatmul.mubr.bf16.vlgmr.msra.gmra.mrb[0].mxu1 %v344_v61  ;;  %v1148_v61 = vrot.slane %v1146_v53, 1 }
  0x3a   : > { %2696 = vmatpush3.bf16.msra.mxu1 %v3089_v52  ;;  %2796 = vmatmul.mubr.bf16.vlgmr.msra.gmra.mrb[0].mxu0 %v1117_v0  ;;  %v373_v52 = vshll.u32 %v3113_v46, 16  ;;  %v1141_v56 = vsel %vm324_vm0, %v1136_v43, %v1140_v50  ;;  %v669_v22 = vrot.slane %v2355_v37, 1  ;;  %v3136_v46 = vld [vmem:[#allocation2 + $0x18] sm:$0xff]  }
  0x3b   : > { %2808 = vmatpush3.bf16.msra.mxu0 %v3092_v58  ;;  %2697 = vmatprep.subr.bf16.mxu1 %v3095_v60  ;;  %v1144_v58 = vor.u32 %v1142_v49, %v1140_v50  ;;  %v3135_v49 = vld [vmem:[%s3731_s1 + $0xc0] sm:$0xff]  }
  0x3c   : > { %2809 = vmatprep.subr.bf16.mxu0 %v3096_v1  ;;  %2687 = vmatprep.mubr.bf16.mxu1 %v352_v14  ;;  %v375_v57 = vrot.slane %v373_v52, 1  ;;  %v3117_v14 = vld [vmem:[%s3731_s1 + $0x80] sm:$0xff]   ;;  %v3139_v52 = vld [vmem:[%s3731_s1 + $0xc8] sm:$0xff]  }
  0x3d   : > { %2799 = vmatprep.mubr.bf16.mxu0 %v1125_v20  ;;  %v1149_v0 = vsel %vm324_vm0, %v1144_v58, %v1148_v61  ;;  %v3137_v50 = vld [vmem:[%s3731_s1 + $0x1c0] sm:$0xff]   ;;  %v3147_v61 = vld [vmem:[#allocation2 + $0x30] sm:$0xff]  }
  0x3e   : > { %2698 = vmatpush3.bf16.msra.mxu1 %v3095_v60  ;;  %v3108_v60 = vld [vmem:[%s3731_s1 + $0x168] sm:$0xff]   ;;  %v376_v63 = vsel %vm324_vm0, %v371_v51, %v375_v57  ;;  %v3138_v51 = vld [vmem:[#allocation2 + $0x20] sm:$0xff]  }
  0x3f   : > { %2810 = vmatpush3.bf16.msra.mxu0 %v3096_v1  ;;  %2699 = vmatprep.subr.bf16.mxu1 %v3097_v5  ;;  %v1318_v1 = vrot.slane %v2441_v31, 1  ;;  %v3145_v57 = vld [vmem:[#allocation2 + $0x28] sm:$0xff]   ;;  %v3561_v31 = vld [vmem:[#allocation2 + $0x20] sm:$0xff]  }
  0x40   : > { %2811 = vmatprep.subr.bf16.mxu0 %v3098_v12 }
  0x41   : > { %2688 = vmatmul.mubr.bf16.gmra.mrb[4].mxu1 %v360_v32  ;;  %v1320_v30 = vsel %vm668_vm1, %v1318_v1, %v1319_v54  ;;  %v1327_v32 = vrot.slane %v3408_v36, 1  ;;  %v3151_v1 = vld [vmem:[#allocation2 + $0x38] sm:$0xff]  }
  0x42   : > { %2700 = vmatpush3.bf16.msra.mxu1 %v3097_v5  ;;  %2800 = vmatmul.mubr.bf16.gmra.mrb[4].mxu0 %v1133_v34  ;;  %v3115_v5 = vld [vmem:[%s3731_s1 + $0x38] sm:$0xff]  }
  0x43   : > { %2812 = vmatpush3.bf16.msra.mxu0 %v3098_v12  ;;  %2701 = vmatprep.subr.bf16.mxu1 %v3099_v18  ;;  %v3456_v12 = vsel %vm668_vm1, %v672_v7, %v674_v8  ;;  %v3124_v34 = vld [vmem:[%s3731_s1 + $0x98] sm:$0xff]   ;;  %v1328_v36 = vsel %vm668_vm1, %v1325_v28, %v1327_v32 }
  0x44   : > { %2813 = vmatprep.subr.bf16.mxu0 %v3100_v29  ;;  %2691 = vmatprep.mubr.bf16.mxu1 %v368_v47  ;;  %v3131_v47 = vld [vmem:[%s3731_s1 + $0x1b0] sm:$0xff]  }
  0x45   : > { %2803 = vmatprep.mubr.bf16.mxu0 %v1141_v56  ;;  %v3140_v56 = vld [vmem:[%s3731_s1 + $0x1c8] sm:$0xff]  }
  0x46   : > { %2702 = vmatpush3.bf16.msra.mxu1 %v3099_v18  ;;  %v3472_v18 = vsel %vm668_vm1, %v678_v13, %v680_v16  ;;  %v3157_v13 = vld [vmem:[#allocation2 + $0xc] sm:$0xff]  }
  0x47   : > { %2814 = vmatpush3.bf16.msra.mxu0 %v3100_v29  ;;  %2703 = vmatprep.subr.bf16.mxu1 %v3102_v38  ;;  %v3123_v29 = vld [vmem:[%s3731_s1 + $0x190] sm:$0xff]   ;;  %v3586_v16 = vld [vmem:[#allocation2 + $0x28] sm:$0xff]  }
  0x48   : > { %2815 = vmatprep.subr.bf16.mxu0 %v3104_v39 }
  0x49   : > { %2692 = vmatmul.mubr.bf16.gmra.mrb[8].mxu1 %v376_v63 }
  0x4a   : > { %2704 = vmatpush3.bf16.msra.mxu1 %v3102_v38  ;;  %2804 = vmatmul.mubr.bf16.gmra.mrb[8].mxu0 %v1149_v0  ;;  %v3126_v38 = vld [vmem:[%s3731_s1 + $0xa0] sm:$0xff]   ;;  %v3144_v0 = vld [vmem:[%s3731_s1 + $0x1d8] sm:$0xff]  }
  0x4b   : > { %2816 = vmatpush3.bf16.msra.mxu0 %v3104_v39  ;;  %2705 = vmatprep.subr.bf16.mxu1 %v3107_v55  ;;  %v1329_v39 = vrot.slane %v3420_v48, 1  ;;  %v3133_v48 = vld [vmem:[%s3731_s1 + $0x1b8] sm:$0xff]  }
  0x4c   : > { %2817 = vmatprep.subr.bf16.mxu0 %v3108_v60  ;;  %2711 = vmatprep.mubr.bf16.mxu1 %v3323_v23  ;;  %v1321_v23 = vrot.slane %v3348_v44, 1  ;;  %v3119_v44 = vld [vmem:[%s3731_s1 + $0x180] sm:$0xff]  }
  0x4d   : > { %2823 = vmatprep.mubr.bf16.mxu0 %v1320_v30  ;;  %v1330_v43 = vsel %vm668_vm1, %v1327_v32, %v1329_v39  ;;  %v1755_v30 = vshll.u32 %v3561_v31, 16  ;;  %v3606_v32 = vld [vmem:[#allocation2 + $0x38] sm:$0xff]  }
  0x4e   : > { %2706 = vmatpush3.bf16.msra.mxu1 %v3107_v55  ;;  %v1322_v20 = vsel %vm668_vm1, %v1319_v54, %v1321_v23  ;;  %v1324_v27 = vsel %vm668_vm1, %v1321_v23, %v1323_v19  ;;  %v1684_v54 = vld [vmem:[#allocation2 + $0x18] sm:$0xf]  ;;  %v3545_v55 = vld [vmem:[#allocation2 + $0x1c] sm:$0xf]  ;;  %v3149_v23 = vld [vmem:[%s3731_s1 + $0xe8] sm:$0xff]   ;;  %v1759_v19 = vshrl.u32 %v3561_v31, 16 }
  0x4f   : > { %2818 = vmatpush3.bf16.msra.mxu0 %v3108_v60  ;;  %2707 = vmatprep.subr.bf16.mxu1 %v3110_v2  ;;  %v2496_v58 = vcombine.low %v1684_v54, %v3545_v55  ;;  %v3143_v60 = vld [vmem:[%s3731_s1 + $0xd8] sm:$0xff]   ;;  %v1757_v9 = vrot.slane %v1755_v30, 1  ;;  %v1779_v39 = vshll.u32 %v3606_v32, 16 }
  0x50   : > { %2819 = vmatprep.subr.bf16.mxu0 %v3112_v3  ;;  %v3177_v30 = vld [vmem:[%s3731_s1 + $0x238] sm:$0xff]  }
  0x51   : > { %v1750_v63 = vshll.u32 %v2496_v58, 16 }
  0x52   : > { %2708 = vmatpush3.bf16.msra.mxu1 %v3110_v2  ;;  %v1748_v2 = vshrl.u32 %v2496_v58, 16  ;;  %v3174_v58 = vld [vmem:[%s3731_s1 + $0x220] sm:$0xff]  }
  0x53   : > { %2820 = vmatpush3.bf16.msra.mxu0 %v3112_v3  ;;  %2709 = vmatprep.subr.bf16.mxu1 %v3115_v5  ;;  %v1752_v3 = vrot.slane %v1750_v63, 1 }
  0x54   : > { %2821 = vmatprep.subr.bf16.mxu0 %v3116_v6 }
  0x55   : > { %v1753_v8 = vor.u32 %v1752_v3, %v1748_v2  ;;  %v3176_v3 = vld [vmem:[%s3731_s1 + $0x230] sm:$0xff]  }
  0x56   : > { %2710 = vmatpush3.bf16.msra.mxu1 %v3115_v5  ;;  %v3146_v5 = vld [vmem:[%s3731_s1 + $0xe0] sm:$0xff]  }
  0x57   : > { %2822 = vmatpush3.bf16.msra.mxu0 %v3116_v6  ;;  %2723 = vmatprep.subr.bf16.mxu1 %v3117_v14  ;;  %v3148_v6 = vld [vmem:[%s3731_s1 + $0x1e0] sm:$0xff]  }
  0x58   : > { %2835 = vmatprep.subr.bf16.mxu0 %v3119_v44 }
  0x59   : > { %2712 = vmatmul.mubr.bf16.vlgmr.msra.gmra.mrb[0].mxu1 %v3325_v24 }
  0x5a   : > { %2724 = vmatpush3.bf16.msra.mxu1 %v3117_v14  ;;  %2824 = vmatmul.mubr.bf16.vlgmr.msra.gmra.mrb[0].mxu0 %v1322_v20  ;;  %v1758_v14 = vsel %vm324_vm0, %v1753_v8, %v1757_v9  ;;  %v1763_v20 = vshll.u32 %v3586_v16, 16 }
  0x5b   : > { %2836 = vmatpush3.bf16.msra.mxu0 %v3119_v44  ;;  %2725 = vmatprep.subr.bf16.mxu1 %v3120_v21  ;;  %v3154_v44 = vld [vmem:[%s3731_s1 + $0x1f0] sm:$0xff]  }
  0x5c   : > { %2837 = vmatprep.subr.bf16.mxu0 %v3121_v25  ;;  %2715 = vmatprep.mubr.bf16.mxu1 %v3345_v42  ;;  %v3141_v42 = vld [vmem:[%s3731_s1 + $0xd0] sm:$0xff]   ;;  %v1765_v28 = vrot.slane %v1763_v20, 1 }
  0x5d   : > { %2827 = vmatprep.mubr.bf16.mxu0 %v1324_v27 }
  0x5e   : > { %2726 = vmatpush3.bf16.msra.mxu1 %v3120_v21  ;;  %v3156_v21 = vld [vmem:[%s3731_s1 + $0x1f8] sm:$0xff]  }
  0x5f   : > { %2838 = vmatpush3.bf16.msra.mxu0 %v3121_v25  ;;  %2727 = vmatprep.subr.bf16.mxu1 %v3122_v4  ;;  %v1767_v25 = vshrl.u32 %v3586_v16, 16 }
  0x60   : > { %2839 = vmatprep.subr.bf16.mxu0 %v3123_v29 }
  0x61   : > { %2716 = vmatmul.mubr.bf16.gmra.mrb[4].mxu1 %v3369_v62  ;;  %v670_v62 = vrot.slane %v3325_v24, 1  ;;  %v3130_v24 = vld [vmem:[%s3731_s1 + $0xb0] sm:$0xff]  }
  0x62   : > { %2728 = vmatpush3.bf16.msra.mxu1 %v3122_v4  ;;  %2828 = vmatmul.mubr.bf16.gmra.mrb[4].mxu0 %v1326_v11  ;;  %v1761_v4 = vor.u32 %v1759_v19, %v1757_v9 }
  0x63   : > { %2840 = vmatpush3.bf16.msra.mxu0 %v3123_v29  ;;  %2729 = vmatprep.subr.bf16.mxu1 %v3124_v34  ;;  %v673_v53 = vsel %vm668_vm1, %v670_v62, %v672_v7  ;;  %v3153_v7 = vld [vmem:[#allocation2 + $0x40] sm:$0xff]  }
  0x64   : > { %2841 = vmatprep.subr.bf16.mxu0 %v3125_v35  ;;  %2719 = vmatprep.mubr.bf16.mxu1 %v3384_v10  ;;  %v671_v10 = vsel %vm668_vm1, %v669_v22, %v670_v62  ;;  %v3162_v29 = vld [vmem:[%s3731_s1 + $0x200] sm:$0xff]   ;;  %v1766_v37 = vsel %vm324_vm0, %v1761_v4, %v1765_v28  ;;  %v1783_v62 = vshrl.u32 %v3606_v32, 16 }
  0x65   : > { %2831 = vmatprep.mubr.bf16.mxu0 %v1328_v36  ;;  %v3163_v36 = vld [vmem:[%s3731_s1 + $0x208] sm:$0xff]  }
  0x66   : > { %2730 = vmatpush3.bf16.msra.mxu1 %v3124_v34  ;;  %v1769_v34 = vor.u32 %v1767_v25, %v1765_v28 }
  0x67   : > { %2842 = vmatpush3.bf16.msra.mxu0 %v3125_v35  ;;  %2731 = vmatprep.subr.bf16.mxu1 %v3126_v38  ;;  %v3608_v35 = vld [vmem:[#allocation2 + $0x40] sm:$0xff]  }
  0x68   : > { %2843 = vmatprep.subr.bf16.mxu0 %v3127_v40 }
  0x69   : > { %2720 = vmatmul.mubr.bf16.gmra.mrb[8].mxu1 %v3399_v26  ;;  %v3132_v26 = vld [vmem:[%s3731_s1 + $0xb8] sm:$0xff]  }
  0x6a   : > { %2732 = vmatpush3.bf16.msra.mxu1 %v3126_v38  ;;  %2832 = vmatmul.mubr.bf16.gmra.mrb[8].mxu0 %v1330_v43 }
  0x6b   : > { %2844 = vmatpush3.bf16.msra.mxu0 %v3127_v40  ;;  %2733 = vmatprep.subr.bf16.mxu1 %v3128_v41  ;;  %v3164_v40 = vld [vmem:[#allocation2 + $0x1c] sm:$0xff]  }
  0x6c   : > { %2845 = vmatprep.subr.bf16.mxu0 %v3129_v45  ;;  %2739 = vmatprep.mubr.bf16.mxu1 %v671_v10  ;;  %v3168_v10 = vld [vmem:[%s3731_s1 + $0x210] sm:$0xff]  }
  0x6d   : > { %2851 = vmatprep.mubr.bf16.mxu0 %v3136_v46  ;;  %v3622_v46 = vld [vmem:[#allocation2 + $0x48] ss:$0 sps:$4 sm:$0x11]  }
  0x6e   : > { %2734 = vmatpush3.bf16.msra.mxu1 %v3128_v41  ;;  %v1787_v41 = vshll.u32 %v3608_v35, 16 }
  0x6f   : > { %2846 = vmatpush3.bf16.msra.mxu0 %v3129_v45  ;;  %2735 = vmatprep.subr.bf16.mxu1 %v3130_v24  ;;  %v1781_v45 = vrot.slane %v1779_v39, 1 }
  0x70   : > { %2847 = vmatprep.subr.bf16.mxu0 %v3131_v47 }
  0x72   : > { %2736 = vmatpush3.bf16.msra.mxu1 %v3130_v24  ;;  %v3166_v24 = vld [vmem:[#allocation2 + $0x24] sm:$0xff]  }
  0x73   : > { %2848 = vmatpush3.bf16.msra.mxu0 %v3131_v47  ;;  %2737 = vmatprep.subr.bf16.mxu1 %v3132_v26  ;;  %v1785_v47 = vor.u32 %v1783_v62, %v1781_v45 }
  0x74   : > { %2849 = vmatprep.subr.bf16.mxu0 %v3133_v48 }
  0x76   : > { %2738 = vmatpush3.bf16.msra.mxu1 %v3132_v26  ;;  %v1789_v26 = vrot.slane %v1787_v41, 1 }
  0x77   : > { %2850 = vmatpush3.bf16.msra.mxu0 %v3133_v48  ;;  %2751 = vmatprep.subr.bf16.mxu1 %v3135_v49  ;;  %v1946_v48 = vld [vmem:[#allocation2 + $0x18] sm:$0xe] }
  0x78   : > { %2863 = vmatprep.subr.bf16.mxu0 %v3137_v50  ;;  %v2527_v54 = vcombine.low %v1946_v48, %v3545_v55  ;;  %v1970_v55 = vrot.slane %v3586_v16, 1 }
  0x79   : > { %2740 = vmatmul.mubr.bf16.vlgmr.msra.gmra.mrb[0].mxu1 %v673_v53  ;;  %v3170_v53 = vld [vmem:[#allocation2 + $0x2c] sm:$0xff]  }
  0x7a   : > { %2752 = vmatpush3.bf16.msra.mxu1 %v3135_v49  ;;  %2852 = vmatmul.mubr.bf16.vlgmr.msra.gmra.mrb[0].mxu0 %v3138_v51  ;;  %v1791_v51 = vshrl.u32 %v3608_v35, 16 }
  0x7b   : > { %2864 = vmatpush3.bf16.msra.mxu0 %v3137_v50  ;;  %2753 = vmatprep.subr.bf16.mxu1 %v3139_v52  ;;  %v3169_v50 = vld [vmem:[%s3731_s1 + $0x218] sm:$0xff]  }
  0x7c   : > { %2865 = vmatprep.subr.bf16.mxu0 %v3140_v56  ;;  %2743 = vmatprep.mubr.bf16.mxu1 %v3456_v12  ;;  %v3150_v12 = vld [vmem:[%s3731_s1 + $0x1e8] sm:$0xff]  }
  0x7d   : > { %2855 = vmatprep.mubr.bf16.mxu0 %v3145_v57  ;;  %v1793_v57 = vor.u32 %v1791_v51, %v1789_v26 }
  0x7e   : > { %2754 = vmatpush3.bf16.msra.mxu1 %v3139_v52  ;;  %v1795_v52 = vshll.u32 %v3622_v46, 16 }
  0x7f   : > { %2866 = vmatpush3.bf16.msra.mxu0 %v3140_v56  ;;  %2755 = vmatprep.subr.bf16.mxu1 %v3141_v42  ;;  %v1790_v56 = vsel %vm324_vm0, %v1785_v47, %v1789_v26  ;;  %v3673_v26 = vld [vmem:[%s3733_s3] ss:$0 sm:$0xff] }
  0x80   : > { %2867 = vmatprep.subr.bf16.mxu0 %v3142_v59 }
  0x81   : > { %2744 = vmatmul.mubr.bf16.gmra.mrb[4].mxu1 %v3463_v15  ;;  %v3152_v15 = vld [vmem:[%s3731_s1 + $0xf0] sm:$0xff]  }
  0x82   : > { %2756 = vmatpush3.bf16.msra.mxu1 %v3141_v42  ;;  %2856 = vmatmul.mubr.bf16.gmra.mrb[4].mxu0 %v3147_v61  ;;  %v1797_v42 = vrot.slane %v1795_v52, 1  ;;  %v1968_v61 = vrot.slane %v3561_v31, 1 }
  0x83   : > { %2868 = vmatpush3.bf16.msra.mxu0 %v3142_v59  ;;  %2757 = vmatprep.subr.bf16.mxu1 %v3143_v60  ;;  %v3172_v59 = vld [vmem:[#allocation2 + $0x34] sm:$0xff]  }
  0x84   : > { %2869 = vmatprep.subr.bf16.mxu0 %v3144_v0  ;;  %2747 = vmatprep.mubr.bf16.mxu1 %v3469_v17  ;;  %v3591_v17 = vld [vmem:[#allocation2 + $0x30] sm:$0xff]   ;;  %v1971_v8 = vsel %vm668_vm1, %v1968_v61, %v1970_v55 }
  0x85   : > { %2859 = vmatprep.mubr.bf16.mxu0 %v3151_v1  ;;  %v1771_v27 = vshll.u32 %v3591_v17, 16  ;;  %v1775_v38 = vshrl.u32 %v3591_v17, 16  ;;  %v1972_v63 = vrot.slane %v3591_v17, 1  ;;  %v3175_v1 = vld [vmem:[%s3731_s1 + $0x228] sm:$0xff]  }
  0x86   : > { %2758 = vmatpush3.bf16.msra.mxu1 %v3143_v60  ;;  %v1967_v60 = vrot.slane %v2527_v54, 1 }
  0x87   : > { %2870 = vmatpush3.bf16.msra.mxu0 %v3144_v0  ;;  %2759 = vmatprep.subr.bf16.mxu1 %v3146_v5  ;;  %v1773_v11 = vrot.slane %v1771_v27, 1  ;;  %v1798_v0 = vsel %vm324_vm0, %v1793_v57, %v1797_v42  ;;  %v1973_v31 = vsel %vm668_vm1, %v1970_v55, %v1972_v63 }
  0x88   : > { %2871 = vmatprep.subr.bf16.mxu0 %v3148_v6  ;;  %v1969_v2 = vsel %vm668_vm1, %v1967_v60, %v1968_v61 }
  0x89   : > { %2748 = vmatmul.mubr.bf16.gmra.mrb[8].mxu1 %v3472_v18  ;;  %v3155_v18 = vld [vmem:[%s3731_s1 + $0xf8] sm:$0xff]   ;;  %v1774_v22 = vsel %vm324_vm0, %v1769_v34, %v1773_v11  ;;  %v1777_v43 = vor.u32 %v1775_v38, %v1773_v11 }
  0x8a   : > { %2760 = vmatpush3.bf16.msra.mxu1 %v3146_v5  ;;  %2860 = vmatmul.mubr.bf16.gmra.mrb[8].mxu0 %v3153_v7  ;;  %v1974_v5 = vrot.slane %v3606_v32, 1 }
  0x8b   : > { %2872 = vmatpush3.bf16.msra.mxu0 %v3148_v6  ;;  %2761 = vmatprep.subr.bf16.mxu1 %v3149_v23  ;;  %v1782_v49 = vsel %vm324_vm0, %v1777_v43, %v1781_v45  ;;  %v1976_v6 = vrot.slane %v3608_v35, 1  ;;  %v3668_v43 = vld [vmem:[%s3732_s2] ss:$0 sm:$0xff] }
  0x8c   : > { %2873 = vmatprep.subr.bf16.mxu0 %v3150_v12  ;;  %2767 = vmatprep.mubr.bf16.mxu1 %v3157_v13  ;;  %v1975_v7 = vsel %vm668_vm1, %v1972_v63, %v1974_v5 }
  0x8d   : > { %2879 = vmatprep.mubr.bf16.mxu0 %v1758_v14  ;;  %v1977_v9 = vsel %vm668_vm1, %v1974_v5, %v1976_v6 }
  0x8e   : > { %2762 = vmatpush3.bf16.msra.mxu1 %v3149_v23  ;;  %v1978_v23 = vrot.slane %v3622_v46, 1 }
  0x8f   : > { %2874 = vmatpush3.bf16.msra.mxu0 %v3150_v12  ;;  %2763 = vmatprep.subr.bf16.mxu1 %v3152_v15 }
  0x90   : > { %2875 = vmatprep.subr.bf16.mxu0 %v3154_v44  ;;  %v1979_v12 = vsel %vm668_vm1, %v1976_v6, %v1978_v23 }
  0x92   : > { %2764 = vmatpush3.bf16.msra.mxu1 %v3152_v15 }
  0x93   : > { %2876 = vmatpush3.bf16.msra.mxu0 %v3154_v44  ;;  %2765 = vmatprep.subr.bf16.mxu1 %v3155_v18 }
  0x94   : > { %2877 = vmatprep.subr.bf16.mxu0 %v3156_v21 }
  0x96   : > { %2766 = vmatpush3.bf16.msra.mxu1 %v3155_v18 }
  0x97   : > { %2878 = vmatpush3.bf16.msra.mxu0 %v3156_v21  ;;  %2919 = vmatprep.subr.bf16.mxu1 %v3162_v29 }
  0x98   : > { %2891 = vmatprep.subr.bf16.mxu0 %v3162_v29 }
  0x99   : > { %2768 = vmatmul.mubr.bf16.vlgmr.msra.gmra.mrb[0].mxu1 %v3160_v33 }
  0x9a   : > { %2880 = vmatmul.mubr.bf16.vlgmr.msra.gmra.mrb[0].mxu0 %v1766_v37  ;;  %2927 = vmatpush3.bf16.msra.mxu1 %v3162_v29 }
  0x9b   : > { %2892 = vmatpush3.bf16.msra.mxu0 %v3162_v29  ;;  %2920 = vmatprep.subr.bf16.mxu1 %v3163_v36 }
  0x9c   : > { %2893 = vmatprep.subr.bf16.mxu0 %v3163_v36  ;;  %2771 = vmatprep.mubr.bf16.mxu1 %v3164_v40 }
  0x9d   : > { %2883 = vmatprep.mubr.bf16.mxu0 %v1774_v22 }
  0x9e   : > { %2928 = vmatpush3.bf16.msra.mxu1 %v3163_v36 }
  0x9f   : > { %2894 = vmatpush3.bf16.msra.mxu0 %v3163_v36  ;;  %2921 = vmatprep.subr.bf16.mxu1 %v3168_v10 }
  0xa0   : > { %2895 = vmatprep.subr.bf16.mxu0 %v3168_v10 }
  0xa1   : > { %2772 = vmatmul.mubr.bf16.gmra.mrb[4].mxu1 %v3166_v24 }
  0xa2   : > { %2884 = vmatmul.mubr.bf16.gmra.mrb[4].mxu0 %v1782_v49  ;;  %2929 = vmatpush3.bf16.msra.mxu1 %v3168_v10 }
  0xa3   : > { %2896 = vmatpush3.bf16.msra.mxu0 %v3168_v10  ;;  %2922 = vmatprep.subr.bf16.mxu1 %v3169_v50 }
  0xa4   : > { %2897 = vmatprep.subr.bf16.mxu0 %v3169_v50  ;;  %2775 = vmatprep.mubr.bf16.mxu1 %v3170_v53 }
  0xa5   : > { %2887 = vmatprep.mubr.bf16.mxu0 %v1790_v56 }
  0xa6   : > { %2930 = vmatpush3.bf16.msra.mxu1 %v3169_v50 }
  0xa7   : > { %2898 = vmatpush3.bf16.msra.mxu0 %v3169_v50  ;;  %2923 = vmatprep.subr.bf16.mxu1 %v3174_v58 }
  0xa8   : > { %2899 = vmatprep.subr.bf16.mxu0 %v3174_v58 }
  0xa9   : > { %2776 = vmatmul.mubr.bf16.gmra.mrb[8].mxu1 %v3172_v59 }
  0xaa   : > { %2888 = vmatmul.mubr.bf16.gmra.mrb[8].mxu0 %v1798_v0  ;;  %2931 = vmatpush3.bf16.msra.mxu1 %v3174_v58 }
  0xab   : > { %2900 = vmatpush3.bf16.msra.mxu0 %v3174_v58  ;;  %2924 = vmatprep.subr.bf16.mxu1 %v3175_v1 }
  0xac   : > { %2901 = vmatprep.subr.bf16.mxu0 %v3175_v1  ;;  %2907 = vmatprep.mubr.bf16.mxu0 %v1969_v2 }
  0xad   : > { %2911 = vmatprep.mubr.bf16.mxu1 %v1973_v31 }
  0xae   : > { %2932 = vmatpush3.bf16.msra.mxu1 %v3175_v1 }
  0xaf   : > { %2902 = vmatpush3.bf16.msra.mxu0 %v3175_v1  ;;  %2925 = vmatprep.subr.bf16.mxu1 %v3176_v3 }
  0xb0   : > { %2903 = vmatprep.subr.bf16.mxu0 %v3176_v3 }
  0xb2   : > { %2933 = vmatpush3.bf16.msra.mxu1 %v3176_v3 }
  0xb3   : > { %2904 = vmatpush3.bf16.msra.mxu0 %v3176_v3  ;;  %2926 = vmatprep.subr.bf16.mxu1 %v3177_v30 }
  0xb4   : > { %2905 = vmatprep.subr.bf16.mxu0 %v3177_v30 }
  0xb6   : > { %2934 = vmatpush3.bf16.msra.mxu1 %v3177_v30 }
  0xb7   : > { %2906 = vmatpush3.bf16.msra.mxu0 %v3177_v30 }
  0xb9   : > { %2912 = vmatmul.mubr.bf16.vlgmr.msra.gmra.mrb[12].mxu1 %v1975_v7 }
  0xba   : > { %2908 = vmatmul.mubr.bf16.vlgmr.msra.gmra.mrb[0].mxu0 %v1971_v8  ;;  %2915 = vmatprep.mubr.bf16.mxu1 %v1977_v9 }
  0xc1   : > { %2916 = vmatmul.mubr.bf16.gmra.mrb[16].mxu1 %v1979_v12 }
 0x16c   : > { %v2769_v13 = vpop.f32.mrb[0].mxu1 }
 0x16d   : > { %v976_v14 = vpop.f32.mrb[1].mxu1 }
 0x16e   : > { %v2770_v15 = vpop.f32.mrb[2].mxu1 }
 0x16f   : > { %v979_v16 = vpop.f32.mrb[3].mxu1 }
 0x174   : > { %v2773_v44 = vpop.f32.mrb[4].mxu1 }
 0x175   : > { %v2885_v17 = vpop.f32.mrb[4].mxu0  ;;  %v992_v18 = vpop.f32.mrb[5].mxu1 }
 0x176   : > { %v2939_v19 = vadd.f32 %v2885_v17, %v2773_v44  ;;  %v1903_v20 = vpop.f32.mrb[5].mxu0  ;;  %v2774_v21 = vpop.f32.mrb[6].mxu1 }
 0x177   : > { %v2941_v25 = vadd.f32 %v1903_v20, %v992_v18  ;;  %v2886_v27 = vpop.f32.mrb[6].mxu0  ;;  %v995_v4 = vpop.f32.mrb[7].mxu1 }
 0x178   : > { %v2943_v28 = vadd.f32 %v2886_v27, %v2774_v21  ;;  %v1906_v29 = vpop.f32.mrb[7].mxu0 }
 0x179   : > { %v2945_v32 = vadd.f32 %v1906_v29, %v995_v4 }
 0x17c   : > { %v2777_v33 = vpop.f32.mrb[8].mxu1 }
 0x17d   : > { %v2889_v34 = vpop.f32.mrb[8].mxu0  ;;  %v1008_v11 = vpop.f32.mrb[9].mxu1 }
 0x17e   : > { %v3657_v35 = vadd.f32 %v2889_v34, %v2777_v33  ;;  %v1919_v37 = vpop.f32.mrb[9].mxu0  ;;  %v2778_v36 = vpop.f32.mrb[10].mxu1 }
 0x17f   : > { %v3659_v38 = vadd.f32 %v1919_v37, %v1008_v11  ;;  %v2890_v39 = vpop.f32.mrb[10].mxu0  ;;  %v1011_v40 = vpop.f32.mrb[11].mxu1 }
 0x180   : > { %v3661_v22 = vadd.f32 %v2890_v39, %v2778_v36  ;;  %v1922_v62 = vpop.f32.mrb[11].mxu0 }
 0x181   : > { %v3663_v41 = vadd.f32 %v1922_v62, %v1011_v40 }
 0x18c   : > { %v2913_v45 = vpop.f32.mrb[12].mxu1 }
 0x18d   : > { %v2909_v10 = vpop.f32.mrb[0].mxu0  ;;  %v2940_v46 = vadd.f32 %v2939_v19, %v2913_v45  ;;  %v2084_v24 = vpop.f32.mrb[13].mxu1 }
 0x18e   : > { %v2935_v47 = vadd.f32 %v2909_v10, %v2769_v13  ;;  %v2068_v48 = vpop.f32.mrb[1].mxu0  ;;  %v2942_v49 = vadd.f32 %v2941_v25, %v2084_v24  ;;  %v2914_v50 = vpop.f32.mrb[14].mxu1 }
 0x18f   : > { %v2140_v51 = vadd.f32 %v2940_v46, %v3668_v43  ;;  %v2936_v52 = vadd.f32 %v2068_v48, %v976_v14  ;;  %v2910_v53 = vpop.f32.mrb[2].mxu0  ;;  %v2944_v54 = vadd.f32 %v2943_v28, %v2914_v50  ;;  %v2087_v56 = vpop.f32.mrb[15].mxu1 }
 0x190   : > { %v2136_v57 = vadd.f32 %v2935_v47, %v3668_v43  ;;  %v2138_v42 = vadd.f32 %v2942_v49, %v3668_v43  ;;  %v2937_v58 = vadd.f32 %v2910_v53, %v2770_v15  ;;  %v2071_v59 = vpop.f32.mrb[3].mxu0  ;;  %v2946_v60 = vadd.f32 %v2945_v32, %v2087_v56 }
 0x191   : > { %v2159_v61 = vmul.f32 %v3673_v26, %v2140_v51  ;;  %v2134_v55 = vadd.f32 %v2936_v52, %v3668_v43  ;;  %v2141_v63 = vadd.f32 %v2944_v54, %v3668_v43  ;;  %v2938_v0 = vadd.f32 %v2071_v59, %v979_v16 }
 0x192   : > { %v2155_v1 = vmul.f32 %v3673_v26, %v2136_v57  ;;  %v2157_v2 = vmul.f32 %v3673_v26, %v2138_v42  ;;  %v2137_v31 = vadd.f32 %v2937_v58, %v3668_v43  ;;  %v2139_v3 = vadd.f32 %v2946_v60, %v3668_v43 }
 0x193   : > { %v2171_v30 = vadd.f32 8192.0, %v2159_v61  ;;  %v2153_v5 = vmul.f32 %v3673_v26, %v2134_v55  ;;  %v2160_v6 = vmul.f32 %v3673_v26, %v2141_v63  ;;  %v2135_v7 = vadd.f32 %v2938_v0, %v3668_v43 }
 0x194   : > { %v2167_v8 = vadd.f32 8192.0, %v2155_v1  ;;  %v2169_v9 = vadd.f32 8192.0, %v2157_v2  ;;  %v2156_v23 = vmul.f32 %v3673_v26, %v2137_v31  ;;  %v2158_v12 = vmul.f32 %v3673_v26, %v2139_v3  ;;  %v2917_v13 = vpop.f32.mrb[16].mxu1 }
 0x195   : > { %v2183_v14 = vmul.f32 6.1035156e-05, %v2171_v30  ;;  %v2165_v15 = vadd.f32 8192.0, %v2153_v5  ;;  %v2172_v16 = vadd.f32 8192.0, %v2160_v6  ;;  %v2154_v44 = vmul.f32 %v3673_v26, %v2135_v7  ;;  %v2100_v17 = vpop.f32.mrb[17].mxu1 }
 0x196   : > { %v2179_v18 = vmul.f32 6.1035156e-05, %v2167_v8  ;;  %v2181_v19 = vmul.f32 6.1035156e-05, %v2169_v9  ;;  %v2168_v20 = vadd.f32 8192.0, %v2156_v23  ;;  %v2170_v21 = vadd.f32 8192.0, %v2158_v12  ;;  %v2918_v25 = vpop.f32.mrb[18].mxu1 }
 0x197   : > { %v2195_v27 = vfloor.f32 %v2183_v14  ;;  %v2177_v4 = vmul.f32 6.1035156e-05, %v2165_v15  ;;  %v2184_v28 = vmul.f32 6.1035156e-05, %v2172_v16  ;;  %v2166_v29 = vadd.f32 8192.0, %v2154_v44  ;;  %v2103_v32 = vpop.f32.mrb[19].mxu1 }
 0x198   : > { %v2191_v33 = vfloor.f32 %v2179_v18  ;;  %v2193_v34 = vfloor.f32 %v2181_v19  ;;  %v2180_v11 = vmul.f32 6.1035156e-05, %v2168_v20  ;;  %v2182_v37 = vmul.f32 6.1035156e-05, %v2170_v21 }
 0x199   : > { %2207 = vst [vmem:[%s3282_s10 + $0x30] sm:$0xff] %v2195_v27  ;;  %v2189_v36 = vfloor.f32 %v2177_v4  ;;  %v2196_v39 = vfloor.f32 %v2184_v28  ;;  %v2178_v40 = vmul.f32 6.1035156e-05, %v2166_v29  ;;  %v2948_v62 = vadd.f32 %v3657_v35, %v2917_v13 }
 0x19a   : > { %2203 = vst [vmem:[%s3282_s10 + $0x10] sm:$0xff] %v2191_v33  ;;  %2205 = vst [vmem:[%s3282_s10 + $0x20] sm:$0xff] %v2193_v34  ;;  %v2192_v45 = vfloor.f32 %v2180_v11  ;;  %v2194_v10 = vfloor.f32 %v2182_v37  ;;  %v2950_v46 = vadd.f32 %v3659_v38, %v2100_v17  ;;  %v2952_v24 = vadd.f32 %v3661_v22, %v2918_v25 }
 0x19b   : > { %2201 = vst [vmem:[%s3282_s10] sm:$0xff] %v2189_v36  ;;  %2208 = vst [vmem:[%s3282_s10 + $0x38] sm:$0xff] %v2196_v39  ;;  %v2190_v47 = vfloor.f32 %v2178_v40  ;;  %v2144_v48 = vadd.f32 %v2948_v62, %v3668_v43  ;;  %v2954_v49 = vadd.f32 %v3663_v41, %v2103_v32 }
 0x19c   : > { %2204 = vst [vmem:[%s3282_s10 + $0x18] sm:$0xff] %v2192_v45  ;;  %2206 = vst [vmem:[%s3282_s10 + $0x28] sm:$0xff] %v2194_v10  ;;  %v2142_v35 = vadd.f32 %v2950_v46, %v3668_v43  ;;  %v2145_v50 = vadd.f32 %v2952_v24, %v3668_v43 }
 0x19d   : > { %2202 = vst [vmem:[%s3282_s10 + $0x8] sm:$0xff] %v2190_v47  ;;  %v2163_v51 = vmul.f32 %v3673_v26, %v2144_v48  ;;  %v2143_v38 = vadd.f32 %v2954_v49, %v3668_v43 }
 0x19e   : > { %v2161_v22 = vmul.f32 %v3673_v26, %v2142_v35  ;;  %v2164_v52 = vmul.f32 %v3673_v26, %v2145_v50 }
 0x19f   : > { %v2175_v53 = vadd.f32 8192.0, %v2163_v51  ;;  %v2162_v41 = vmul.f32 %v3673_v26, %v2143_v38 }
 0x1a0   : > { %v2173_v54 = vadd.f32 8192.0, %v2161_v22  ;;  %v2176_v56 = vadd.f32 8192.0, %v2164_v52 }
 0x1a1   : > { %v2187_v57 = vmul.f32 6.1035156e-05, %v2175_v53  ;;  %v2174_v42 = vadd.f32 8192.0, %v2162_v41 }
 0x1a2   : > { %v2185_v58 = vmul.f32 6.1035156e-05, %v2173_v54  ;;  %v2188_v59 = vmul.f32 6.1035156e-05, %v2176_v56 }
 0x1a3   : > { %v2199_v60 = vfloor.f32 %v2187_v57  ;;  %v2186_v61 = vmul.f32 6.1035156e-05, %v2174_v42 }
 0x1a4   : > { %v2197_v55 = vfloor.f32 %v2185_v58  ;;  %v2200_v43 = vfloor.f32 %v2188_v59 }
 0x1a5   : > { %2211 = vst [vmem:[%s3282_s10 + $0x50] sm:$0xff] %v2199_v60  ;;  %v2198_v63 = vfloor.f32 %v2186_v61 }
 0x1a6   : > { %2209 = vst [vmem:[%s3282_s10 + $0x40] sm:$0xff] %v2197_v55  ;;  %2212 = vst [vmem:[%s3282_s10 + $0x58] sm:$0xff] %v2200_v43 }
 0x1a7   : > { %2210 = vst [vmem:[%s3282_s10 + $0x48] sm:$0xff] %v2198_v63 }
 0x1a8 PF: > { %s14_s19 = sadd.s32 1, %s3219_s19   ;;  %s3735_s15 = smov %s3211_s17 }
 0x1a9   : > { %p11_p6 = scmp.ge.s32.totalorder %s14_s19, 10   ;;  %s3736_s16 = smov %s3215_s18 }
 0x1aa   : > { %s3737_s17 = smov %s3740_s20  ;;  %s3738_s18 = smov %s3744_s21 }
 0x1ab   :  { %13 = sbr.rel (!%p11_p6) target bundleno = 3 (0x3), region = 110 }
 0x1b2   :  { %2241 = vsyncmov [#allocation3] }
 0x1b5   :  { %s2242_s10 = vpop.sfrf %2241 }
 0x1b6   :  { %p2540_p7 = scmp.ne.s32.totalorder %s2242_s10, 0 }
 0x1b8   :  { %2246 = shalt.err (%p2540_p7)  }

</bundles_post_ra>
